<compile_context>
chip_gen: v7x
topology: tpu7x:2x2x1
jax: 0.10.0
libtpu: 0.0.40
codegen_flags: <defaults>
</compile_context>

<pallas_src>
import functools

import jax
import jax.numpy as jnp
from jax.experimental import pallas as pl
from jax.experimental.pallas import tpu as pltpu


def _round_up(x, m):
    return (x + m - 1) // m * m


# ----------------------------------------------------------------------------
# Pallas kernel 1a: single-K-block matmul + bias + activation (no scratch).
# grid = (M_tiles,)  -- every step independent ("parallel").
# ----------------------------------------------------------------------------
def _mm_bias_act_single_kernel(x_ref, w_ref, b_ref, o_ref, *, activation):
    r = jnp.dot(x_ref[...], w_ref[...], preferred_element_type=jnp.float32)
    r = r + b_ref[...]                         # bias (1, N) broadcasts over rows
    if activation == "relu":
        r = jnp.maximum(r, 0.0)
    o_ref[...] = r.astype(o_ref.dtype)


# ----------------------------------------------------------------------------
# Pallas kernel 1b: K-tiled matmul + bias + activation with VMEM accumulator.
# grid = (M_tiles, K_tiles); K is the reduction axis ("arbitrary", last).
# ----------------------------------------------------------------------------
def _mm_bias_act_acc_kernel(x_ref, w_ref, b_ref, o_ref, acc_ref, *, activation):
    k = pl.program_id(1)

    @pl.when(k == 0)
    def _init():
        acc_ref[...] = jnp.zeros_like(acc_ref)

    acc_ref[...] += jnp.dot(x_ref[...], w_ref[...],
                            preferred_element_type=jnp.float32)

    @pl.when(k == pl.num_programs(1) - 1)
    def _finalize():
        r = acc_ref[...] + b_ref[...]
        if activation == "relu":
            r = jnp.maximum(r, 0.0)
        o_ref[...] = r.astype(o_ref.dtype)


def matmul_bias_act(x, w, b, activation="none", out_dtype=jnp.float32,
                    tile_m=512, tile_k=2048):
    """(M, K) @ (K, N) + b with fused activation; bf16 operands, f32 accum."""
    M, K = x.shape
    K2, N = w.shape
    assert K == K2

    # M tiling (pad to a multiple of the tile; padded rows sliced off below).
    if M <= tile_m:
        Mp = _round_up(M, 8)
        tm = Mp
    else:
        tm = tile_m
        Mp = _round_up(M, tm)
    # K tiling (single full-width block when K is small).
    if K <= tile_k:
        Kp = K
        tk = K
    else:
        tk = tile_k
        Kp = _round_up(K, tk)

    x = x.astype(jnp.bfloat16)
    w = w.astype(jnp.bfloat16)
    if (Mp, Kp) != (M, K):
        x = jnp.pad(x, ((0, Mp - M), (0, Kp - K)))
    if Kp != K:
        w = jnp.pad(w, ((0, Kp - K), (0, 0)))
    b2 = b.reshape(1, N).astype(jnp.float32)

    nm, nk = Mp // tm, Kp // tk

    if nk == 1:
        # Fast path: whole contraction in one block -> no accumulator scratch.
        out = pl.pallas_call(
            functools.partial(_mm_bias_act_single_kernel, activation=activation),
            out_shape=jax.ShapeDtypeStruct((Mp, N), out_dtype),
            grid=(nm,),
            in_specs=[
                pl.BlockSpec((tm, Kp), lambda m: (m, 0)),
                pl.BlockSpec((Kp, N), lambda m: (0, 0)),
                pl.BlockSpec((1, N), lambda m: (0, 0)),
            ],
            out_specs=pl.BlockSpec((tm, N), lambda m: (m, 0)),
            compiler_params=pltpu.CompilerParams(
                dimension_semantics=("parallel",),
                vmem_limit_bytes=32 * 1024 * 1024,
            ),
        )(x, w, b2)
    else:
        out = pl.pallas_call(
            functools.partial(_mm_bias_act_acc_kernel, activation=activation),
            out_shape=jax.ShapeDtypeStruct((Mp, N), out_dtype),
            grid=(nm, nk),
            in_specs=[
                pl.BlockSpec((tm, tk), lambda m, k: (m, k)),
                pl.BlockSpec((tk, N), lambda m, k: (k, 0)),
                pl.BlockSpec((1, N), lambda m, k: (0, 0)),
            ],
            out_specs=pl.BlockSpec((tm, N), lambda m, k: (m, 0)),
            scratch_shapes=[pltpu.VMEM((tm, N), jnp.float32)],
            compiler_params=pltpu.CompilerParams(
                dimension_semantics=("parallel", "arbitrary"),
                vmem_limit_bytes=32 * 1024 * 1024,
            ),
        )(x, w, b2)
    return out[:M]


# ----------------------------------------------------------------------------
# Pallas kernel 2: fused FC head  = Linear(9216,128) + ReLU + Linear(128,10)
# + Softmax.  grid = (K_tiles,) streams fc1's big weight; fc2 is resident.
# ----------------------------------------------------------------------------
def _fc_head_kernel(x_ref, w1_ref, b1_ref, w2_ref, b2_ref, o_ref, acc_ref):
    k = pl.program_id(0)

    @pl.when(k == 0)
    def _init():
        acc_ref[...] = jnp.zeros_like(acc_ref)

    acc_ref[...] += jnp.dot(x_ref[...], w1_ref[...],
                            preferred_element_type=jnp.float32)

    @pl.when(k == pl.num_programs(0) - 1)
    def _finalize():
        h = jnp.maximum(acc_ref[...] + b1_ref[...], 0.0)           # (M, 128) f32
        logits = jnp.dot(h.astype(w2_ref.dtype), w2_ref[...],
                         preferred_element_type=jnp.float32) + b2_ref[...]
        m = jnp.max(logits, axis=-1, keepdims=True)
        e = jnp.exp(logits - m)
        denom = jnp.sum(e, axis=-1, keepdims=True)
        o_ref[...] = (e * pl.reciprocal(denom, approx=True)).astype(o_ref.dtype)


def fc_head(x, w1, b1, w2, b2, tile_k=2304):
    M, K = x.shape
    K1, H = w1.shape
    H2, N = w2.shape
    assert K == K1 and H == H2

    Mp = _round_up(M, 8)
    Kp = _round_up(K, tile_k)
    x = x.astype(jnp.bfloat16)
    if (Mp, Kp) != (M, K):
        x = jnp.pad(x, ((0, Mp - M), (0, Kp - K)))
    w1 = w1.astype(jnp.bfloat16)
    if Kp != K:
        w1 = jnp.pad(w1, ((0, Kp - K), (0, 0)))
    w2 = w2.astype(jnp.bfloat16)
    b1 = b1.reshape(1, H).astype(jnp.float32)
    b2 = b2.reshape(1, N).astype(jnp.float32)

    nk = Kp // tile_k
    out = pl.pallas_call(
        _fc_head_kernel,
        out_shape=jax.ShapeDtypeStruct((Mp, N), jnp.float32),
        grid=(nk,),
        in_specs=[
            pl.BlockSpec((Mp, tile_k), lambda k: (0, k)),
            pl.BlockSpec((tile_k, H), lambda k: (k, 0)),
            pl.BlockSpec((1, H), lambda k: (0, 0)),
            pl.BlockSpec((H, N), lambda k: (0, 0)),
            pl.BlockSpec((1, N), lambda k: (0, 0)),
        ],
        out_specs=pl.BlockSpec((Mp, N), lambda k: (0, 0)),
        scratch_shapes=[pltpu.VMEM((Mp, H), jnp.float32)],
        compiler_params=pltpu.CompilerParams(
            dimension_semantics=("arbitrary",),
            vmem_limit_bytes=32 * 1024 * 1024,
        ),
    )(x, w1, b1, w2, b2)
    return out[:M]


# ----------------------------------------------------------------------------
# Plain-JAX glue: im2col patch extraction (NHWC), bf16 patches.
# ----------------------------------------------------------------------------
def im2col_nhwc(x, kh, kw, stride, pad, k_pad_to=None):
    """x: (B, H, W, C) -> (B*OH*OW, kh*kw*C) with (kh, kw, C) ordering."""
    if pad > 0:
        x = jnp.pad(x, ((0, 0), (pad, pad), (pad, pad), (0, 0)))
    B, H, W, C = x.shape
    oh = (H - kh) // stride + 1
    ow = (W - kw) // stride + 1
    cols = []
    for i in range(kh):
        for j in range(kw):
            cols.append(
                x[:, i: i + oh * stride: stride, j: j + ow * stride: stride, :]
            )
    p = jnp.stack(cols, axis=3)                       # (B, OH, OW, kh*kw, C)
    p = p.reshape(B, oh, ow, kh * kw * C)
    k = kh * kw * C
    if k_pad_to is not None and k_pad_to > k:         # zero-pad contraction dim
        p = jnp.pad(p, ((0, 0), (0, 0), (0, 0), (0, k_pad_to - k)))
        k = k_pad_to
    return p.reshape(B * oh * ow, k), oh, ow


# ----------------------------------------------------------------------------
# Parameters: synthetic PyTorch-layout init + one-time prep (transposes,
# NCHW-flatten fold, bf16 casts, K padding) hoisted out of the forward pass.
# ----------------------------------------------------------------------------
def init_params(key):
    ks = jax.random.split(key, 8)
    s = 0.05
    return {
        "conv1_w": s * jax.random.normal(ks[0], (64, 1, 5, 5), jnp.float32),
        "conv1_b": s * jax.random.normal(ks[1], (64,), jnp.float32),
        "conv2_w": s * jax.random.normal(ks[2], (64, 64, 5, 5), jnp.float32),
        "conv2_b": s * jax.random.normal(ks[3], (64,), jnp.float32),
        "fc1_w": s * jax.random.normal(ks[4], (128, 9216), jnp.float32),  # (out,in)
        "fc1_b": s * jax.random.normal(ks[5], (128,), jnp.float32),
        "fc2_w": s * jax.random.normal(ks[6], (10, 128), jnp.float32),
        "fc2_b": s * jax.random.normal(ks[7], (10,), jnp.float32),
    }


def prepare_params(params):
    # conv weights -> (kh*kw*Cin, Cout) matching im2col (kh,kw,C) ordering.
    w1m = jnp.transpose(params["conv1_w"], (2, 3, 1, 0)).reshape(25, 64)
    w1m = jnp.pad(w1m, ((0, 7), (0, 0))).astype(jnp.bfloat16)       # K: 25 -> 32
    w2m = jnp.transpose(params["conv2_w"], (2, 3, 1, 0)).reshape(1600, 64)
    w2m = w2m.astype(jnp.bfloat16)
    # fc1: PyTorch flattens NCHW (c,h,w); our features are (h,w,c)-ordered.
    # Fold that permutation into the weight rows once here.
    fc1 = params["fc1_w"].reshape(128, 64, 12, 12)
    fc1 = jnp.transpose(fc1, (2, 3, 1, 0)).reshape(9216, 128).astype(jnp.bfloat16)
    fc2 = jnp.transpose(params["fc2_w"], (1, 0)).astype(jnp.bfloat16)  # (128, 10)
    return {
        "w1m": w1m, "b1": params["conv1_b"].astype(jnp.float32),
        "w2m": w2m, "b2": params["conv2_b"].astype(jnp.float32),
        "fc1w": fc1, "fc1b": params["fc1_b"].astype(jnp.float32),
        "fc2w": fc2, "fc2b": params["fc2_b"].astype(jnp.float32),
    }


# ----------------------------------------------------------------------------
# Full forward pass: 3 Pallas dispatches (conv1-mm, conv2-mm, fused FC head).
# ----------------------------------------------------------------------------
@jax.jit
def cnn_mnist_forward(prep, x_nchw):
    """x_nchw: (B, 1, 28, 28) float32 -> (B, 10) softmax probabilities."""
    B = x_nchw.shape[0]
    x = jnp.transpose(x_nchw, (0, 2, 3, 1)).astype(jnp.bfloat16)   # NCHW -> NHWC

    # Conv2d(1, 64, 5, stride=1, padding=2) + ReLU  -> (B, 28, 28, 64)
    p1, oh1, ow1 = im2col_nhwc(x, 5, 5, 1, 2, k_pad_to=32)
    h1 = matmul_bias_act(p1, prep["w1m"], prep["b1"], "relu",
                         out_dtype=jnp.bfloat16)
    h1 = h1.reshape(B, oh1, ow1, 64)

    # Conv2d(64, 64, 5, stride=2, padding=0) + ReLU -> (B, 12, 12, 64)
    p2, oh2, ow2 = im2col_nhwc(h1, 5, 5, 2, 0)
    h2 = matmul_bias_act(p2, prep["w2m"], prep["b2"], "relu",
                         out_dtype=jnp.bfloat16)

    # Dropout(0.25): identity in eval mode.  Flatten: features are already in
    # (h, w, c) order; the PyTorch NCHW-flatten permutation was folded into
    # prep["fc1w"] at init, so no runtime transpose is needed here.
    feats = h2.reshape(B, oh2 * ow2 * 64)                           # (B, 9216)

    # Linear(9216,128) + ReLU + Dropout(id) + Linear(128,10) + Softmax, fused.
    return fc_head(feats, prep["fc1w"], prep["fc1b"],
                   prep["fc2w"], prep["fc2b"])


if __name__ == "__main__":
    key = jax.random.PRNGKey(0)
    pkey, xkey = jax.random.split(key)
    params = init_params(pkey)
    prep = prepare_params(params)

    # MNIST-shaped input: the Linear(9216, 128) layer forces 1x28x28 inputs.
    x = jax.random.normal(xkey, (2, 1, 28, 28), jnp.float32)

    out = jax.block_until_ready(cnn_mnist_forward(prep, x))

    assert out.shape == (2, 10)
    assert bool(jnp.all(jnp.isfinite(out)))
    # Softmax rows sum to ~1 (approx-reciprocal normalization -> loose tol).
    assert bool(jnp.all(jnp.abs(jnp.sum(out, axis=-1) - 1.0) < 1e-2))
    print("KERNEL_OK")
</pallas_src>

<mosaic_0001>
module attributes {stable_mosaic.version = 11 : i64} {
  func.func @_mm_bias_act_single_kernel(%arg0: i32, %arg1: memref<512x32xbf16, #tpu.memory_space<vmem>>, %arg2: memref<32x64xbf16, #tpu.memory_space<vmem>>, %arg3: memref<1x64xf32, #tpu.memory_space<vmem>>, %arg4: memref<512x64xbf16, #tpu.memory_space<vmem>>) attributes {dimension_semantics = [#tpu.dimension_semantics<parallel>], iteration_bounds = array<i64: 4>, scalar_prefetch = 0 : i64, scratch_operands = 0 : i64, tpu.core_type = #tpu.core_type<tc>, window_params = [{transform_indices = @transform_0, window_bounds = array<i64: 512, 32>}, {pipeline_mode = #tpu.pipeline_mode<synchronous>, transform_indices = @transform_1, window_bounds = array<i64: 32, 64>}, {pipeline_mode = #tpu.pipeline_mode<synchronous>, transform_indices = @transform_2, window_bounds = array<i64: 1, 64>}, {transform_indices = @transform_3, window_bounds = array<i64: 512, 64>}]} {
    %c0 = arith.constant 0 : index
    %c0_0 = arith.constant 0 : index
    %0 = vector.load %arg1[%c0, %c0_0] : memref<512x32xbf16, #tpu.memory_space<vmem>>, vector<512x32xbf16>
    %c0_1 = arith.constant 0 : index
    %c0_2 = arith.constant 0 : index
    %1 = vector.load %arg2[%c0_1, %c0_2] : memref<32x64xbf16, #tpu.memory_space<vmem>>, vector<32x64xbf16>
    %cst = arith.constant dense<0.000000e+00> : vector<512x64xf32>
    %2 = tpu.matmul %0, %1, %cst {dimension_numbers = #tpu.dot_dimension_numbers<[1], [0], [0], [1], [0, 0, 1, 1], [], []>} : vector<512x32xbf16>, vector<32x64xbf16>, vector<512x64xf32> -> vector<512x64xf32>
    %c0_3 = arith.constant 0 : index
    %c0_4 = arith.constant 0 : index
    %3 = vector.load %arg3[%c0_3, %c0_4] : memref<1x64xf32, #tpu.memory_space<vmem>>, vector<1x64xf32>
    %4 = vector.broadcast %3 : vector<1x64xf32> to vector<512x64xf32>
    %5 = arith.addf %2, %4 : vector<512x64xf32>
    %cst_5 = arith.constant 0.000000e+00 : f32
    %6 = vector.broadcast %cst_5 : f32 to vector<512x64xf32>
    %7 = arith.maximumf %5, %6 : vector<512x64xf32>
    %8 = arith.truncf %7 : vector<512x64xf32> to vector<512x64xbf16>
    %c0_6 = arith.constant 0 : index
    %c0_7 = arith.constant 0 : index
    %9 = vector.load %arg4[%c0_6, %c0_7] : memref<512x64xbf16, #tpu.memory_space<vmem>>, vector<512x64xbf16>
    tpu.vector_store %arg4[%c0_6, %c0_7], %8 {strides = array<i32>} : memref<512x64xbf16, #tpu.memory_space<vmem>>, vector<512x64xbf16>,
    return
  }
  func.func @transform_0(%arg0: i32) -> (i32, i32) {
    %c0_i32 = arith.constant 0 : i32
    %c0_i32_0 = arith.constant 0 : i32
    return %arg0, %c0_i32 : i32, i32
  }
  func.func @transform_1(%arg0: i32) -> (i32, i32) {
    %c0_i32 = arith.constant 0 : i32
    %c0_i32_0 = arith.constant 0 : i32
    %c0_i32_1 = arith.constant 0 : i32
    return %c0_i32, %c0_i32_0 : i32, i32
  }
  func.func @transform_2(%arg0: i32) -> (i32, i32) {
    %c0_i32 = arith.constant 0 : i32
    %c0_i32_0 = arith.constant 0 : i32
    %c0_i32_1 = arith.constant 0 : i32
    return %c0_i32, %c0_i32_0 : i32, i32
  }
  func.func @transform_3(%arg0: i32) -> (i32, i32) {
    %c0_i32 = arith.constant 0 : i32
    %c0_i32_0 = arith.constant 0 : i32
    return %arg0, %c0_i32 : i32, i32
  }
}

module attributes {stable_mosaic.version = 11 : i64} {
  func.func @_mm_bias_act_single_kernel(%arg0: i32, %arg1: memref<288x1600xbf16, #tpu.memory_space<vmem>>, %arg2: memref<1600x64xbf16, #tpu.memory_space<vmem>>, %arg3: memref<1x64xf32, #tpu.memory_space<vmem>>, %arg4: memref<288x64xbf16, #tpu.memory_space<vmem>>) attributes {dimension_semantics = [#tpu.dimension_semantics<parallel>], iteration_bounds = array<i64: 1>, scalar_prefetch = 0 : i64, scratch_operands = 0 : i64, tpu.core_type = #tpu.core_type<tc>, window_params = [{transform_indices = @transform_0, window_bounds = array<i64: 288, 1600>}, {pipeline_mode = #tpu.pipeline_mode<synchronous>, transform_indices = @transform_1, window_bounds = array<i64: 1600, 64>}, {pipeline_mode = #tpu.pipeline_mode<synchronous>, transform_indices = @transform_2, window_bounds = array<i64: 1, 64>}, {transform_indices = @transform_3, window_bounds = array<i64: 288, 64>}]} {
    %c0 = arith.constant 0 : index
    %c0_0 = arith.constant 0 : index
    %0 = vector.load %arg1[%c0, %c0_0] : memref<288x1600xbf16, #tpu.memory_space<vmem>>, vector<288x1600xbf16>
    %c0_1 = arith.constant 0 : index
    %c0_2 = arith.constant 0 : index
    %1 = vector.load %arg2[%c0_1, %c0_2] : memref<1600x64xbf16, #tpu.memory_space<vmem>>, vector<1600x64xbf16>
    %cst = arith.constant dense<0.000000e+00> : vector<288x64xf32>
    %2 = tpu.matmul %0, %1, %cst {dimension_numbers = #tpu.dot_dimension_numbers<[1], [0], [0], [1], [0, 0, 1, 1], [], []>} : vector<288x1600xbf16>, vector<1600x64xbf16>, vector<288x64xf32> -> vector<288x64xf32>
    %c0_3 = arith.constant 0 : index
    %c0_4 = arith.constant 0 : index
    %3 = vector.load %arg3[%c0_3, %c0_4] : memref<1x64xf32, #tpu.memory_space<vmem>>, vector<1x64xf32>
    %4 = vector.broadcast %3 : vector<1x64xf32> to vector<288x64xf32>
    %5 = arith.addf %2, %4 : vector<288x64xf32>
    %cst_5 = arith.constant 0.000000e+00 : f32
    %6 = vector.broadcast %cst_5 : f32 to vector<288x64xf32>
    %7 = arith.maximumf %5, %6 : vector<288x64xf32>
    %8 = arith.truncf %7 : vector<288x64xf32> to vector<288x64xbf16>
    %c0_6 = arith.constant 0 : index
    %c0_7 = arith.constant 0 : index
    %9 = vector.load %arg4[%c0_6, %c0_7] : memref<288x64xbf16, #tpu.memory_space<vmem>>, vector<288x64xbf16>
    tpu.vector_store %arg4[%c0_6, %c0_7], %8 {strides = array<i32>} : memref<288x64xbf16, #tpu.memory_space<vmem>>, vector<288x64xbf16>,
    return
  }
  func.func @transform_0(%arg0: i32) -> (i32, i32) {
    %c0_i32 = arith.constant 0 : i32
    %c0_i32_0 = arith.constant 0 : i32
    return %arg0, %c0_i32 : i32, i32
  }
  func.func @transform_1(%arg0: i32) -> (i32, i32) {
    %c0_i32 = arith.constant 0 : i32
    %c0_i32_0 = arith.constant 0 : i32
    %c0_i32_1 = arith.constant 0 : i32
    return %c0_i32, %c0_i32_0 : i32, i32
  }
  func.func @transform_2(%arg0: i32) -> (i32, i32) {
    %c0_i32 = arith.constant 0 : i32
    %c0_i32_0 = arith.constant 0 : i32
    %c0_i32_1 = arith.constant 0 : i32
    return %c0_i32, %c0_i32_0 : i32, i32
  }
  func.func @transform_3(%arg0: i32) -> (i32, i32) {
    %c0_i32 = arith.constant 0 : i32
    %c0_i32_0 = arith.constant 0 : i32
    return %arg0, %c0_i32 : i32, i32
  }
}

module attributes {stable_mosaic.version = 11 : i64} {
  func.func @_fc_head_kernel(%arg0: i32, %arg1: memref<8x2304xbf16, #tpu.memory_space<vmem>>, %arg2: memref<2304x128xbf16, #tpu.memory_space<vmem>>, %arg3: memref<1x128xf32, #tpu.memory_space<vmem>>, %arg4: memref<128x10xbf16, #tpu.memory_space<vmem>>, %arg5: memref<1x10xf32, #tpu.memory_space<vmem>>, %arg6: memref<8x10xf32, #tpu.memory_space<vmem>>, %arg7: memref<8x128xf32, #tpu.memory_space<vmem>>) attributes {dimension_semantics = [#tpu.dimension_semantics<arbitrary>], iteration_bounds = array<i64: 4>, scalar_prefetch = 0 : i64, scratch_operands = 1 : i64, tpu.core_type = #tpu.core_type<tc>, window_params = [{transform_indices = @transform_0, window_bounds = array<i64: 8, 2304>}, {transform_indices = @transform_1, window_bounds = array<i64: 2304, 128>}, {pipeline_mode = #tpu.pipeline_mode<synchronous>, transform_indices = @transform_2, window_bounds = array<i64: 1, 128>}, {pipeline_mode = #tpu.pipeline_mode<synchronous>, transform_indices = @transform_3, window_bounds = array<i64: 128, 10>}, {pipeline_mode = #tpu.pipeline_mode<synchronous>, transform_indices = @transform_4, window_bounds = array<i64: 1, 10>}, {pipeline_mode = #tpu.pipeline_mode<synchronous>, transform_indices = @transform_5, window_bounds = array<i64: 8, 10>}]} {
    %c0_i32 = arith.constant 0 : i32
    %0 = arith.cmpi eq, %arg0, %c0_i32 : i32
    %1 = arith.extui %0 : i1 to i32
    %c0_i32_0 = arith.constant 0 : i32
    %2 = arith.cmpi ne, %1, %c0_i32_0 : i32
    scf.if %2 {
      %cst_9 = arith.constant 0.000000e+00 : f32
      %12 = vector.broadcast %cst_9 : f32 to vector<8x128xf32>
      %c0_10 = arith.constant 0 : index
      %c0_11 = arith.constant 0 : index
      %13 = vector.load %arg7[%c0_10, %c0_11] : memref<8x128xf32, #tpu.memory_space<vmem>>, vector<8x128xf32>
      tpu.vector_store %arg7[%c0_10, %c0_11], %12 {strides = array<i32>} : memref<8x128xf32, #tpu.memory_space<vmem>>, vector<8x128xf32>,
    } else {
    }
    %c0 = arith.constant 0 : index
    %c0_1 = arith.constant 0 : index
    %3 = vector.load %arg7[%c0, %c0_1] : memref<8x128xf32, #tpu.memory_space<vmem>>, vector<8x128xf32>
    %c0_2 = arith.constant 0 : index
    %c0_3 = arith.constant 0 : index
    %4 = vector.load %arg1[%c0_2, %c0_3] : memref<8x2304xbf16, #tpu.memory_space<vmem>>, vector<8x2304xbf16>
    %c0_4 = arith.constant 0 : index
    %c0_5 = arith.constant 0 : index
    %5 = vector.load %arg2[%c0_4, %c0_5] : memref<2304x128xbf16, #tpu.memory_space<vmem>>, vector<2304x128xbf16>
    %cst = arith.constant dense<0.000000e+00> : vector<8x128xf32>
    %6 = tpu.matmul %4, %5, %cst {dimension_numbers = #tpu.dot_dimension_numbers<[1], [0], [0], [1], [0, 0, 1, 1], [], []>} : vector<8x2304xbf16>, vector<2304x128xbf16>, vector<8x128xf32> -> vector<8x128xf32>
    %7 = arith.addf %3, %6 : vector<8x128xf32>
    %c0_6 = arith.constant 0 : index
    %c0_7 = arith.constant 0 : index
    %8 = vector.load %arg7[%c0_6, %c0_7] : memref<8x128xf32, #tpu.memory_space<vmem>>, vector<8x128xf32>
    tpu.vector_store %arg7[%c0_6, %c0_7], %7 {strides = array<i32>} : memref<8x128xf32, #tpu.memory_space<vmem>>, vector<8x128xf32>,
    %c3_i32 = arith.constant 3 : i32
    %9 = arith.cmpi eq, %arg0, %c3_i32 : i32
    %10 = arith.extui %9 : i1 to i32
    %c0_i32_8 = arith.constant 0 : i32
    %11 = arith.cmpi ne, %10, %c0_i32_8 : i32
    scf.if %11 {
      %c0_9 = arith.constant 0 : index
      %c0_10 = arith.constant 0 : index
      %12 = vector.load %arg7[%c0_9, %c0_10] : memref<8x128xf32, #tpu.memory_space<vmem>>, vector<8x128xf32>
      %c0_11 = arith.constant 0 : index
      %c0_12 = arith.constant 0 : index
      %13 = vector.load %arg3[%c0_11, %c0_12] : memref<1x128xf32, #tpu.memory_space<vmem>>, vector<1x128xf32>
      %14 = vector.broadcast %13 : vector<1x128xf32> to vector<8x128xf32>
      %15 = arith.addf %12, %14 : vector<8x128xf32>
      %cst_13 = arith.constant 0.000000e+00 : f32
      %16 = vector.broadcast %cst_13 : f32 to vector<8x128xf32>
      %17 = arith.maximumf %15, %16 : vector<8x128xf32>
      %18 = arith.truncf %17 : vector<8x128xf32> to vector<8x128xbf16>
      %c0_14 = arith.constant 0 : index
      %c0_15 = arith.constant 0 : index
      %19 = vector.load %arg4[%c0_14, %c0_15] : memref<128x10xbf16, #tpu.memory_space<vmem>>, vector<128x10xbf16>
      %cst_16 = arith.constant dense<0.000000e+00> : vector<8x10xf32>
      %20 = tpu.matmul %18, %19, %cst_16 {dimension_numbers = #tpu.dot_dimension_numbers<[1], [0], [0], [1], [0, 0, 1, 1], [], []>} : vector<8x128xbf16>, vector<128x10xbf16>, vector<8x10xf32> -> vector<8x10xf32>
      %c0_17 = arith.constant 0 : index
      %c0_18 = arith.constant 0 : index
      %21 = vector.load %arg5[%c0_17, %c0_18] : memref<1x10xf32, #tpu.memory_space<vmem>>, vector<1x10xf32>
      %22 = vector.broadcast %21 : vector<1x10xf32> to vector<8x10xf32>
      %23 = arith.addf %20, %22 : vector<8x10xf32>
      %cst_19 = arith.constant dense<0xFF800000> : vector<8xf32>
      %24 = vector.multi_reduction <maximumf>, %23, %cst_19 [1] : vector<8x10xf32> to vector<8xf32>
      %25 = vector.shape_cast %24 : vector<8xf32> to vector<8x1xf32>
      %26 = vector.broadcast %25 : vector<8x1xf32> to vector<8x10xf32>
      %27 = arith.subf %23, %26 : vector<8x10xf32>
      %28 = math.exp %27 : vector<8x10xf32>
      %cst_20 = arith.constant dense<0.000000e+00> : vector<8xf32>
      %29 = vector.multi_reduction <add>, %28, %cst_20 [1] : vector<8x10xf32> to vector<8xf32>
      %30 = vector.shape_cast %29 : vector<8xf32> to vector<8x1xf32>
      %31 = tpu.reciprocal %30 {approx = true} : vector<8x1xf32> -> vector<8x1xf32>
      %32 = vector.broadcast %31 : vector<8x1xf32> to vector<8x10xf32>
      %33 = arith.mulf %28, %32 : vector<8x10xf32>
      %c0_21 = arith.constant 0 : index
      %c0_22 = arith.constant 0 : index
      %34 = vector.load %arg6[%c0_21, %c0_22] : memref<8x10xf32, #tpu.memory_space<vmem>>, vector<8x10xf32>
      tpu.vector_store %arg6[%c0_21, %c0_22], %33 {strides = array<i32>} : memref<8x10xf32, #tpu.memory_space<vmem>>, vector<8x10xf32>,
    } else {
    }
    return
  }
  func.func @transform_0(%arg0: i32) -> (i32, i32) {
    %c0_i32 = arith.constant 0 : i32
    %c0_i32_0 = arith.constant 0 : i32
    return %c0_i32, %arg0 : i32, i32
  }
  func.func @transform_1(%arg0: i32) -> (i32, i32) {
    %c0_i32 = arith.constant 0 : i32
    %c0_i32_0 = arith.constant 0 : i32
    return %arg0, %c0_i32 : i32, i32
  }
  func.func @transform_2(%arg0: i32) -> (i32, i32) {
    %c0_i32 = arith.constant 0 : i32
    %c0_i32_0 = arith.constant 0 : i32
    %c0_i32_1 = arith.constant 0 : i32
    return %c0_i32, %c0_i32_0 : i32, i32
  }
  func.func @transform_3(%arg0: i32) -> (i32, i32) {
    %c0_i32 = arith.constant 0 : i32
    %c0_i32_0 = arith.constant 0 : i32
    %c0_i32_1 = arith.constant 0 : i32
    return %c0_i32, %c0_i32_0 : i32, i32
  }
  func.func @transform_4(%arg0: i32) -> (i32, i32) {
    %c0_i32 = arith.constant 0 : i32
    %c0_i32_0 = arith.constant 0 : i32
    %c0_i32_1 = arith.constant 0 : i32
    return %c0_i32, %c0_i32_0 : i32, i32
  }
  func.func @transform_5(%arg0: i32) -> (i32, i32) {
    %c0_i32 = arith.constant 0 : i32
    %c0_i32_0 = arith.constant 0 : i32
    %c0_i32_1 = arith.constant 0 : i32
    return %c0_i32, %c0_i32_0 : i32, i32
  }
}

</mosaic_0001>

<bundles_post_ra>
// kernel: cnn_mnist_forward.3
= control target key start
LH: loop header
LB: loop body
LE: loop exit
PB: predicated region body
PF: predicated region fallthrough
CT: control target
= control target key end

     0   :  { %s1631_s12 = smov 0   ;;  %s1926_s0 = inlined_call_operand.vmem [shape: bf16[2048,32], index: 0, kind: input, shape index: {}]   ;;  %s1927_s1 = inlined_call_operand.vmem [shape: bf16[32,64], index: 1, kind: input, shape index: {}]   ;;  %s1928_s2 = inlined_call_operand.vmem [shape: f32[1,64], index: 2, kind: input, shape index: {}]   ;;  %s1929_s3 = inlined_call_operand.vmem [shape: bf16[2048,64], index: 3, kind: output, shape index: {}]  }
   0x1 LB: > { %s1249_s13 = sadd.s32 4294967295, %s1609_s12   ;;  %p1253_p0 = scmp.ge.s32.totalorder %s1609_s12, 1  ;;  %s1609_s12 = sphi %s1631_s12, %s13_s12  }
   0x2   : > { %p138_p1 = scmp.lt.s32.totalorder %s1609_s12, 5 }
   0x4   : > { %p139_p2 = pnand %p1253_p0, %p138_p1 }
   0x5   : > { %v1569_v0 = vld [vmem:[%s1927_s1] sm:$0xff] (!%p139_p2)   ;;  %s1254_s16 = sshll.u32 (!%p139_p2), %s1249_s13, 6  ;;  %v1570_v1 = vld [vmem:[%s1927_s1 + $0x8] sm:$0xff] (!%p139_p2)   ;;  %vm422_vm0 = vcmask (!%p139_p2), 261120   ;;  %vm1128_vm1 = vcmask (!%p139_p2), 519168  }
   0x6   : > { %142 = sbr.rel (%p139_p2) target bundleno = 297 (0x129), region = 32  ;;  %p163_p3 = scmp.lt.s32.totalorder (!%p139_p2), %s1254_s16, 255  ;;  %1489 = vmatprep.subr.bf16.mxu0 (!%p139_p2), %v1569_v0  ;;  %1557 = vmatprep.subr.bf16.mxu1 (!%p139_p2), %v1569_v0  ;;  %v1722_v34 = vld [vmem:[%s1928_s2] ss:$0 sm:$0xff] (!%p139_p2) }
   0x7   : > { %1490 = vmatpush3.bf16.msra.mxu0 (!%p139_p2), %v1569_v0  ;;  %1559 = vmatpush3.bf16.msra.mxu1 (!%p139_p2), %v1569_v0 }
   0x8   : > { %1491 = vmatprep.subr.bf16.mxu0 (!%p139_p2), %v1570_v1  ;;  %1558 = vmatprep.subr.bf16.mxu1 (!%p139_p2), %v1570_v1 }
   0xb   : > { %1492 = vmatpush3.bf16.msra.mxu0 (!%p139_p2), %v1570_v1  ;;  %1560 = vmatpush3.bf16.msra.mxu1 (!%p139_p2), %v1570_v1 }
   0xd   : > { %s1931_s16 = smov (!%p163_p3, %s1254_s16), 255 }
   0xe   : > { %s1255_s19 = sshll.u32 %s1931_s16, 2 }
   0xf   : > { %s1653_s22 = scalar_lea.vmem %s1926_s0, %s1255_s19  ;;  %s1734_s27 = scalar_lea.vmem %s1929_s3, %s1255_s19 }
  0x10   : > { %v1571_v2 = vld [vmem:[%s1653_s22] sm:$0xff]   ;;  %v1573_v4 = vld [vmem:[%s1653_s22 + $0x8] sm:$0xff]   ;;  %v1575_v6 = vld [vmem:[%s1653_s22 + $0x10] sm:$0xff]  }
  0x11   : > { %v1572_v3 = vld [vmem:[%s1653_s22 + $0x80] sm:$0xff]   ;;  %1493 = vmatprep.mubr.msk.bf16.mxu0 %vm422_vm0, %v1571_v2  ;;  %v1574_v5 = vld [vmem:[%s1653_s22 + $0x88] sm:$0xff]   ;;  %v1576_v7 = vld [vmem:[%s1653_s22 + $0x90] sm:$0xff]  }
  0x12   : > { %1525 = vmatprep.mubr.msk.bf16.mxu1 %vm422_vm0, %v1572_v3  ;;  %1494 = vmatmul.mubr.msk.bf16.vlgmr.msra.gmra.mrb[0].mxu0 %vm422_vm0, %v1573_v4  ;;  %v1577_v8 = vld [vmem:[%s1653_s22 + $0x18] sm:$0xff]   ;;  %v1579_v10 = vld [vmem:[%s1653_s22 + $0x20] sm:$0xff]   ;;  %v1581_v12 = vld [vmem:[%s1653_s22 + $0x28] sm:$0xff]  }
  0x13   : > { %1526 = vmatmul.mubr.msk.bf16.vlgmr.msra.gmra.mrb[0].mxu1 %vm422_vm0, %v1574_v5  ;;  %1497 = vmatprep.mubr.msk.bf16.mxu0 %vm422_vm0, %v1575_v6  ;;  %v1578_v9 = vld [vmem:[%s1653_s22 + $0x98] sm:$0xff]   ;;  %v1580_v11 = vld [vmem:[%s1653_s22 + $0xa0] sm:$0xff]   ;;  %v1582_v13 = vld [vmem:[%s1653_s22 + $0xa8] sm:$0xff]  }
  0x14   : > { %1529 = vmatprep.mubr.msk.bf16.mxu1 %vm422_vm0, %v1576_v7  ;;  %v1583_v14 = vld [vmem:[%s1653_s22 + $0x30] sm:$0xff]   ;;  %v1585_v16 = vld [vmem:[%s1653_s22 + $0x38] sm:$0xff]   ;;  %v1587_v18 = vld [vmem:[%s1653_s22 + $0x40] sm:$0xff]  }
  0x15   : > { %v1584_v15 = vld [vmem:[%s1653_s22 + $0xb0] sm:$0xff]   ;;  %v1586_v17 = vld [vmem:[%s1653_s22 + $0xb8] sm:$0xff]   ;;  %v1588_v19 = vld [vmem:[%s1653_s22 + $0xc0] sm:$0xff]  }
  0x16   : > { %v1589_v20 = vld [vmem:[%s1653_s22 + $0x48] sm:$0xff]   ;;  %v1591_v22 = vld [vmem:[%s1653_s22 + $0x50] sm:$0xff]   ;;  %v1593_v24 = vld [vmem:[%s1653_s22 + $0x58] sm:$0xff]  }
  0x17   : > { %v1590_v21 = vld [vmem:[%s1653_s22 + $0xc8] sm:$0xff]   ;;  %v1592_v23 = vld [vmem:[%s1653_s22 + $0xd0] sm:$0xff]   ;;  %v1594_v25 = vld [vmem:[%s1653_s22 + $0xd8] sm:$0xff]  }
  0x18   : > { %v1595_v26 = vld [vmem:[%s1653_s22 + $0x60] sm:$0xff]   ;;  %v1597_v28 = vld [vmem:[%s1653_s22 + $0x68] sm:$0xff]   ;;  %v1599_v30 = vld [vmem:[%s1653_s22 + $0x70] sm:$0xff]  }
  0x19   : > { %v1596_v27 = vld [vmem:[%s1653_s22 + $0xe0] sm:$0xff]   ;;  %v1598_v29 = vld [vmem:[%s1653_s22 + $0xe8] sm:$0xff]   ;;  %v1600_v31 = vld [vmem:[%s1653_s22 + $0xf0] sm:$0xff]  }
  0x1a   : > { %1498 = vmatmul.mubr.msk.bf16.gmra.mrb[4].mxu0 %vm422_vm0, %v1577_v8  ;;  %v1601_v32 = vld [vmem:[%s1653_s22 + $0x78] sm:$0xff]  }
  0x1b   : > { %1530 = vmatmul.mubr.msk.bf16.gmra.mrb[4].mxu1 %vm422_vm0, %v1578_v9  ;;  %1501 = vmatprep.mubr.msk.bf16.mxu0 %vm422_vm0, %v1579_v10  ;;  %v1602_v33 = vld [vmem:[%s1653_s22 + $0xf8] sm:$0xff]  }
  0x1c   : > { %1533 = vmatprep.mubr.msk.bf16.mxu1 %vm422_vm0, %v1580_v11 }
  0x22   : > { %1502 = vmatmul.mubr.msk.bf16.gmra.mrb[8].mxu0 %vm422_vm0, %v1581_v12 }
  0x23   : > { %1534 = vmatmul.mubr.msk.bf16.gmra.mrb[8].mxu1 %vm422_vm0, %v1582_v13  ;;  %1505 = vmatprep.mubr.msk.bf16.mxu0 %vm422_vm0, %v1583_v14 }
  0x24   : > { %1537 = vmatprep.mubr.msk.bf16.mxu1 %vm422_vm0, %v1584_v15 }
  0x2a   : > { %1506 = vmatmul.mubr.msk.bf16.gmra.mrb[12].mxu0 %vm422_vm0, %v1585_v16 }
  0x2b   : > { %1538 = vmatmul.mubr.msk.bf16.gmra.mrb[12].mxu1 %vm422_vm0, %v1586_v17  ;;  %1509 = vmatprep.mubr.msk.bf16.mxu0 %vm422_vm0, %v1587_v18 }
  0x2c   : > { %1541 = vmatprep.mubr.msk.bf16.mxu1 %vm422_vm0, %v1588_v19 }
  0x32   : > { %1510 = vmatmul.mubr.msk.bf16.gmra.mrb[16].mxu0 %vm422_vm0, %v1589_v20 }
  0x33   : > { %1542 = vmatmul.mubr.msk.bf16.gmra.mrb[16].mxu1 %vm422_vm0, %v1590_v21  ;;  %1513 = vmatprep.mubr.msk.bf16.mxu0 %vm422_vm0, %v1591_v22 }
  0x34   : > { %1545 = vmatprep.mubr.msk.bf16.mxu1 %vm422_vm0, %v1592_v23 }
  0x3a   : > { %1514 = vmatmul.mubr.msk.bf16.gmra.mrb[20].mxu0 %vm422_vm0, %v1593_v24 }
  0x3b   : > { %1546 = vmatmul.mubr.msk.bf16.gmra.mrb[20].mxu1 %vm422_vm0, %v1594_v25  ;;  %1517 = vmatprep.mubr.msk.bf16.mxu0 %vm422_vm0, %v1595_v26 }
  0x3c   : > { %1549 = vmatprep.mubr.msk.bf16.mxu1 %vm422_vm0, %v1596_v27 }
  0x42   : > { %1518 = vmatmul.mubr.msk.bf16.gmra.mrb[24].mxu0 %vm422_vm0, %v1597_v28 }
  0x43   : > { %1550 = vmatmul.mubr.msk.bf16.gmra.mrb[24].mxu1 %vm422_vm0, %v1598_v29  ;;  %1521 = vmatprep.mubr.msk.bf16.mxu0 %vm422_vm0, %v1599_v30 }
  0x44   : > { %1553 = vmatprep.mubr.msk.bf16.mxu1 %vm422_vm0, %v1600_v31 }
  0x4a   : > { %1522 = vmatmul.mubr.msk.bf16.gmra.mrb[28].mxu0 %vm422_vm0, %v1601_v32 }
  0x4b   : > { %1554 = vmatmul.mubr.msk.bf16.gmra.mrb[28].mxu1 %vm422_vm0, %v1602_v33 }
  0xe5   : > { %v1495_v35 = vpop.f32.mrb[0].mxu0 }
  0xe6   : > { %v562_v36 = vadd.f32 %v1495_v35, %v1722_v34  ;;  %v1527_v37 = vpop.f32.mrb[0].mxu1  ;;  %v553_v38 = vpop.f32.mrb[1].mxu0 }
  0xe7   : > { %v690_v39 = vadd.f32 %v1527_v37, %v1722_v34  ;;  %v554_v40 = vadd.f32 %v1722_v34, %v553_v38  ;;  %v681_v41 = vpop.f32.mrb[1].mxu1  ;;  %v1496_v42 = vpop.f32.mrb[2].mxu0 }
  0xe8   : > { %v810_v43 = vmax.f32 %v562_v36, 0.0  ;;  %v682_v44 = vadd.f32 %v1722_v34, %v681_v41  ;;  %v565_v45 = vadd.f32 %v1496_v42, %v1722_v34  ;;  %v1528_v46 = vpop.f32.mrb[2].mxu1  ;;  %v556_v47 = vpop.f32.mrb[3].mxu0 }
  0xe9   : > { %v842_v48 = vmax.f32 %v690_v39, 0.0  ;;  %v808_v49 = vmax.f32 %v554_v40, 0.0  ;;  %v693_v50 = vadd.f32 %v1528_v46, %v1722_v34  ;;  %v557_v51 = vadd.f32 %v1722_v34, %v556_v47  ;;  %v684_v52 = vpop.f32.mrb[3].mxu1 }
  0xea   : > { %v1393_v53 = vpack.c.bf16 %v810_v43, %v810_v43  ;;  %v840_v54 = vmax.f32 %v682_v44, 0.0  ;;  %v811_v55 = vmax.f32 %v565_v45, 0.0  ;;  %v685_v56 = vadd.f32 %v1722_v34, %v684_v52 }
  0xeb   : > { %v1425_v57 = vpack.c.bf16 %v842_v48, %v842_v48  ;;  %v1391_v58 = vpack.c.bf16 %v808_v49, %v808_v49  ;;  %v843_v59 = vmax.f32 %v693_v50, 0.0  ;;  %v809_v60 = vmax.f32 %v557_v51, 0.0 }
  0xec   : > { %1131 = vst.msk [vmem:[%s1734_s27 + $0x8] sm:$0xf] %vm1128_vm1, %v1393_v53  ;;  %v1423_v61 = vpack.c.bf16 %v840_v54, %v840_v54  ;;  %v1394_v62 = vpack.c.bf16 %v811_v55, %v811_v55  ;;  %v841_v63 = vmax.f32 %v685_v56, 0.0 }
  0xed   : > { %1163 = vst.msk [vmem:[%s1734_s27 + $0x88] sm:$0xf] %vm1128_vm1, %v1425_v57  ;;  %1129 = vst.msk [vmem:[%s1734_s27] sm:$0xf] %vm1128_vm1, %v1391_v58  ;;  %v1426_v0 = vpack.c.bf16 %v843_v59, %v843_v59  ;;  %v1392_v1 = vpack.c.bf16 %v809_v60, %v809_v60  ;;  %v1499_v2 = vpop.f32.mrb[4].mxu0 }
  0xee   : > { %1161 = vst.msk [vmem:[%s1734_s27 + $0x80] sm:$0xf] %vm1128_vm1, %v1423_v61  ;;  %1132 = vst.msk [vmem:[%s1734_s27 + $0xc] sm:$0xf] %vm1128_vm1, %v1394_v62  ;;  %v1424_v3 = vpack.c.bf16 %v841_v63, %v841_v63  ;;  %v578_v4 = vadd.f32 %v1499_v2, %v1722_v34  ;;  %v1531_v5 = vpop.f32.mrb[4].mxu1  ;;  %v569_v6 = vpop.f32.mrb[5].mxu0 }
  0xef   : > { %1164 = vst.msk [vmem:[%s1734_s27 + $0x8c] sm:$0xf] %vm1128_vm1, %v1426_v0  ;;  %1130 = vst.msk [vmem:[%s1734_s27 + $0x4] sm:$0xf] %vm1128_vm1, %v1392_v1  ;;  %v706_v7 = vadd.f32 %v1531_v5, %v1722_v34  ;;  %v570_v8 = vadd.f32 %v1722_v34, %v569_v6  ;;  %v697_v9 = vpop.f32.mrb[5].mxu1  ;;  %v1500_v10 = vpop.f32.mrb[6].mxu0 }
  0xf0   : > { %1162 = vst.msk [vmem:[%s1734_s27 + $0x84] sm:$0xf] %vm1128_vm1, %v1424_v3  ;;  %v814_v11 = vmax.f32 %v578_v4, 0.0  ;;  %v698_v12 = vadd.f32 %v1722_v34, %v697_v9  ;;  %v581_v13 = vadd.f32 %v1500_v10, %v1722_v34  ;;  %v1532_v14 = vpop.f32.mrb[6].mxu1  ;;  %v572_v15 = vpop.f32.mrb[7].mxu0 }
  0xf1   : > { %v846_v16 = vmax.f32 %v706_v7, 0.0  ;;  %v812_v17 = vmax.f32 %v570_v8, 0.0  ;;  %v709_v18 = vadd.f32 %v1532_v14, %v1722_v34  ;;  %v573_v19 = vadd.f32 %v1722_v34, %v572_v15  ;;  %v700_v20 = vpop.f32.mrb[7].mxu1 }
  0xf2   : > { %v1397_v21 = vpack.c.bf16 %v814_v11, %v814_v11  ;;  %v844_v22 = vmax.f32 %v698_v12, 0.0  ;;  %v815_v23 = vmax.f32 %v581_v13, 0.0  ;;  %v701_v24 = vadd.f32 %v1722_v34, %v700_v20 }
  0xf3   : > { %v1429_v25 = vpack.c.bf16 %v846_v16, %v846_v16  ;;  %v1395_v26 = vpack.c.bf16 %v812_v17, %v812_v17  ;;  %v847_v27 = vmax.f32 %v709_v18, 0.0  ;;  %v813_v28 = vmax.f32 %v573_v19, 0.0 }
  0xf4   : > { %1135 = vst.msk [vmem:[%s1734_s27 + $0x18] sm:$0xf] %vm1128_vm1, %v1397_v21  ;;  %v1427_v29 = vpack.c.bf16 %v844_v22, %v844_v22  ;;  %v1398_v30 = vpack.c.bf16 %v815_v23, %v815_v23  ;;  %v845_v31 = vmax.f32 %v701_v24, 0.0 }
  0xf5   : > { %1167 = vst.msk [vmem:[%s1734_s27 + $0x98] sm:$0xf] %vm1128_vm1, %v1429_v25  ;;  %1133 = vst.msk [vmem:[%s1734_s27 + $0x10] sm:$0xf] %vm1128_vm1, %v1395_v26  ;;  %v1430_v32 = vpack.c.bf16 %v847_v27, %v847_v27  ;;  %v1396_v33 = vpack.c.bf16 %v813_v28, %v813_v28  ;;  %v1503_v35 = vpop.f32.mrb[8].mxu0 }
  0xf6   : > { %1165 = vst.msk [vmem:[%s1734_s27 + $0x90] sm:$0xf] %vm1128_vm1, %v1427_v29  ;;  %1136 = vst.msk [vmem:[%s1734_s27 + $0x1c] sm:$0xf] %vm1128_vm1, %v1398_v30  ;;  %v1428_v36 = vpack.c.bf16 %v845_v31, %v845_v31  ;;  %v594_v37 = vadd.f32 %v1503_v35, %v1722_v34  ;;  %v1535_v38 = vpop.f32.mrb[8].mxu1  ;;  %v585_v39 = vpop.f32.mrb[9].mxu0 }
  0xf7   : > { %1168 = vst.msk [vmem:[%s1734_s27 + $0x9c] sm:$0xf] %vm1128_vm1, %v1430_v32  ;;  %1134 = vst.msk [vmem:[%s1734_s27 + $0x14] sm:$0xf] %vm1128_vm1, %v1396_v33  ;;  %v722_v40 = vadd.f32 %v1535_v38, %v1722_v34  ;;  %v586_v41 = vadd.f32 %v1722_v34, %v585_v39  ;;  %v713_v42 = vpop.f32.mrb[9].mxu1  ;;  %v1504_v43 = vpop.f32.mrb[10].mxu0 }
  0xf8   : > { %1166 = vst.msk [vmem:[%s1734_s27 + $0x94] sm:$0xf] %vm1128_vm1, %v1428_v36  ;;  %v818_v44 = vmax.f32 %v594_v37, 0.0  ;;  %v714_v45 = vadd.f32 %v1722_v34, %v713_v42  ;;  %v597_v46 = vadd.f32 %v1504_v43, %v1722_v34  ;;  %v1536_v47 = vpop.f32.mrb[10].mxu1  ;;  %v588_v48 = vpop.f32.mrb[11].mxu0 }
  0xf9   : > { %v850_v49 = vmax.f32 %v722_v40, 0.0  ;;  %v816_v50 = vmax.f32 %v586_v41, 0.0  ;;  %v725_v51 = vadd.f32 %v1536_v47, %v1722_v34  ;;  %v589_v52 = vadd.f32 %v1722_v34, %v588_v48  ;;  %v716_v53 = vpop.f32.mrb[11].mxu1 }
  0xfa   : > { %v1401_v54 = vpack.c.bf16 %v818_v44, %v818_v44  ;;  %v848_v55 = vmax.f32 %v714_v45, 0.0  ;;  %v819_v56 = vmax.f32 %v597_v46, 0.0  ;;  %v717_v57 = vadd.f32 %v1722_v34, %v716_v53 }
  0xfb   : > { %v1433_v58 = vpack.c.bf16 %v850_v49, %v850_v49  ;;  %v1399_v59 = vpack.c.bf16 %v816_v50, %v816_v50  ;;  %v851_v60 = vmax.f32 %v725_v51, 0.0  ;;  %v817_v61 = vmax.f32 %v589_v52, 0.0 }
  0xfc   : > { %1139 = vst.msk [vmem:[%s1734_s27 + $0x28] sm:$0xf] %vm1128_vm1, %v1401_v54  ;;  %v1431_v62 = vpack.c.bf16 %v848_v55, %v848_v55  ;;  %v1402_v63 = vpack.c.bf16 %v819_v56, %v819_v56  ;;  %v849_v0 = vmax.f32 %v717_v57, 0.0 }
  0xfd   : > { %1171 = vst.msk [vmem:[%s1734_s27 + $0xa8] sm:$0xf] %vm1128_vm1, %v1433_v58  ;;  %1137 = vst.msk [vmem:[%s1734_s27 + $0x20] sm:$0xf] %vm1128_vm1, %v1399_v59  ;;  %v1434_v1 = vpack.c.bf16 %v851_v60, %v851_v60  ;;  %v1400_v2 = vpack.c.bf16 %v817_v61, %v817_v61  ;;  %v1507_v3 = vpop.f32.mrb[12].mxu0 }
  0xfe   : > { %1169 = vst.msk [vmem:[%s1734_s27 + $0xa0] sm:$0xf] %vm1128_vm1, %v1431_v62  ;;  %1140 = vst.msk [vmem:[%s1734_s27 + $0x2c] sm:$0xf] %vm1128_vm1, %v1402_v63  ;;  %v1432_v4 = vpack.c.bf16 %v849_v0, %v849_v0  ;;  %v610_v5 = vadd.f32 %v1507_v3, %v1722_v34  ;;  %v1539_v6 = vpop.f32.mrb[12].mxu1  ;;  %v601_v7 = vpop.f32.mrb[13].mxu0 }
  0xff   : > { %1172 = vst.msk [vmem:[%s1734_s27 + $0xac] sm:$0xf] %vm1128_vm1, %v1434_v1  ;;  %1138 = vst.msk [vmem:[%s1734_s27 + $0x24] sm:$0xf] %vm1128_vm1, %v1400_v2  ;;  %v738_v8 = vadd.f32 %v1539_v6, %v1722_v34  ;;  %v602_v9 = vadd.f32 %v1722_v34, %v601_v7  ;;  %v729_v10 = vpop.f32.mrb[13].mxu1  ;;  %v1508_v11 = vpop.f32.mrb[14].mxu0 }
 0x100   : > { %1170 = vst.msk [vmem:[%s1734_s27 + $0xa4] sm:$0xf] %vm1128_vm1, %v1432_v4  ;;  %v822_v12 = vmax.f32 %v610_v5, 0.0  ;;  %v730_v13 = vadd.f32 %v1722_v34, %v729_v10  ;;  %v613_v14 = vadd.f32 %v1508_v11, %v1722_v34  ;;  %v1540_v15 = vpop.f32.mrb[14].mxu1  ;;  %v604_v16 = vpop.f32.mrb[15].mxu0 }
 0x101   : > { %v854_v17 = vmax.f32 %v738_v8, 0.0  ;;  %v820_v18 = vmax.f32 %v602_v9, 0.0  ;;  %v741_v19 = vadd.f32 %v1540_v15, %v1722_v34  ;;  %v605_v20 = vadd.f32 %v1722_v34, %v604_v16  ;;  %v732_v21 = vpop.f32.mrb[15].mxu1 }
 0x102   : > { %v1405_v22 = vpack.c.bf16 %v822_v12, %v822_v12  ;;  %v852_v23 = vmax.f32 %v730_v13, 0.0  ;;  %v823_v24 = vmax.f32 %v613_v14, 0.0  ;;  %v733_v25 = vadd.f32 %v1722_v34, %v732_v21 }
 0x103   : > { %v1437_v26 = vpack.c.bf16 %v854_v17, %v854_v17  ;;  %v1403_v27 = vpack.c.bf16 %v820_v18, %v820_v18  ;;  %v855_v28 = vmax.f32 %v741_v19, 0.0  ;;  %v821_v29 = vmax.f32 %v605_v20, 0.0 }
 0x104   : > { %1143 = vst.msk [vmem:[%s1734_s27 + $0x38] sm:$0xf] %vm1128_vm1, %v1405_v22  ;;  %v1435_v30 = vpack.c.bf16 %v852_v23, %v852_v23  ;;  %v1406_v31 = vpack.c.bf16 %v823_v24, %v823_v24  ;;  %v853_v32 = vmax.f32 %v733_v25, 0.0 }
 0x105   : > { %1175 = vst.msk [vmem:[%s1734_s27 + $0xb8] sm:$0xf] %vm1128_vm1, %v1437_v26  ;;  %1141 = vst.msk [vmem:[%s1734_s27 + $0x30] sm:$0xf] %vm1128_vm1, %v1403_v27  ;;  %v1438_v33 = vpack.c.bf16 %v855_v28, %v855_v28  ;;  %v1404_v35 = vpack.c.bf16 %v821_v29, %v821_v29  ;;  %v1511_v36 = vpop.f32.mrb[16].mxu0 }
 0x106   : > { %1173 = vst.msk [vmem:[%s1734_s27 + $0xb0] sm:$0xf] %vm1128_vm1, %v1435_v30  ;;  %1144 = vst.msk [vmem:[%s1734_s27 + $0x3c] sm:$0xf] %vm1128_vm1, %v1406_v31  ;;  %v1436_v37 = vpack.c.bf16 %v853_v32, %v853_v32  ;;  %v626_v38 = vadd.f32 %v1511_v36, %v1722_v34  ;;  %v1543_v39 = vpop.f32.mrb[16].mxu1  ;;  %v617_v40 = vpop.f32.mrb[17].mxu0 }
 0x107   : > { %1176 = vst.msk [vmem:[%s1734_s27 + $0xbc] sm:$0xf] %vm1128_vm1, %v1438_v33  ;;  %1142 = vst.msk [vmem:[%s1734_s27 + $0x34] sm:$0xf] %vm1128_vm1, %v1404_v35  ;;  %v754_v41 = vadd.f32 %v1543_v39, %v1722_v34  ;;  %v618_v42 = vadd.f32 %v1722_v34, %v617_v40  ;;  %v745_v43 = vpop.f32.mrb[17].mxu1  ;;  %v1512_v44 = vpop.f32.mrb[18].mxu0 }
 0x108   : > { %1174 = vst.msk [vmem:[%s1734_s27 + $0xb4] sm:$0xf] %vm1128_vm1, %v1436_v37  ;;  %v826_v45 = vmax.f32 %v626_v38, 0.0  ;;  %v746_v46 = vadd.f32 %v1722_v34, %v745_v43  ;;  %v629_v47 = vadd.f32 %v1512_v44, %v1722_v34  ;;  %v1544_v48 = vpop.f32.mrb[18].mxu1  ;;  %v620_v49 = vpop.f32.mrb[19].mxu0 }
 0x109   : > { %v858_v50 = vmax.f32 %v754_v41, 0.0  ;;  %v824_v51 = vmax.f32 %v618_v42, 0.0  ;;  %v757_v52 = vadd.f32 %v1544_v48, %v1722_v34  ;;  %v621_v53 = vadd.f32 %v1722_v34, %v620_v49  ;;  %v748_v54 = vpop.f32.mrb[19].mxu1 }
 0x10a   : > { %v1409_v55 = vpack.c.bf16 %v826_v45, %v826_v45  ;;  %v856_v56 = vmax.f32 %v746_v46, 0.0  ;;  %v827_v57 = vmax.f32 %v629_v47, 0.0  ;;  %v749_v58 = vadd.f32 %v1722_v34, %v748_v54 }
 0x10b   : > { %v1441_v59 = vpack.c.bf16 %v858_v50, %v858_v50  ;;  %v1407_v60 = vpack.c.bf16 %v824_v51, %v824_v51  ;;  %v859_v61 = vmax.f32 %v757_v52, 0.0  ;;  %v825_v62 = vmax.f32 %v621_v53, 0.0 }
 0x10c   : > { %1147 = vst.msk [vmem:[%s1734_s27 + $0x48] sm:$0xf] %vm1128_vm1, %v1409_v55  ;;  %v1439_v63 = vpack.c.bf16 %v856_v56, %v856_v56  ;;  %v1410_v0 = vpack.c.bf16 %v827_v57, %v827_v57  ;;  %v857_v1 = vmax.f32 %v749_v58, 0.0 }
 0x10d   : > { %1179 = vst.msk [vmem:[%s1734_s27 + $0xc8] sm:$0xf] %vm1128_vm1, %v1441_v59  ;;  %1145 = vst.msk [vmem:[%s1734_s27 + $0x40] sm:$0xf] %vm1128_vm1, %v1407_v60  ;;  %v1442_v2 = vpack.c.bf16 %v859_v61, %v859_v61  ;;  %v1408_v3 = vpack.c.bf16 %v825_v62, %v825_v62  ;;  %v1515_v4 = vpop.f32.mrb[20].mxu0 }
 0x10e   : > { %1177 = vst.msk [vmem:[%s1734_s27 + $0xc0] sm:$0xf] %vm1128_vm1, %v1439_v63  ;;  %1148 = vst.msk [vmem:[%s1734_s27 + $0x4c] sm:$0xf] %vm1128_vm1, %v1410_v0  ;;  %v1440_v5 = vpack.c.bf16 %v857_v1, %v857_v1  ;;  %v642_v6 = vadd.f32 %v1515_v4, %v1722_v34  ;;  %v1547_v7 = vpop.f32.mrb[20].mxu1  ;;  %v633_v8 = vpop.f32.mrb[21].mxu0 }
 0x10f   : > { %1180 = vst.msk [vmem:[%s1734_s27 + $0xcc] sm:$0xf] %vm1128_vm1, %v1442_v2  ;;  %1146 = vst.msk [vmem:[%s1734_s27 + $0x44] sm:$0xf] %vm1128_vm1, %v1408_v3  ;;  %v770_v9 = vadd.f32 %v1547_v7, %v1722_v34  ;;  %v634_v10 = vadd.f32 %v1722_v34, %v633_v8  ;;  %v761_v11 = vpop.f32.mrb[21].mxu1  ;;  %v1516_v12 = vpop.f32.mrb[22].mxu0 }
 0x110   : > { %1178 = vst.msk [vmem:[%s1734_s27 + $0xc4] sm:$0xf] %vm1128_vm1, %v1440_v5  ;;  %v830_v13 = vmax.f32 %v642_v6, 0.0  ;;  %v762_v14 = vadd.f32 %v1722_v34, %v761_v11  ;;  %v645_v15 = vadd.f32 %v1516_v12, %v1722_v34  ;;  %v1548_v16 = vpop.f32.mrb[22].mxu1  ;;  %v636_v17 = vpop.f32.mrb[23].mxu0 }
 0x111   : > { %v862_v18 = vmax.f32 %v770_v9, 0.0  ;;  %v828_v19 = vmax.f32 %v634_v10, 0.0  ;;  %v773_v20 = vadd.f32 %v1548_v16, %v1722_v34  ;;  %v637_v21 = vadd.f32 %v1722_v34, %v636_v17  ;;  %v764_v22 = vpop.f32.mrb[23].mxu1 }
 0x112   : > { %v1413_v23 = vpack.c.bf16 %v830_v13, %v830_v13  ;;  %v860_v24 = vmax.f32 %v762_v14, 0.0  ;;  %v831_v25 = vmax.f32 %v645_v15, 0.0  ;;  %v765_v26 = vadd.f32 %v1722_v34, %v764_v22 }
 0x113   : > { %v1445_v27 = vpack.c.bf16 %v862_v18, %v862_v18  ;;  %v1411_v28 = vpack.c.bf16 %v828_v19, %v828_v19  ;;  %v863_v29 = vmax.f32 %v773_v20, 0.0  ;;  %v829_v30 = vmax.f32 %v637_v21, 0.0 }
 0x114   : > { %1151 = vst.msk [vmem:[%s1734_s27 + $0x58] sm:$0xf] %vm1128_vm1, %v1413_v23  ;;  %v1443_v31 = vpack.c.bf16 %v860_v24, %v860_v24  ;;  %v1414_v32 = vpack.c.bf16 %v831_v25, %v831_v25  ;;  %v861_v33 = vmax.f32 %v765_v26, 0.0 }
 0x115   : > { %1183 = vst.msk [vmem:[%s1734_s27 + $0xd8] sm:$0xf] %vm1128_vm1, %v1445_v27  ;;  %1149 = vst.msk [vmem:[%s1734_s27 + $0x50] sm:$0xf] %vm1128_vm1, %v1411_v28  ;;  %v1446_v35 = vpack.c.bf16 %v863_v29, %v863_v29  ;;  %v1412_v36 = vpack.c.bf16 %v829_v30, %v829_v30  ;;  %v1519_v37 = vpop.f32.mrb[24].mxu0 }
 0x116   : > { %1181 = vst.msk [vmem:[%s1734_s27 + $0xd0] sm:$0xf] %vm1128_vm1, %v1443_v31  ;;  %1152 = vst.msk [vmem:[%s1734_s27 + $0x5c] sm:$0xf] %vm1128_vm1, %v1414_v32  ;;  %v1444_v38 = vpack.c.bf16 %v861_v33, %v861_v33  ;;  %v658_v39 = vadd.f32 %v1519_v37, %v1722_v34  ;;  %v1551_v40 = vpop.f32.mrb[24].mxu1  ;;  %v649_v41 = vpop.f32.mrb[25].mxu0 }
 0x117   : > { %1184 = vst.msk [vmem:[%s1734_s27 + $0xdc] sm:$0xf] %vm1128_vm1, %v1446_v35  ;;  %1150 = vst.msk [vmem:[%s1734_s27 + $0x54] sm:$0xf] %vm1128_vm1, %v1412_v36  ;;  %v786_v42 = vadd.f32 %v1551_v40, %v1722_v34  ;;  %v650_v43 = vadd.f32 %v1722_v34, %v649_v41  ;;  %v777_v44 = vpop.f32.mrb[25].mxu1  ;;  %v1520_v45 = vpop.f32.mrb[26].mxu0 }
 0x118   : > { %1182 = vst.msk [vmem:[%s1734_s27 + $0xd4] sm:$0xf] %vm1128_vm1, %v1444_v38  ;;  %v834_v46 = vmax.f32 %v658_v39, 0.0  ;;  %v778_v47 = vadd.f32 %v1722_v34, %v777_v44  ;;  %v661_v48 = vadd.f32 %v1520_v45, %v1722_v34  ;;  %v1552_v49 = vpop.f32.mrb[26].mxu1  ;;  %v652_v50 = vpop.f32.mrb[27].mxu0 }
 0x119   : > { %v866_v51 = vmax.f32 %v786_v42, 0.0  ;;  %v832_v52 = vmax.f32 %v650_v43, 0.0  ;;  %v789_v53 = vadd.f32 %v1552_v49, %v1722_v34  ;;  %v653_v54 = vadd.f32 %v1722_v34, %v652_v50  ;;  %v780_v55 = vpop.f32.mrb[27].mxu1 }
 0x11a   : > { %v1417_v56 = vpack.c.bf16 %v834_v46, %v834_v46  ;;  %v864_v57 = vmax.f32 %v778_v47, 0.0  ;;  %v835_v58 = vmax.f32 %v661_v48, 0.0  ;;  %v781_v59 = vadd.f32 %v1722_v34, %v780_v55 }
 0x11b   : > { %v1449_v60 = vpack.c.bf16 %v866_v51, %v866_v51  ;;  %v1415_v61 = vpack.c.bf16 %v832_v52, %v832_v52  ;;  %v867_v62 = vmax.f32 %v789_v53, 0.0  ;;  %v833_v63 = vmax.f32 %v653_v54, 0.0 }
 0x11c   : > { %1155 = vst.msk [vmem:[%s1734_s27 + $0x68] sm:$0xf] %vm1128_vm1, %v1417_v56  ;;  %v1447_v0 = vpack.c.bf16 %v864_v57, %v864_v57  ;;  %v1418_v1 = vpack.c.bf16 %v835_v58, %v835_v58  ;;  %v865_v2 = vmax.f32 %v781_v59, 0.0 }
 0x11d   : > { %1187 = vst.msk [vmem:[%s1734_s27 + $0xe8] sm:$0xf] %vm1128_vm1, %v1449_v60  ;;  %1153 = vst.msk [vmem:[%s1734_s27 + $0x60] sm:$0xf] %vm1128_vm1, %v1415_v61  ;;  %v1450_v3 = vpack.c.bf16 %v867_v62, %v867_v62  ;;  %v1416_v4 = vpack.c.bf16 %v833_v63, %v833_v63  ;;  %v1523_v5 = vpop.f32.mrb[28].mxu0 }
 0x11e   : > { %1185 = vst.msk [vmem:[%s1734_s27 + $0xe0] sm:$0xf] %vm1128_vm1, %v1447_v0  ;;  %1156 = vst.msk [vmem:[%s1734_s27 + $0x6c] sm:$0xf] %vm1128_vm1, %v1418_v1  ;;  %v1448_v6 = vpack.c.bf16 %v865_v2, %v865_v2  ;;  %v674_v7 = vadd.f32 %v1523_v5, %v1722_v34  ;;  %v1555_v8 = vpop.f32.mrb[28].mxu1  ;;  %v665_v9 = vpop.f32.mrb[29].mxu0 }
 0x11f   : > { %1188 = vst.msk [vmem:[%s1734_s27 + $0xec] sm:$0xf] %vm1128_vm1, %v1450_v3  ;;  %1154 = vst.msk [vmem:[%s1734_s27 + $0x64] sm:$0xf] %vm1128_vm1, %v1416_v4  ;;  %v802_v10 = vadd.f32 %v1555_v8, %v1722_v34  ;;  %v666_v11 = vadd.f32 %v1722_v34, %v665_v9  ;;  %v793_v12 = vpop.f32.mrb[29].mxu1  ;;  %v1524_v13 = vpop.f32.mrb[30].mxu0 }
 0x120   : > { %1186 = vst.msk [vmem:[%s1734_s27 + $0xe4] sm:$0xf] %vm1128_vm1, %v1448_v6  ;;  %v838_v14 = vmax.f32 %v674_v7, 0.0  ;;  %v794_v15 = vadd.f32 %v1722_v34, %v793_v12  ;;  %v677_v16 = vadd.f32 %v1524_v13, %v1722_v34  ;;  %v1556_v17 = vpop.f32.mrb[30].mxu1  ;;  %v668_v18 = vpop.f32.mrb[31].mxu0 }
 0x121   : > { %v870_v19 = vmax.f32 %v802_v10, 0.0  ;;  %v836_v20 = vmax.f32 %v666_v11, 0.0  ;;  %v805_v21 = vadd.f32 %v1556_v17, %v1722_v34  ;;  %v669_v22 = vadd.f32 %v1722_v34, %v668_v18  ;;  %v796_v23 = vpop.f32.mrb[31].mxu1 }
 0x122   : > { %v1421_v24 = vpack.c.bf16 %v838_v14, %v838_v14  ;;  %v868_v25 = vmax.f32 %v794_v15, 0.0  ;;  %v839_v26 = vmax.f32 %v677_v16, 0.0  ;;  %v797_v27 = vadd.f32 %v1722_v34, %v796_v23 }
 0x123   : > { %v1453_v28 = vpack.c.bf16 %v870_v19, %v870_v19  ;;  %v1419_v29 = vpack.c.bf16 %v836_v20, %v836_v20  ;;  %v871_v30 = vmax.f32 %v805_v21, 0.0  ;;  %v837_v31 = vmax.f32 %v669_v22, 0.0 }
 0x124   : > { %1159 = vst.msk [vmem:[%s1734_s27 + $0x78] sm:$0xf] %vm1128_vm1, %v1421_v24  ;;  %v1451_v32 = vpack.c.bf16 %v868_v25, %v868_v25  ;;  %v1422_v33 = vpack.c.bf16 %v839_v26, %v839_v26  ;;  %v869_v35 = vmax.f32 %v797_v27, 0.0 }
 0x125   : > { %1191 = vst.msk [vmem:[%s1734_s27 + $0xf8] sm:$0xf] %vm1128_vm1, %v1453_v28  ;;  %1157 = vst.msk [vmem:[%s1734_s27 + $0x70] sm:$0xf] %vm1128_vm1, %v1419_v29  ;;  %v1454_v36 = vpack.c.bf16 %v871_v30, %v871_v30  ;;  %v1420_v37 = vpack.c.bf16 %v837_v31, %v837_v31 }
 0x126   : > { %1189 = vst.msk [vmem:[%s1734_s27 + $0xf0] sm:$0xf] %vm1128_vm1, %v1451_v32  ;;  %1160 = vst.msk [vmem:[%s1734_s27 + $0x7c] sm:$0xf] %vm1128_vm1, %v1422_v33  ;;  %v1452_v34 = vpack.c.bf16 %v869_v35, %v869_v35 }
 0x127   : > { %1192 = vst.msk [vmem:[%s1734_s27 + $0xfc] sm:$0xf] %vm1128_vm1, %v1454_v36  ;;  %1158 = vst.msk [vmem:[%s1734_s27 + $0x74] sm:$0xf] %vm1128_vm1, %v1420_v37 }
 0x128   : > { %1190 = vst.msk [vmem:[%s1734_s27 + $0xf4] sm:$0xf] %vm1128_vm1, %v1452_v34 }
 0x129 PF: > { %s13_s12 = sadd.s32 1, %s1609_s12  }
 0x12a   : > { %p10_p4 = scmp.ge.s32.totalorder %s13_s12, 6  }
 0x12c   :  { %12 = sbr.rel (!%p10_p4) target bundleno = 1 (0x1), region = 62 }

// kernel: cnn_mnist_forward.4
= control target key start
LH: loop header
LB: loop body
LE: loop exit
PB: predicated region body
PF: predicated region fallthrough
CT: control target
= control target key end

     0   :  { %v5059_v0 = vmov 0   ;;  %vm2244_vm0 = vcmask 523264   ;;  %vm3718_vm1 = vcmask 519168   ;;  %s6741_s1 = inlined_call_operand.vmem [shape: bf16[1600,64], index: 1, kind: input, shape index: {}]   ;;  %s6742_s0 = inlined_call_operand.vmem [shape: bf16[288,1600], index: 0, kind: input, shape index: {}]   ;;  %s6743_s2 = inlined_call_operand.vmem [shape: f32[1,64], index: 2, kind: input, shape index: {}]   ;;  %s6744_s3 = inlined_call_operand.vmem [shape: bf16[288,64], index: 3, kind: output, shape index: {}]  }
   0x1   :  { %2299 = vmatprep.subr.bf16.mxu1 %v5059_v0  ;;  %2653 = vmatprep.subr.bf16.mxu0 %v5059_v0  ;;  %v4617_v1 = vld [vmem:[%s6741_s1] sm:$0xff]   ;;  %v4619_v3 = vld [vmem:[%s6741_s1 + $0x8] sm:$0xff]   ;;  %v4621_v5 = vld [vmem:[%s6741_s1 + $0x10] sm:$0xff]  }
   0x2   :  { %v4618_v2 = vld [vmem:[%s6741_s1 + $0x100] sm:$0xff]   ;;  %2300 = vmatpush1.bf16.msra.mxu1 %v4617_v1  ;;  %v4620_v4 = vld [vmem:[%s6741_s1 + $0x108] sm:$0xff]   ;;  %v4622_v6 = vld [vmem:[%s6741_s1 + $0x110] sm:$0xff]  }
   0x3   :  { %2654 = vmatpush1.bf16.msra.mxu0 %v4618_v2  ;;  %2301 = vmatprep.subr.bf16.mxu1 %v5059_v0  ;;  %v4623_v7 = vld [vmem:[%s6741_s1 + $0x18] sm:$0xff]   ;;  %v4625_v9 = vld [vmem:[%s6741_s1 + $0x20] sm:$0xff]   ;;  %v4627_v11 = vld [vmem:[%s6741_s1 + $0x28] sm:$0xff]  }
   0x4   :  { %2655 = vmatprep.subr.bf16.mxu0 %v5059_v0  ;;  %v4624_v8 = vld [vmem:[%s6741_s1 + $0x118] sm:$0xff]   ;;  %v4626_v10 = vld [vmem:[%s6741_s1 + $0x120] sm:$0xff]   ;;  %v4628_v12 = vld [vmem:[%s6741_s1 + $0x128] sm:$0xff]  }
   0x5   :  { %v4629_v13 = vld [vmem:[%s6741_s1 + $0x30] sm:$0xff]   ;;  %v4631_v15 = vld [vmem:[%s6741_s1 + $0x38] sm:$0xff]   ;;  %v4633_v17 = vld [vmem:[%s6741_s1 + $0x40] sm:$0xff]  }
   0x6   :  { %2302 = vmatpush1.bf16.msra.mxu1 %v4619_v3  ;;  %v4630_v14 = vld [vmem:[%s6741_s1 + $0x130] sm:$0xff]   ;;  %v4632_v16 = vld [vmem:[%s6741_s1 + $0x138] sm:$0xff]   ;;  %v4634_v18 = vld [vmem:[%s6741_s1 + $0x140] sm:$0xff]  }
   0x7   :  { %2656 = vmatpush1.bf16.msra.mxu0 %v4620_v4  ;;  %2303 = vmatprep.subr.bf16.mxu1 %v5059_v0  ;;  %v4651_v19 = vld [vmem:[%s6742_s0 + $0x4] ss:$52 sps:$4 sm:$0xff]   ;;  %v4635_v20 = vld [vmem:[%s6741_s1 + $0x48] sm:$0xff]   ;;  %v4637_v23 = vld [vmem:[%s6741_s1 + $0x50] sm:$0xff]  }
   0x8   :  { %2657 = vmatprep.subr.bf16.mxu0 %v5059_v0  ;;  %v4654_v21 = vld [vmem:[%s6742_s0 + $0x14] ss:$52 sps:$4 sm:$0xff]   ;;  %2331 = vmatprep.mubr.bf16.mxu1 %v4651_v19  ;;  %v4639_v25 = vld [vmem:[%s6741_s1 + $0x58] sm:$0xff]   ;;  %v4641_v27 = vld [vmem:[%s6741_s1 + $0x60] sm:$0xff]  }
   0x9   :  { %v4636_v22 = vld [vmem:[%s6741_s1 + $0x148] sm:$0xff]   ;;  %2685 = vmatprep.mubr.bf16.mxu0 %v4654_v21  ;;  %v4638_v24 = vld [vmem:[%s6741_s1 + $0x150] sm:$0xff]   ;;  %v4640_v26 = vld [vmem:[%s6741_s1 + $0x158] sm:$0xff]  }
   0xa   :  { %2304 = vmatpush1.bf16.msra.mxu1 %v4621_v5  ;;  %v4642_v28 = vld [vmem:[%s6741_s1 + $0x160] sm:$0xff]   ;;  %v4643_v29 = vld [vmem:[%s6741_s1 + $0x68] sm:$0xff]   ;;  %v4645_v31 = vld [vmem:[%s6741_s1 + $0x70] sm:$0xff]  }
   0xb   :  { %2658 = vmatpush1.bf16.msra.mxu0 %v4622_v6  ;;  %2305 = vmatprep.subr.bf16.mxu1 %v5059_v0  ;;  %v4644_v30 = vld [vmem:[%s6741_s1 + $0x168] sm:$0xff]   ;;  %v4646_v32 = vld [vmem:[%s6741_s1 + $0x170] sm:$0xff]   ;;  %v4647_v33 = vld [vmem:[%s6741_s1 + $0x78] sm:$0xff]  }
   0xc   :  { %2659 = vmatprep.subr.bf16.mxu0 %v5059_v0  ;;  %v4648_v34 = vld [vmem:[%s6741_s1 + $0x178] sm:$0xff]   ;;  %v4649_v35 = vld [vmem:[%s6742_s0] ss:$52 sps:$4 sm:$0xff]   ;;  %v4652_v36 = vld [vmem:[%s6742_s0 + $0x10] ss:$52 sps:$4 sm:$0xff]  }
   0xd   :  { %v4655_v37 = vld [vmem:[%s6741_s1 + $0x180] sm:$0xff]   ;;  %v4658_v39 = vld [vmem:[%s6742_s0 + $0x7c] ss:$52 sps:$4 sm:$0xff]   ;;  %v4663_v41 = vld [vmem:[%s6741_s1 + $0x188] sm:$0xff]  }
   0xe   :  { %2306 = vmatpush1.bf16.msra.mxu1 %v4623_v7  ;;  %v4656_v38 = vld [vmem:[%s6742_s0 + $0x6c] ss:$52 sps:$4 sm:$0xff]   ;;  %v4660_v42 = vld [vmem:[%s6742_s0 + $0x68] ss:$52 sps:$4 sm:$0xff]   ;;  %v4666_v46 = vld [vmem:[%s6742_s0 + $0xe4] ss:$52 sps:$4 sm:$0xff]  }
   0xf   :  { %2660 = vmatpush1.bf16.msra.mxu0 %v4624_v8  ;;  %2307 = vmatprep.subr.bf16.mxu1 %v5059_v0  ;;  %v4662_v40 = vld [vmem:[%s6741_s1 + $0x80] sm:$0xff]   ;;  %v4670_v43 = vld [vmem:[%s6741_s1 + $0x88] sm:$0xff]   ;;  %v4671_v47 = vld [vmem:[%s6741_s1 + $0x190] sm:$0xff]  }
  0x10   :  { %2661 = vmatprep.subr.bf16.mxu0 %v5059_v0  ;;  %v4661_v44 = vld [vmem:[%s6742_s0 + $0x78] ss:$52 sps:$4 sm:$0xff]   ;;  %v4664_v45 = vld [vmem:[%s6742_s0 + $0xd4] ss:$52 sps:$4 sm:$0xff]   ;;  %v4668_v49 = vld [vmem:[%s6742_s0 + $0xd0] ss:$52 sps:$4 sm:$0xff]  }
  0x11   :  { %v4678_v48 = vld [vmem:[%s6741_s1 + $0x90] sm:$0xff]   ;;  %v4679_v50 = vld [vmem:[%s6741_s1 + $0x198] sm:$0xff]   ;;  %v4674_v54 = vld [vmem:[%s6742_s0 + $0x14c] ss:$52 sps:$4 sm:$0xff]  }
  0x12   :  { %2308 = vmatpush1.bf16.msra.mxu1 %v4625_v9  ;;  %v4686_v51 = vld [vmem:[%s6741_s1 + $0x98] sm:$0xff]   ;;  %v4669_v52 = vld [vmem:[%s6742_s0 + $0xe0] ss:$52 sps:$4 sm:$0xff]   ;;  %v4695_v58 = vld [vmem:[%s6741_s1 + $0x1a8] sm:$0xff]  }
  0x13   :  { %2662 = vmatpush1.bf16.msra.mxu0 %v4626_v10  ;;  %2309 = vmatprep.subr.bf16.mxu1 %v5059_v0  ;;  %v4672_v53 = vld [vmem:[%s6742_s0 + $0x13c] ss:$52 sps:$4 sm:$0xff]   ;;  %v4687_v55 = vld [vmem:[%s6741_s1 + $0x1a0] sm:$0xff]   ;;  %v4676_v57 = vld [vmem:[%s6742_s0 + $0x138] ss:$52 sps:$4 sm:$0xff]  }
  0x14   :  { %2663 = vmatprep.subr.bf16.mxu0 %v5059_v0  ;;  %v4694_v56 = vld [vmem:[%s6741_s1 + $0xa0] sm:$0xff]   ;;  %v4704_v59 = vld [vmem:[%s6741_s1 + $0xa8] sm:$0xff]   ;;  %v4707_v63 = vld [vmem:[%s6741_s1 + $0x1b0] sm:$0xff]  }
  0x15   :  { %v4677_v60 = vld [vmem:[%s6742_s0 + $0x148] ss:$52 sps:$4 sm:$0xff]   ;;  %v4680_v61 = vld [vmem:[%s6742_s0 + $0x1a4] ss:$52 sps:$4 sm:$0xff]   ;;  %v4715_v1 = vld [vmem:[%s6741_s1 + $0xb0] sm:$0xff]  }
  0x16   :  { %2310 = vmatpush1.bf16.msra.mxu1 %v4627_v11  ;;  %v4682_v62 = vld [vmem:[%s6742_s0 + $0x1b4] ss:$52 sps:$4 sm:$0xff]   ;;  %v4717_v3 = vld [vmem:[%s6741_s1 + $0x1b8] sm:$0xff]   ;;  %v4685_v4 = vld [vmem:[%s6742_s0 + $0x1b0] ss:$52 sps:$4 sm:$0xff]  }
  0x17   :  { %2664 = vmatpush1.bf16.msra.mxu0 %v4628_v12  ;;  %2311 = vmatprep.subr.bf16.mxu1 %v5059_v0  ;;  %v4684_v2 = vld [vmem:[%s6742_s0 + $0x1a0] ss:$52 sps:$4 sm:$0xff]   ;;  %v4724_v5 = vld [vmem:[%s6741_s1 + $0xb8] sm:$0xff]   ;;  %v4733_v11 = vld [vmem:[%s6741_s1 + $0x1c8] sm:$0xff]  }
  0x18   :  { %2665 = vmatprep.subr.bf16.mxu0 %v5059_v0  ;;  %v4688_v6 = vld [vmem:[%s6742_s0 + $0x20c] ss:$52 sps:$4 sm:$0xff]   ;;  %v4690_v7 = vld [vmem:[%s6742_s0 + $0x21c] ss:$52 sps:$4 sm:$0xff]  }
  0x19   :  { %v4725_v8 = vld [vmem:[%s6741_s1 + $0x1c0] sm:$0xff]   ;;  %v4692_v10 = vld [vmem:[%s6742_s0 + $0x208] ss:$52 sps:$4 sm:$0xff]  }
  0x1a   :  { %2312 = vmatpush1.bf16.msra.mxu1 %v4629_v13  ;;  %v4732_v9 = vld [vmem:[%s6741_s1 + $0xc0] sm:$0xff]   ;;  %v4740_v12 = vld [vmem:[%s6741_s1 + $0xc8] sm:$0xff]  }
  0x1b   :  { %2666 = vmatpush1.bf16.msra.mxu0 %v4630_v14  ;;  %2313 = vmatprep.subr.bf16.mxu1 %v5059_v0  ;;  %v4693_v13 = vld [vmem:[%s6742_s0 + $0x218] ss:$52 sps:$4 sm:$0xff]   ;;  %v4696_v14 = vld [vmem:[%s6742_s0 + $0x274] ss:$52 sps:$4 sm:$0xff]   ;;  %v4700_v19 = vld [vmem:[%s6742_s0 + $0x270] ss:$52 sps:$4 sm:$0xff]  }
  0x1c   :  { %2667 = vmatprep.subr.bf16.mxu0 %v5059_v0  ;;  %v4701_v21 = vld [vmem:[%s6742_s0 + $0x280] ss:$52 sps:$4 sm:$0xff]  }
  0x1e   :  { %2314 = vmatpush1.bf16.msra.mxu1 %v4631_v15  ;;  %v4698_v15 = vld [vmem:[%s6742_s0 + $0x284] ss:$52 sps:$4 sm:$0xff]  }
  0x1f   :  { %2668 = vmatpush1.bf16.msra.mxu0 %v4632_v16  ;;  %2315 = vmatprep.subr.bf16.mxu1 %v5059_v0  ;;  %v4741_v16 = vld [vmem:[%s6741_s1 + $0x1d0] sm:$0xff]  }
  0x20   :  { %2669 = vmatprep.subr.bf16.mxu0 %v5059_v0 }
  0x22   :  { %2316 = vmatpush1.bf16.msra.mxu1 %v4633_v17  ;;  %v4748_v17 = vld [vmem:[%s6741_s1 + $0xd0] sm:$0xff]  }
  0x23   :  { %2670 = vmatpush1.bf16.msra.mxu0 %v4634_v18  ;;  %2317 = vmatprep.subr.bf16.mxu1 %v5059_v0  ;;  %v4749_v18 = vld [vmem:[%s6741_s1 + $0x1d8] sm:$0xff]  }
  0x24   :  { %2671 = vmatprep.subr.bf16.mxu0 %v5059_v0 }
  0x26   :  { %2318 = vmatpush1.bf16.msra.mxu1 %v4635_v20  ;;  %v4756_v20 = vld [vmem:[%s6741_s1 + $0xd8] sm:$0xff]  }
  0x27   :  { %2672 = vmatpush1.bf16.msra.mxu0 %v4636_v22  ;;  %2319 = vmatprep.subr.bf16.mxu1 %v5059_v0  ;;  %v4702_v22 = vld [vmem:[%s6742_s0 + $0x2dc] ss:$52 sps:$4 sm:$0xff]  }
  0x28   :  { %2673 = vmatprep.subr.bf16.mxu0 %v5059_v0 }
  0x2a   :  { %2320 = vmatpush1.bf16.msra.mxu1 %v4637_v23  ;;  %v4705_v23 = vld [vmem:[%s6742_s0 + $0x2ec] ss:$52 sps:$4 sm:$0xff]  }
  0x2b   :  { %2674 = vmatpush1.bf16.msra.mxu0 %v4638_v24  ;;  %2321 = vmatprep.subr.bf16.mxu1 %v5059_v0  ;;  %v4757_v24 = vld [vmem:[%s6741_s1 + $0x1e0] sm:$0xff]  }
  0x2c   :  { %2675 = vmatprep.subr.bf16.mxu0 %v5059_v0 }
  0x2e   :  { %2322 = vmatpush1.bf16.msra.mxu1 %v4639_v25  ;;  %v4764_v25 = vld [vmem:[%s6741_s1 + $0xe0] sm:$0xff]  }
  0x2f   :  { %2676 = vmatpush1.bf16.msra.mxu0 %v4640_v26  ;;  %2323 = vmatprep.subr.bf16.mxu1 %v5059_v0  ;;  %v4708_v26 = vld [vmem:[%s6742_s0 + $0x2d8] ss:$52 sps:$4 sm:$0xff]  }
  0x30   :  { %2677 = vmatprep.subr.bf16.mxu0 %v5059_v0 }
  0x32   :  { %2324 = vmatpush1.bf16.msra.mxu1 %v4641_v27  ;;  %v4765_v27 = vld [vmem:[%s6741_s1 + $0x1e8] sm:$0xff]  }
  0x33   :  { %2678 = vmatpush1.bf16.msra.mxu0 %v4642_v28  ;;  %2325 = vmatprep.subr.bf16.mxu1 %v5059_v0  ;;  %v4774_v28 = vld [vmem:[%s6741_s1 + $0xe8] sm:$0xff]  }
  0x34   :  { %2679 = vmatprep.subr.bf16.mxu0 %v5059_v0 }
  0x36   :  { %2326 = vmatpush1.bf16.msra.mxu1 %v4643_v29  ;;  %v4709_v29 = vld [vmem:[%s6742_s0 + $0x2e8] ss:$52 sps:$4 sm:$0xff]  }
  0x37   :  { %2680 = vmatpush1.bf16.msra.mxu0 %v4644_v30  ;;  %2327 = vmatprep.subr.bf16.mxu1 %v5059_v0  ;;  %v4710_v30 = vld [vmem:[%s6742_s0 + $0x344] ss:$52 sps:$4 sm:$0xff]  }
  0x38   :  { %2681 = vmatprep.subr.bf16.mxu0 %v5059_v0 }
  0x3a   :  { %2328 = vmatpush1.bf16.msra.mxu1 %v4645_v31  ;;  %v4712_v31 = vld [vmem:[%s6742_s0 + $0x354] ss:$52 sps:$4 sm:$0xff]  }
  0x3b   :  { %2682 = vmatpush1.bf16.msra.mxu0 %v4646_v32  ;;  %2329 = vmatprep.subr.bf16.mxu1 %v5059_v0  ;;  %v4777_v32 = vld [vmem:[%s6741_s1 + $0x1f0] sm:$0xff]  }
  0x3c   :  { %2683 = vmatprep.subr.bf16.mxu0 %v5059_v0 }
  0x3e   :  { %2330 = vmatpush1.bf16.msra.mxu1 %v4647_v33  ;;  %v4785_v33 = vld [vmem:[%s6741_s1 + $0xf0] sm:$0xff]  }
  0x3f   :  { %2684 = vmatpush1.bf16.msra.mxu0 %v4648_v34  ;;  %2476 = vmatprep.subr.bf16.mxu1 %v5059_v0  ;;  %v4714_v34 = vld [vmem:[%s6742_s0 + $0x340] ss:$52 sps:$4 sm:$0xff]  }
  0x40   :  { %2830 = vmatprep.subr.bf16.mxu0 %v5059_v0 }
  0x41   :  { %2332 = vmatmul.mubr.bf16.vlgmr.msra.gmra.mrb[0].mxu1 %v4649_v35  ;;  %v4787_v35 = vld [vmem:[%s6741_s1 + $0x1f8] sm:$0xff]  }
  0x42   :  { %2686 = vmatmul.mubr.bf16.vlgmr.msra.gmra.mrb[0].mxu0 %v4652_v36  ;;  %2339 = vmatprep.mubr.bf16.mxu1 %v4656_v38  ;;  %v4788_v36 = vld [vmem:[%s6741_s1 + $0xf8] sm:$0xff]   ;;  %v4718_v38 = vld [vmem:[%s6742_s0 + $0x3ac] ss:$52 sps:$4 sm:$0xff]  }
  0x43   :  { %2831 = vmatpush1.bf16.msra.mxu0 %v4655_v37  ;;  %2693 = vmatprep.mubr.bf16.mxu0 %v4658_v39  ;;  %v4716_v37 = vld [vmem:[%s6742_s0 + $0x350] ss:$52 sps:$4 sm:$0xff]  }
  0x44   :  { %2832 = vmatprep.subr.bf16.mxu0 %v5059_v0  ;;  %2477 = vmatpush1.bf16.msra.mxu1 %v4662_v40  ;;  %v4720_v39 = vld [vmem:[%s6742_s0 + $0x3bc] ss:$52 sps:$4 sm:$0xff]  }
  0x45   :  { %2478 = vmatprep.subr.bf16.mxu1 %v5059_v0  ;;  %v4722_v40 = vld [vmem:[%s6742_s0 + $0x3a8] ss:$52 sps:$4 sm:$0xff]  }
  0x47   :  { %2833 = vmatpush1.bf16.msra.mxu0 %v4663_v41  ;;  %v4723_v41 = vld [vmem:[%s6742_s0 + $0x3b8] ss:$52 sps:$4 sm:$0xff]  }
  0x48   :  { %2834 = vmatprep.subr.bf16.mxu0 %v5059_v0  ;;  %2479 = vmatpush1.bf16.msra.mxu1 %v4670_v43  ;;  %v4728_v43 = vld [vmem:[%s6742_s0 + $0x424] ss:$52 sps:$4 sm:$0xff]  }
  0x49   :  { %2340 = vmatmul.mubr.bf16.gmra.mrb[4].mxu1 %v4660_v42  ;;  %2480 = vmatprep.subr.bf16.mxu1 %v5059_v0  ;;  %v4726_v42 = vld [vmem:[%s6742_s0 + $0x414] ss:$52 sps:$4 sm:$0xff]  }
  0x4a   :  { %2694 = vmatmul.mubr.bf16.gmra.mrb[4].mxu0 %v4661_v44  ;;  %2347 = vmatprep.mubr.bf16.mxu1 %v4664_v45  ;;  %v4730_v44 = vld [vmem:[%s6742_s0 + $0x410] ss:$52 sps:$4 sm:$0xff]   ;;  %v4731_v45 = vld [vmem:[%s6742_s0 + $0x420] ss:$52 sps:$4 sm:$0xff]  }
  0x4b   :  { %2701 = vmatprep.mubr.bf16.mxu0 %v4666_v46  ;;  %2835 = vmatpush1.bf16.msra.mxu0 %v4671_v47  ;;  %v4734_v46 = vld [vmem:[%s6742_s0 + $0x47c] ss:$52 sps:$4 sm:$0xff]   ;;  %v4736_v47 = vld [vmem:[%s6742_s0 + $0x48c] ss:$52 sps:$4 sm:$0xff]  }
  0x4c   :  { %2836 = vmatprep.subr.bf16.mxu0 %v5059_v0  ;;  %2481 = vmatpush1.bf16.msra.mxu1 %v4678_v48  ;;  %v4738_v48 = vld [vmem:[%s6742_s0 + $0x478] ss:$52 sps:$4 sm:$0xff]  }
  0x4d   :  { %2482 = vmatprep.subr.bf16.mxu1 %v5059_v0 }
  0x4f   :  { %2837 = vmatpush1.bf16.msra.mxu0 %v4679_v50  ;;  %v4742_v50 = vld [vmem:[%s6742_s0 + $0x4e4] ss:$52 sps:$4 sm:$0xff]  }
  0x50   :  { %2838 = vmatprep.subr.bf16.mxu0 %v5059_v0  ;;  %2483 = vmatpush1.bf16.msra.mxu1 %v4686_v51  ;;  %v4744_v51 = vld [vmem:[%s6742_s0 + $0x4f4] ss:$52 sps:$4 sm:$0xff]  }
  0x51   :  { %2348 = vmatmul.mubr.bf16.gmra.mrb[8].mxu1 %v4668_v49  ;;  %2484 = vmatprep.subr.bf16.mxu1 %v5059_v0  ;;  %v4739_v49 = vld [vmem:[%s6742_s0 + $0x488] ss:$52 sps:$4 sm:$0xff]  }
  0x52   :  { %2702 = vmatmul.mubr.bf16.gmra.mrb[8].mxu0 %v4669_v52  ;;  %2355 = vmatprep.mubr.bf16.mxu1 %v4672_v53  ;;  %v4746_v52 = vld [vmem:[%s6742_s0 + $0x4e0] ss:$52 sps:$4 sm:$0xff]   ;;  %v4747_v53 = vld [vmem:[%s6742_s0 + $0x4f0] ss:$52 sps:$4 sm:$0xff]  }
  0x53   :  { %2709 = vmatprep.mubr.bf16.mxu0 %v4674_v54  ;;  %2839 = vmatpush1.bf16.msra.mxu0 %v4687_v55  ;;  %v4750_v54 = vld [vmem:[%s6742_s0 + $0x54c] ss:$52 sps:$4 sm:$0xff]   ;;  %v4752_v55 = vld [vmem:[%s6742_s0 + $0x55c] ss:$52 sps:$4 sm:$0xff]  }
  0x54   :  { %2840 = vmatprep.subr.bf16.mxu0 %v5059_v0  ;;  %2485 = vmatpush1.bf16.msra.mxu1 %v4694_v56  ;;  %v4754_v56 = vld [vmem:[%s6742_s0 + $0x548] ss:$52 sps:$4 sm:$0xff]  }
  0x55   :  { %2486 = vmatprep.subr.bf16.mxu1 %v5059_v0 }
  0x57   :  { %2841 = vmatpush1.bf16.msra.mxu0 %v4695_v58  ;;  %v4758_v58 = vld [vmem:[%s6742_s0 + $0x5b4] ss:$52 sps:$4 sm:$0xff]  }
  0x58   :  { %2842 = vmatprep.subr.bf16.mxu0 %v5059_v0  ;;  %2487 = vmatpush1.bf16.msra.mxu1 %v4704_v59  ;;  %v4760_v59 = vld [vmem:[%s6742_s0 + $0x5c4] ss:$52 sps:$4 sm:$0xff]  }
  0x59   :  { %2356 = vmatmul.mubr.bf16.gmra.mrb[12].mxu1 %v4676_v57  ;;  %2488 = vmatprep.subr.bf16.mxu1 %v5059_v0  ;;  %v4755_v57 = vld [vmem:[%s6742_s0 + $0x558] ss:$52 sps:$4 sm:$0xff]  }
  0x5a   :  { %2710 = vmatmul.mubr.bf16.gmra.mrb[12].mxu0 %v4677_v60  ;;  %2363 = vmatprep.mubr.bf16.mxu1 %v4680_v61  ;;  %v4762_v60 = vld [vmem:[%s6742_s0 + $0x5b0] ss:$52 sps:$4 sm:$0xff]   ;;  %v4763_v61 = vld [vmem:[%s6742_s0 + $0x5c0] ss:$52 sps:$4 sm:$0xff]  }
  0x5b   :  { %2717 = vmatprep.mubr.bf16.mxu0 %v4682_v62  ;;  %2843 = vmatpush1.bf16.msra.mxu0 %v4707_v63  ;;  %v4766_v62 = vld [vmem:[%s6742_s0 + $0x61c] ss:$52 sps:$4 sm:$0xff]   ;;  %v4768_v63 = vld [vmem:[%s6742_s0 + $0x62c] ss:$52 sps:$4 sm:$0xff]  }
  0x5c   :  { %2844 = vmatprep.subr.bf16.mxu0 %v5059_v0  ;;  %2489 = vmatpush1.bf16.msra.mxu1 %v4715_v1  ;;  %v4770_v1 = vld [vmem:[%s6742_s0 + $0x618] ss:$52 sps:$4 sm:$0xff]  }
  0x5d   :  { %2490 = vmatprep.subr.bf16.mxu1 %v5059_v0 }
  0x5f   :  { %2845 = vmatpush1.bf16.msra.mxu0 %v4717_v3  ;;  %v4772_v3 = vld [vmem:[%s6742_s0 + $0x684] ss:$52 sps:$4 sm:$0xff]  }
  0x60   :  { %2846 = vmatprep.subr.bf16.mxu0 %v5059_v0  ;;  %2491 = vmatpush1.bf16.msra.mxu1 %v4724_v5  ;;  %v4778_v5 = vld [vmem:[%s6742_s0 + $0x680] ss:$52 sps:$4 sm:$0xff]  }
  0x61   :  { %2364 = vmatmul.mubr.bf16.gmra.mrb[16].mxu1 %v4684_v2  ;;  %2492 = vmatprep.subr.bf16.mxu1 %v5059_v0  ;;  %v4771_v2 = vld [vmem:[%s6742_s0 + $0x628] ss:$52 sps:$4 sm:$0xff]  }
  0x62   :  { %2718 = vmatmul.mubr.bf16.gmra.mrb[16].mxu0 %v4685_v4  ;;  %2371 = vmatprep.mubr.bf16.mxu1 %v4688_v6  ;;  %v4775_v4 = vld [vmem:[%s6742_s0 + $0x694] ss:$52 sps:$4 sm:$0xff]   ;;  %v4779_v6 = vld [vmem:[%s6742_s0 + $0x690] ss:$52 sps:$4 sm:$0xff]  }
  0x63   :  { %2725 = vmatprep.mubr.bf16.mxu0 %v4690_v7  ;;  %2847 = vmatpush1.bf16.msra.mxu0 %v4725_v8  ;;  %v4780_v7 = vld [vmem:[%s6742_s0 + $0x6ec] ss:$52 sps:$4 sm:$0xff]   ;;  %v4782_v8 = vld [vmem:[%s6742_s0 + $0x6fc] ss:$52 sps:$4 sm:$0xff]  }
  0x64   :  { %2848 = vmatprep.subr.bf16.mxu0 %v5059_v0  ;;  %2493 = vmatpush1.bf16.msra.mxu1 %v4732_v9  ;;  %v4784_v9 = vld [vmem:[%s6742_s0 + $0x6e8] ss:$52 sps:$4 sm:$0xff]  }
  0x65   :  { %2494 = vmatprep.subr.bf16.mxu1 %v5059_v0 }
  0x67   :  { %2849 = vmatpush1.bf16.msra.mxu0 %v4733_v11  ;;  %v4791_v11 = vld [vmem:[%s6742_s0 + $0xc] ss:$52 sps:$4 sm:$0xff]  }
  0x68   :  { %2850 = vmatprep.subr.bf16.mxu0 %v5059_v0  ;;  %2495 = vmatpush1.bf16.msra.mxu1 %v4740_v12  ;;  %v4794_v12 = vld [vmem:[%s6742_s0 + $0x1c] ss:$52 sps:$4 sm:$0xff]  }
  0x69   :  { %2372 = vmatmul.mubr.bf16.gmra.mrb[20].mxu1 %v4692_v10  ;;  %2496 = vmatprep.subr.bf16.mxu1 %v5059_v0  ;;  %v4786_v10 = vld [vmem:[%s6742_s0 + $0x6f8] ss:$52 sps:$4 sm:$0xff]  }
  0x6a   :  { %2726 = vmatmul.mubr.bf16.gmra.mrb[20].mxu0 %v4693_v13  ;;  %2379 = vmatprep.mubr.bf16.mxu1 %v4696_v14  ;;  %v4789_v13 = vld [vmem:[%s6742_s0 + $0x8] ss:$52 sps:$4 sm:$0xff]   ;;  %v4792_v14 = vld [vmem:[%s6742_s0 + $0x18] ss:$52 sps:$4 sm:$0xff]  }
  0x6b   :  { %2733 = vmatprep.mubr.bf16.mxu0 %v4698_v15  ;;  %2851 = vmatpush1.bf16.msra.mxu0 %v4741_v16  ;;  %v4796_v15 = vld [vmem:[%s6742_s0 + $0x74] ss:$52 sps:$4 sm:$0xff]   ;;  %v4795_v16 = vld [vmem:[%s6741_s1 + $0x200] sm:$0xff]  }
  0x6c   :  { %2852 = vmatprep.subr.bf16.mxu0 %v5059_v0  ;;  %2497 = vmatpush1.bf16.msra.mxu1 %v4748_v17  ;;  %v4798_v17 = vld [vmem:[%s6742_s0 + $0x84] ss:$52 sps:$4 sm:$0xff]  }
  0x6d   :  { %2498 = vmatprep.subr.bf16.mxu1 %v5059_v0 }
  0x6f   :  { %2853 = vmatpush1.bf16.msra.mxu0 %v4749_v18  ;;  %v5578_v18 = vld [vmem:[%s6741_s1 + $0x280] sm:$0xff]  }
  0x70   :  { %2854 = vmatprep.subr.bf16.mxu0 %v5059_v0  ;;  %2499 = vmatpush1.bf16.msra.mxu1 %v4756_v20  ;;  %v4800_v20 = vld [vmem:[%s6742_s0 + $0x70] ss:$52 sps:$4 sm:$0xff]  }
  0x71   :  { %2380 = vmatmul.mubr.bf16.gmra.mrb[24].mxu1 %v4700_v19  ;;  %2500 = vmatprep.subr.bf16.mxu1 %v5059_v0  ;;  %v4802_v19 = vld [vmem:[%s6741_s1 + $0x208] sm:$0xff]  }
  0x72   :  { %2734 = vmatmul.mubr.bf16.gmra.mrb[24].mxu0 %v4701_v21  ;;  %2387 = vmatprep.mubr.bf16.mxu1 %v4702_v22  ;;  %v5589_v21 = vld [vmem:[%s6741_s1 + $0x288] sm:$0xff]   ;;  %v4801_v22 = vld [vmem:[%s6742_s0 + $0x80] ss:$52 sps:$4 sm:$0xff]  }
  0x73   :  { %2741 = vmatprep.mubr.bf16.mxu0 %v4705_v23  ;;  %2855 = vmatpush1.bf16.msra.mxu0 %v4757_v24  ;;  %v4804_v23 = vld [vmem:[%s6742_s0 + $0xdc] ss:$52 sps:$4 sm:$0xff]   ;;  %v4806_v24 = vld [vmem:[%s6742_s0 + $0xec] ss:$52 sps:$4 sm:$0xff]  }
  0x74   :  { %2856 = vmatprep.subr.bf16.mxu0 %v5059_v0  ;;  %2501 = vmatpush1.bf16.msra.mxu1 %v4764_v25  ;;  %v4810_v25 = vld [vmem:[%s6741_s1 + $0x210] sm:$0xff]  }
  0x75   :  { %2502 = vmatprep.subr.bf16.mxu1 %v5059_v0 }
  0x77   :  { %2857 = vmatpush1.bf16.msra.mxu0 %v4765_v27  ;;  %v4808_v27 = vld [vmem:[%s6742_s0 + $0xd8] ss:$52 sps:$4 sm:$0xff]  }
  0x78   :  { %2858 = vmatprep.subr.bf16.mxu0 %v5059_v0  ;;  %2503 = vmatpush1.bf16.msra.mxu1 %v4774_v28  ;;  %v4818_v28 = vld [vmem:[%s6741_s1 + $0x218] sm:$0xff]  }
  0x79   :  { %2388 = vmatmul.mubr.bf16.gmra.mrb[28].mxu1 %v4708_v26  ;;  %2504 = vmatprep.subr.bf16.mxu1 %v5059_v0  ;;  %v5611_v26 = vld [vmem:[%s6741_s1 + $0x290] sm:$0xff]  }
  0x7a   :  { %2742 = vmatmul.mubr.bf16.gmra.mrb[28].mxu0 %v4709_v29  ;;  %2395 = vmatprep.mubr.bf16.mxu1 %v4710_v30  ;;  %v5623_v29 = vld [vmem:[%s6741_s1 + $0x298] sm:$0xff]  }
  0x7b   :  { %2749 = vmatprep.mubr.bf16.mxu0 %v4712_v31  ;;  %2859 = vmatpush1.bf16.msra.mxu0 %v4777_v32  ;;  %v4809_v30 = vld [vmem:[%s6742_s0 + $0xe8] ss:$52 sps:$4 sm:$0xff]   ;;  %v4812_v31 = vld [vmem:[%s6742_s0 + $0x144] ss:$52 sps:$4 sm:$0xff]  }
  0x7c   :  { %2860 = vmatprep.subr.bf16.mxu0 %v5059_v0  ;;  %2505 = vmatpush1.bf16.msra.mxu1 %v4785_v33  ;;  %v4814_v32 = vld [vmem:[%s6742_s0 + $0x154] ss:$52 sps:$4 sm:$0xff]   ;;  %v4826_v33 = vld [vmem:[%s6741_s1 + $0x220] sm:$0xff]  }
  0x7d   :  { %2506 = vmatprep.subr.bf16.mxu1 %v5059_v0 }
  0x7f   :  { %2861 = vmatpush1.bf16.msra.mxu0 %v4787_v35  ;;  %v4816_v35 = vld [vmem:[%s6742_s0 + $0x140] ss:$52 sps:$4 sm:$0xff]  }
  0x80   :  { %2507 = vmatpush1.bf16.msra.mxu1 %v4788_v36  ;;  %3007 = vmatprep.subr.bf16.mxu0 %v5059_v0  ;;  %v4834_v36 = vld [vmem:[%s6741_s1 + $0x228] sm:$0xff]  }
  0x81   :  { %2396 = vmatmul.mubr.bf16.gmra.mrb[32].mxu1 %v4714_v34  ;;  %4250 = vmatprep.subr.bf16.mxu1 %v5059_v0  ;;  %v5643_v34 = vld [vmem:[%s6741_s1 + $0x2a0] sm:$0xff]  }
  0x82   :  { %2750 = vmatmul.mubr.bf16.gmra.mrb[32].mxu0 %v4716_v37  ;;  %2403 = vmatprep.mubr.bf16.mxu1 %v4718_v38  ;;  %v5657_v37 = vld [vmem:[%s6741_s1 + $0x2a8] sm:$0xff]   ;;  %v4817_v38 = vld [vmem:[%s6742_s0 + $0x150] ss:$52 sps:$4 sm:$0xff]  }
  0x83   :  { %2757 = vmatprep.mubr.bf16.mxu0 %v4720_v39  ;;  %v4820_v39 = vld [vmem:[%s6742_s0 + $0x1ac] ss:$52 sps:$4 sm:$0xff]  }
  0x89   :  { %2404 = vmatmul.mubr.bf16.gmra.mrb[36].mxu1 %v4722_v40  ;;  %v4822_v40 = vld [vmem:[%s6742_s0 + $0x1bc] ss:$52 sps:$4 sm:$0xff]  }
  0x8a   :  { %2758 = vmatmul.mubr.bf16.gmra.mrb[36].mxu0 %v4723_v41  ;;  %2411 = vmatprep.mubr.bf16.mxu1 %v4726_v42  ;;  %v4846_v41 = vld [vmem:[%s6741_s1 + $0x230] sm:$0xff]  }
  0x8b   :  { %2765 = vmatprep.mubr.bf16.mxu0 %v4728_v43  ;;  %v5679_v42 = vld [vmem:[%s6741_s1 + $0x2b0] sm:$0xff]   ;;  %v4856_v43 = vld [vmem:[%s6741_s1 + $0x238] sm:$0xff]  }
  0x91   :  { %2412 = vmatmul.mubr.bf16.gmra.mrb[40].mxu1 %v4730_v44  ;;  %v5690_v44 = vld [vmem:[%s6741_s1 + $0x2b8] sm:$0xff]  }
  0x92   :  { %2766 = vmatmul.mubr.bf16.gmra.mrb[40].mxu0 %v4731_v45  ;;  %2419 = vmatprep.mubr.bf16.mxu1 %v4734_v46  ;;  %v4824_v45 = vld [vmem:[%s6742_s0 + $0x1a8] ss:$52 sps:$4 sm:$0xff]   ;;  %v4825_v46 = vld [vmem:[%s6742_s0 + $0x1b8] ss:$52 sps:$4 sm:$0xff]  }
  0x93   :  { %2773 = vmatprep.mubr.bf16.mxu0 %v4736_v47  ;;  %v4828_v47 = vld [vmem:[%s6742_s0 + $0x214] ss:$52 sps:$4 sm:$0xff]  }
  0x99   :  { %2420 = vmatmul.mubr.bf16.gmra.mrb[44].mxu1 %v4738_v48  ;;  %v4830_v48 = vld [vmem:[%s6742_s0 + $0x224] ss:$52 sps:$4 sm:$0xff]  }
  0x9a   :  { %2774 = vmatmul.mubr.bf16.gmra.mrb[44].mxu0 %v4739_v49  ;;  %2427 = vmatprep.mubr.bf16.mxu1 %v4742_v50  ;;  %v4864_v49 = vld [vmem:[%s6741_s1 + $0x240] sm:$0xff]  }
  0x9b   :  { %2781 = vmatprep.mubr.bf16.mxu0 %v4744_v51  ;;  %v5713_v50 = vld [vmem:[%s6741_s1 + $0x2c0] sm:$0xff]   ;;  %v4872_v51 = vld [vmem:[%s6741_s1 + $0x248] sm:$0xff]  }
  0xa1   :  { %2428 = vmatmul.mubr.bf16.gmra.mrb[48].mxu1 %v4746_v52  ;;  %v5724_v52 = vld [vmem:[%s6741_s1 + $0x2c8] sm:$0xff]  }
  0xa2   :  { %2782 = vmatmul.mubr.bf16.gmra.mrb[48].mxu0 %v4747_v53  ;;  %2435 = vmatprep.mubr.bf16.mxu1 %v4750_v54  ;;  %v4832_v53 = vld [vmem:[%s6742_s0 + $0x210] ss:$52 sps:$4 sm:$0xff]   ;;  %v4833_v54 = vld [vmem:[%s6742_s0 + $0x220] ss:$52 sps:$4 sm:$0xff]  }
  0xa3   :  { %2789 = vmatprep.mubr.bf16.mxu0 %v4752_v55  ;;  %v4836_v55 = vld [vmem:[%s6742_s0 + $0x27c] ss:$52 sps:$4 sm:$0xff]  }
  0xa9   :  { %2436 = vmatmul.mubr.bf16.gmra.mrb[52].mxu1 %v4754_v56  ;;  %v4838_v56 = vld [vmem:[%s6742_s0 + $0x28c] ss:$52 sps:$4 sm:$0xff]  }
  0xaa   :  { %2790 = vmatmul.mubr.bf16.gmra.mrb[52].mxu0 %v4755_v57  ;;  %2443 = vmatprep.mubr.bf16.mxu1 %v4758_v58  ;;  %v4880_v57 = vld [vmem:[%s6741_s1 + $0x250] sm:$0xff]  }
  0xab   :  { %2797 = vmatprep.mubr.bf16.mxu0 %v4760_v59  ;;  %v5747_v58 = vld [vmem:[%s6741_s1 + $0x2d0] sm:$0xff]   ;;  %v4888_v59 = vld [vmem:[%s6741_s1 + $0x258] sm:$0xff]  }
  0xb1   :  { %2444 = vmatmul.mubr.bf16.gmra.mrb[56].mxu1 %v4762_v60  ;;  %v5758_v60 = vld [vmem:[%s6741_s1 + $0x2d8] sm:$0xff]  }
  0xb2   :  { %2798 = vmatmul.mubr.bf16.gmra.mrb[56].mxu0 %v4763_v61  ;;  %2451 = vmatprep.mubr.bf16.mxu1 %v4766_v62  ;;  %v4840_v61 = vld [vmem:[%s6742_s0 + $0x278] ss:$52 sps:$4 sm:$0xff]   ;;  %v4841_v62 = vld [vmem:[%s6742_s0 + $0x288] ss:$52 sps:$4 sm:$0xff]  }
  0xb3   :  { %2805 = vmatprep.mubr.bf16.mxu0 %v4768_v63  ;;  %v4842_v63 = vld [vmem:[%s6742_s0 + $0x2e4] ss:$52 sps:$4 sm:$0xff]  }
  0xb9   :  { %2452 = vmatmul.mubr.bf16.gmra.mrb[60].mxu1 %v4770_v1  ;;  %v4844_v1 = vld [vmem:[%s6742_s0 + $0x2f4] ss:$52 sps:$4 sm:$0xff]  }
  0xba   :  { %2806 = vmatmul.mubr.bf16.gmra.mrb[60].mxu0 %v4771_v2  ;;  %2459 = vmatprep.mubr.bf16.mxu1 %v4772_v3  ;;  %v4896_v2 = vld [vmem:[%s6741_s1 + $0x260] sm:$0xff]  }
  0xbb   :  { %2813 = vmatprep.mubr.bf16.mxu0 %v4775_v4  ;;  %v5781_v3 = vld [vmem:[%s6741_s1 + $0x2e0] sm:$0xff]   ;;  %v4904_v4 = vld [vmem:[%s6741_s1 + $0x268] sm:$0xff]  }
  0xc1   :  { %2460 = vmatmul.mubr.bf16.gmra.mrb[64].mxu1 %v4778_v5  ;;  %v5792_v5 = vld [vmem:[%s6741_s1 + $0x2e8] sm:$0xff]  }
  0xc2   :  { %2814 = vmatmul.mubr.bf16.gmra.mrb[64].mxu0 %v4779_v6  ;;  %2467 = vmatprep.mubr.bf16.mxu1 %v4780_v7  ;;  %v4848_v6 = vld [vmem:[%s6742_s0 + $0x2e0] ss:$52 sps:$4 sm:$0xff]   ;;  %v4849_v7 = vld [vmem:[%s6742_s0 + $0x2f0] ss:$52 sps:$4 sm:$0xff]  }
  0xc3   :  { %2821 = vmatprep.mubr.bf16.mxu0 %v4782_v8  ;;  %v4850_v8 = vld [vmem:[%s6742_s0 + $0x34c] ss:$52 sps:$4 sm:$0xff]  }
  0xc9   :  { %2468 = vmatmul.mubr.bf16.gmra.mrb[68].mxu1 %v4784_v9  ;;  %v4852_v9 = vld [vmem:[%s6742_s0 + $0x35c] ss:$52 sps:$4 sm:$0xff]  }
  0xca   :  { %2822 = vmatmul.mubr.bf16.gmra.mrb[68].mxu0 %v4786_v10  ;;  %2508 = vmatprep.mubr.bf16.mxu1 %v4791_v11  ;;  %v4916_v10 = vld [vmem:[%s6741_s1 + $0x270] sm:$0xff]  }
  0xcb   :  { %2862 = vmatprep.mubr.bf16.mxu0 %v4794_v12  ;;  %v5815_v11 = vld [vmem:[%s6741_s1 + $0x2f0] sm:$0xff]   ;;  %v4926_v12 = vld [vmem:[%s6741_s1 + $0x278] sm:$0xff]  }
  0xd1   :  { %2509 = vmatmul.mubr.bf16.vlgmr.msra.gmra.mrb[0].mxu1 %v4789_v13  ;;  %v5826_v13 = vld [vmem:[%s6741_s1 + $0x2f8] sm:$0xff]  }
  0xd2   :  { %2863 = vmatmul.mubr.bf16.vlgmr.msra.gmra.mrb[0].mxu0 %v4792_v14  ;;  %2516 = vmatprep.mubr.bf16.mxu1 %v4796_v15  ;;  %v4854_v14 = vld [vmem:[%s6742_s0 + $0x348] ss:$52 sps:$4 sm:$0xff]   ;;  %v5835_v15 = vld [vmem:[%s6741_s1 + $0x300] sm:$0xff]  }
  0xd3   :  { %3008 = vmatpush1.bf16.msra.mxu0 %v4795_v16  ;;  %2870 = vmatprep.mubr.bf16.mxu0 %v4798_v17  ;;  %v4855_v16 = vld [vmem:[%s6742_s0 + $0x358] ss:$52 sps:$4 sm:$0xff]   ;;  %v4858_v17 = vld [vmem:[%s6742_s0 + $0x3b4] ss:$52 sps:$4 sm:$0xff]  }
  0xd4   :  { %3009 = vmatprep.subr.bf16.mxu0 %v5059_v0  ;;  %4266 = vmatpush1.bf16.msra.mxu1 %v5578_v18 }
  0xd5   :  { %4251 = vmatprep.subr.bf16.mxu1 %v5059_v0 }
  0xd7   :  { %3010 = vmatpush1.bf16.msra.mxu0 %v4802_v19  ;;  %v4860_v19 = vld [vmem:[%s6742_s0 + $0x3c4] ss:$52 sps:$4 sm:$0xff]  }
  0xd8   :  { %3011 = vmatprep.subr.bf16.mxu0 %v5059_v0  ;;  %4267 = vmatpush1.bf16.msra.mxu1 %v5589_v21 }
  0xd9   :  { %2517 = vmatmul.mubr.bf16.gmra.mrb[4].mxu1 %v4800_v20  ;;  %4252 = vmatprep.subr.bf16.mxu1 %v5059_v0  ;;  %v4862_v20 = vld [vmem:[%s6742_s0 + $0x3b0] ss:$52 sps:$4 sm:$0xff]  }
  0xda   :  { %2871 = vmatmul.mubr.bf16.gmra.mrb[4].mxu0 %v4801_v22  ;;  %2524 = vmatprep.mubr.bf16.mxu1 %v4804_v23  ;;  %v4863_v22 = vld [vmem:[%s6742_s0 + $0x3c0] ss:$52 sps:$4 sm:$0xff]   ;;  %v4866_v23 = vld [vmem:[%s6742_s0 + $0x41c] ss:$52 sps:$4 sm:$0xff]  }
  0xdb   :  { %2878 = vmatprep.mubr.bf16.mxu0 %v4806_v24  ;;  %3012 = vmatpush1.bf16.msra.mxu0 %v4810_v25  ;;  %v4868_v24 = vld [vmem:[%s6742_s0 + $0x42c] ss:$52 sps:$4 sm:$0xff]  }
  0xdc   :  { %3013 = vmatprep.subr.bf16.mxu0 %v5059_v0  ;;  %4268 = vmatpush1.bf16.msra.mxu1 %v5611_v26  ;;  %v4870_v25 = vld [vmem:[%s6742_s0 + $0x418] ss:$52 sps:$4 sm:$0xff]  }
  0xdd   :  { %4253 = vmatprep.subr.bf16.mxu1 %v5059_v0 }
  0xdf   :  { %3014 = vmatpush1.bf16.msra.mxu0 %v4818_v28  ;;  %v4874_v28 = vld [vmem:[%s6742_s0 + $0x484] ss:$52 sps:$4 sm:$0xff]  }
  0xe0   :  { %3015 = vmatprep.subr.bf16.mxu0 %v5059_v0  ;;  %4269 = vmatpush1.bf16.msra.mxu1 %v5623_v29 }
  0xe1   :  { %2525 = vmatmul.mubr.bf16.gmra.mrb[8].mxu1 %v4808_v27  ;;  %4254 = vmatprep.subr.bf16.mxu1 %v5059_v0  ;;  %v4871_v27 = vld [vmem:[%s6742_s0 + $0x428] ss:$52 sps:$4 sm:$0xff]  }
  0xe2   :  { %2879 = vmatmul.mubr.bf16.gmra.mrb[8].mxu0 %v4809_v30  ;;  %2532 = vmatprep.mubr.bf16.mxu1 %v4812_v31  ;;  %v4876_v30 = vld [vmem:[%s6742_s0 + $0x494] ss:$52 sps:$4 sm:$0xff]  }
  0xe3   :  { %2886 = vmatprep.mubr.bf16.mxu0 %v4814_v32  ;;  %3016 = vmatpush1.bf16.msra.mxu0 %v4826_v33  ;;  %v4878_v31 = vld [vmem:[%s6742_s0 + $0x480] ss:$52 sps:$4 sm:$0xff]   ;;  %v4879_v32 = vld [vmem:[%s6742_s0 + $0x490] ss:$52 sps:$4 sm:$0xff]  }
  0xe4   :  { %3017 = vmatprep.subr.bf16.mxu0 %v5059_v0  ;;  %4270 = vmatpush1.bf16.msra.mxu1 %v5643_v34  ;;  %v4882_v33 = vld [vmem:[%s6742_s0 + $0x4ec] ss:$52 sps:$4 sm:$0xff]  }
  0xe5   :  { %4255 = vmatprep.subr.bf16.mxu1 %v5059_v0 }
  0xe7   :  { %3018 = vmatpush1.bf16.msra.mxu0 %v4834_v36  ;;  %v4886_v36 = vld [vmem:[%s6742_s0 + $0x4e8] ss:$52 sps:$4 sm:$0xff]  }
  0xe8   :  { %3019 = vmatprep.subr.bf16.mxu0 %v5059_v0  ;;  %4271 = vmatpush1.bf16.msra.mxu1 %v5657_v37 }
  0xe9   :  { %2533 = vmatmul.mubr.bf16.gmra.mrb[12].mxu1 %v4816_v35  ;;  %4256 = vmatprep.subr.bf16.mxu1 %v5059_v0  ;;  %v4884_v35 = vld [vmem:[%s6742_s0 + $0x4fc] ss:$52 sps:$4 sm:$0xff]  }
  0xea   :  { %2887 = vmatmul.mubr.bf16.gmra.mrb[12].mxu0 %v4817_v38  ;;  %2540 = vmatprep.mubr.bf16.mxu1 %v4820_v39  ;;  %v4887_v38 = vld [vmem:[%s6742_s0 + $0x4f8] ss:$52 sps:$4 sm:$0xff]   ;;  %v4890_v39 = vld [vmem:[%s6742_s0 + $0x554] ss:$52 sps:$4 sm:$0xff]  }
  0xeb   :  { %2894 = vmatprep.mubr.bf16.mxu0 %v4822_v40  ;;  %3020 = vmatpush1.bf16.msra.mxu0 %v4846_v41  ;;  %v4892_v40 = vld [vmem:[%s6742_s0 + $0x564] ss:$52 sps:$4 sm:$0xff]  }
  0xec   :  { %3021 = vmatprep.subr.bf16.mxu0 %v5059_v0  ;;  %4272 = vmatpush1.bf16.msra.mxu1 %v5679_v42  ;;  %v4894_v41 = vld [vmem:[%s6742_s0 + $0x550] ss:$52 sps:$4 sm:$0xff]  }
  0xed   :  { %4257 = vmatprep.subr.bf16.mxu1 %v5059_v0 }
  0xef   :  { %3022 = vmatpush1.bf16.msra.mxu0 %v4856_v43  ;;  %v4895_v43 = vld [vmem:[%s6742_s0 + $0x560] ss:$52 sps:$4 sm:$0xff]  }
  0xf0   :  { %3023 = vmatprep.subr.bf16.mxu0 %v5059_v0  ;;  %4273 = vmatpush1.bf16.msra.mxu1 %v5690_v44 }
  0xf1   :  { %2541 = vmatmul.mubr.bf16.gmra.mrb[16].mxu1 %v4824_v45  ;;  %4258 = vmatprep.subr.bf16.mxu1 %v5059_v0  ;;  %v4898_v45 = vld [vmem:[%s6742_s0 + $0x5bc] ss:$52 sps:$4 sm:$0xff]  }
  0xf2   :  { %2895 = vmatmul.mubr.bf16.gmra.mrb[16].mxu0 %v4825_v46  ;;  %2548 = vmatprep.mubr.bf16.mxu1 %v4828_v47  ;;  %v4900_v46 = vld [vmem:[%s6742_s0 + $0x5cc] ss:$52 sps:$4 sm:$0xff]  }
  0xf3   :  { %2902 = vmatprep.mubr.bf16.mxu0 %v4830_v48  ;;  %3024 = vmatpush1.bf16.msra.mxu0 %v4864_v49  ;;  %v4902_v47 = vld [vmem:[%s6742_s0 + $0x5b8] ss:$52 sps:$4 sm:$0xff]   ;;  %v4903_v48 = vld [vmem:[%s6742_s0 + $0x5c8] ss:$52 sps:$4 sm:$0xff]  }
  0xf4   :  { %3025 = vmatprep.subr.bf16.mxu0 %v5059_v0  ;;  %4274 = vmatpush1.bf16.msra.mxu1 %v5713_v50  ;;  %v4906_v49 = vld [vmem:[%s6742_s0 + $0x624] ss:$52 sps:$4 sm:$0xff]  }
  0xf5   :  { %4259 = vmatprep.subr.bf16.mxu1 %v5059_v0 }
  0xf7   :  { %3026 = vmatpush1.bf16.msra.mxu0 %v4872_v51  ;;  %v4908_v51 = vld [vmem:[%s6742_s0 + $0x634] ss:$52 sps:$4 sm:$0xff]  }
  0xf8   :  { %3027 = vmatprep.subr.bf16.mxu0 %v5059_v0  ;;  %4275 = vmatpush1.bf16.msra.mxu1 %v5724_v52 }
  0xf9   :  { %2549 = vmatmul.mubr.bf16.gmra.mrb[20].mxu1 %v4832_v53  ;;  %4260 = vmatprep.subr.bf16.mxu1 %v5059_v0  ;;  %v4910_v53 = vld [vmem:[%s6742_s0 + $0x620] ss:$52 sps:$4 sm:$0xff]  }
  0xfa   :  { %2903 = vmatmul.mubr.bf16.gmra.mrb[20].mxu0 %v4833_v54  ;;  %2556 = vmatprep.mubr.bf16.mxu1 %v4836_v55  ;;  %v4911_v54 = vld [vmem:[%s6742_s0 + $0x630] ss:$52 sps:$4 sm:$0xff]   ;;  %v4912_v55 = vld [vmem:[%s6742_s0 + $0x68c] ss:$52 sps:$4 sm:$0xff]  }
  0xfb   :  { %2910 = vmatprep.mubr.bf16.mxu0 %v4838_v56  ;;  %3028 = vmatpush1.bf16.msra.mxu0 %v4880_v57  ;;  %v4914_v56 = vld [vmem:[%s6742_s0 + $0x69c] ss:$52 sps:$4 sm:$0xff]  }
  0xfc   :  { %3029 = vmatprep.subr.bf16.mxu0 %v5059_v0  ;;  %4276 = vmatpush1.bf16.msra.mxu1 %v5747_v58  ;;  %v4918_v57 = vld [vmem:[%s6742_s0 + $0x688] ss:$52 sps:$4 sm:$0xff]  }
  0xfd   :  { %4261 = vmatprep.subr.bf16.mxu1 %v5059_v0 }
  0xff   :  { %3030 = vmatpush1.bf16.msra.mxu0 %v4888_v59  ;;  %v4919_v59 = vld [vmem:[%s6742_s0 + $0x698] ss:$52 sps:$4 sm:$0xff]  }
 0x100   :  { %3031 = vmatprep.subr.bf16.mxu0 %v5059_v0  ;;  %4277 = vmatpush1.bf16.msra.mxu1 %v5758_v60 }
 0x101   :  { %2557 = vmatmul.mubr.bf16.gmra.mrb[24].mxu1 %v4840_v61  ;;  %4262 = vmatprep.subr.bf16.mxu1 %v5059_v0  ;;  %v4920_v61 = vld [vmem:[%s6742_s0 + $0x6f4] ss:$52 sps:$4 sm:$0xff]  }
 0x102   :  { %2911 = vmatmul.mubr.bf16.gmra.mrb[24].mxu0 %v4841_v62  ;;  %2564 = vmatprep.mubr.bf16.mxu1 %v4842_v63  ;;  %v4922_v62 = vld [vmem:[%s6742_s0 + $0x704] ss:$52 sps:$4 sm:$0xff]  }
 0x103   :  { %2918 = vmatprep.mubr.bf16.mxu0 %v4844_v1  ;;  %3032 = vmatpush1.bf16.msra.mxu0 %v4896_v2  ;;  %v4924_v63 = vld [vmem:[%s6742_s0 + $0x6f0] ss:$52 sps:$4 sm:$0xff]   ;;  %v4925_v1 = vld [vmem:[%s6742_s0 + $0x700] ss:$52 sps:$4 sm:$0xff]  }
 0x104   :  { %3033 = vmatprep.subr.bf16.mxu0 %v5059_v0  ;;  %4278 = vmatpush1.bf16.msra.mxu1 %v5781_v3  ;;  %v4934_v2 = vld [vmem:[%s6742_s0 + $0x234] ss:$52 sps:$4 sm:$0xff]  }
 0x105   :  { %4263 = vmatprep.subr.bf16.mxu1 %v5059_v0 }
 0x107   :  { %3034 = vmatpush1.bf16.msra.mxu0 %v4904_v4  ;;  %v4931_v4 = vld [vmem:[%s6742_s0 + $0x24] ss:$52 sps:$4 sm:$0xff]  }
 0x108   :  { %3035 = vmatprep.subr.bf16.mxu0 %v5059_v0  ;;  %4279 = vmatpush1.bf16.msra.mxu1 %v5792_v5 }
 0x109   :  { %2565 = vmatmul.mubr.bf16.gmra.mrb[28].mxu1 %v4848_v6  ;;  %4264 = vmatprep.subr.bf16.mxu1 %v5059_v0  ;;  %v4932_v6 = vld [vmem:[%s6742_s0 + $0x230] ss:$52 sps:$4 sm:$0xff]  }
 0x10a   :  { %2919 = vmatmul.mubr.bf16.gmra.mrb[28].mxu0 %v4849_v7  ;;  %2572 = vmatprep.mubr.bf16.mxu1 %v4850_v8  ;;  %v4929_v7 = vld [vmem:[%s6742_s0 + $0x20] ss:$52 sps:$4 sm:$0xff]   ;;  %v4937_v8 = vld [vmem:[%s6742_s0 + $0x29c] ss:$52 sps:$4 sm:$0xff]  }
 0x10b   :  { %2926 = vmatprep.mubr.bf16.mxu0 %v4852_v9  ;;  %3036 = vmatpush1.bf16.msra.mxu0 %v4916_v10  ;;  %v4935_v9 = vld [vmem:[%s6742_s0 + $0x8c] ss:$52 sps:$4 sm:$0xff]  }
 0x10c   :  { %3037 = vmatprep.subr.bf16.mxu0 %v5059_v0  ;;  %4280 = vmatpush1.bf16.msra.mxu1 %v5815_v11  ;;  %v4960_v10 = vld [vmem:[%s6741_s1 + $0x308] sm:$0xff]  }
 0x10d   :  { %4265 = vmatprep.subr.bf16.mxu1 %v5059_v0 }
 0x10f   :  { %3038 = vmatpush1.bf16.msra.mxu0 %v4926_v12  ;;  %v4940_v12 = vld [vmem:[%s6742_s0 + $0x298] ss:$52 sps:$4 sm:$0xff]  }
 0x110   :  { %4281 = vmatpush1.bf16.msra.mxu1 %v5826_v13  ;;  %3184 = vmatprep.subr.bf16.mxu0 %v5059_v0 }
 0x111   :  { %2573 = vmatmul.mubr.bf16.gmra.mrb[32].mxu1 %v4854_v14  ;;  %4206 = vmatprep.subr.bf16.mxu1 %v5835_v15  ;;  %v4979_v14 = vld [vmem:[%s6741_s1 + $0x310] sm:$0xff]  }
 0x112   :  { %2927 = vmatmul.mubr.bf16.gmra.mrb[32].mxu0 %v4855_v16  ;;  %2580 = vmatprep.mubr.bf16.mxu1 %v4858_v17  ;;  %v4939_v16 = vld [vmem:[%s6742_s0 + $0x88] ss:$52 sps:$4 sm:$0xff]  }
 0x113   :  { %2934 = vmatprep.mubr.bf16.mxu0 %v4860_v19  ;;  %v5002_v17 = vld [vmem:[%s6741_s1 + $0x318] sm:$0xff]   ;;  %v4946_v19 = vld [vmem:[%s6742_s0 + $0xf0] ss:$52 sps:$4 sm:$0xff]  }
 0x119   :  { %2581 = vmatmul.mubr.bf16.gmra.mrb[36].mxu1 %v4862_v20  ;;  %v4950_v20 = vld [vmem:[%s6742_s0 + $0x36c] ss:$52 sps:$4 sm:$0xff]  }
 0x11a   :  { %2935 = vmatmul.mubr.bf16.gmra.mrb[36].mxu0 %v4863_v22  ;;  %2588 = vmatprep.mubr.bf16.mxu1 %v4866_v23  ;;  %v4953_v22 = vld [vmem:[%s6742_s0 + $0x368] ss:$52 sps:$4 sm:$0xff]   ;;  %v4952_v23 = vld [vmem:[%s6742_s0 + $0x158] ss:$52 sps:$4 sm:$0xff]  }
 0x11b   :  { %2942 = vmatprep.mubr.bf16.mxu0 %v4868_v24  ;;  %v4954_v24 = vld [vmem:[%s6742_s0 + $0x1c4] ss:$52 sps:$4 sm:$0xff]  }
 0x121   :  { %2589 = vmatmul.mubr.bf16.gmra.mrb[40].mxu1 %v4870_v25  ;;  %v4958_v25 = vld [vmem:[%s6742_s0 + $0x1c0] ss:$52 sps:$4 sm:$0xff]  }
 0x122   :  { %2943 = vmatmul.mubr.bf16.gmra.mrb[40].mxu0 %v4871_v27  ;;  %2596 = vmatprep.mubr.bf16.mxu1 %v4874_v28  ;;  %v4961_v27 = vld [vmem:[%s6742_s0 + $0x22c] ss:$52 sps:$4 sm:$0xff]   ;;  %v4965_v28 = vld [vmem:[%s6742_s0 + $0x228] ss:$52 sps:$4 sm:$0xff]  }
 0x123   :  { %2950 = vmatprep.mubr.bf16.mxu0 %v4876_v30  ;;  %v4967_v30 = vld [vmem:[%s6742_s0 + $0x294] ss:$52 sps:$4 sm:$0xff]  }
 0x129   :  { %2597 = vmatmul.mubr.bf16.gmra.mrb[44].mxu1 %v4878_v31  ;;  %v4971_v31 = vld [vmem:[%s6742_s0 + $0x290] ss:$52 sps:$4 sm:$0xff]  }
 0x12a   :  { %2951 = vmatmul.mubr.bf16.gmra.mrb[44].mxu0 %v4879_v32  ;;  %2604 = vmatprep.mubr.bf16.mxu1 %v4882_v33  ;;  %v4973_v32 = vld [vmem:[%s6742_s0 + $0x2fc] ss:$52 sps:$4 sm:$0xff]   ;;  %v4977_v33 = vld [vmem:[%s6742_s0 + $0x2f8] ss:$52 sps:$4 sm:$0xff]  }
 0x12b   :  { %2958 = vmatprep.mubr.bf16.mxu0 %v4884_v35  ;;  %v4980_v35 = vld [vmem:[%s6742_s0 + $0x364] ss:$52 sps:$4 sm:$0xff]  }
 0x131   :  { %2605 = vmatmul.mubr.bf16.gmra.mrb[48].mxu1 %v4886_v36  ;;  %v4984_v36 = vld [vmem:[%s6742_s0 + $0x360] ss:$52 sps:$4 sm:$0xff]  }
 0x132   :  { %2959 = vmatmul.mubr.bf16.gmra.mrb[48].mxu0 %v4887_v38  ;;  %2612 = vmatprep.mubr.bf16.mxu1 %v4890_v39  ;;  %v4986_v38 = vld [vmem:[%s6742_s0 + $0x3cc] ss:$52 sps:$4 sm:$0xff]  }
 0x133   :  { %2966 = vmatprep.mubr.bf16.mxu0 %v4892_v40  ;;  %v4991_v39 = vld [vmem:[%s6742_s0 + $0x5d8] ss:$52 sps:$4 sm:$0xff]  }
 0x139   :  { %2613 = vmatmul.mubr.bf16.gmra.mrb[52].mxu1 %v4894_v41  ;;  %v4990_v41 = vld [vmem:[%s6742_s0 + $0x3c8] ss:$52 sps:$4 sm:$0xff]  }
 0x13a   :  { %2967 = vmatmul.mubr.bf16.gmra.mrb[52].mxu0 %v4895_v43  ;;  %2620 = vmatprep.mubr.bf16.mxu1 %v4898_v45  ;;  %v4992_v45 = vld [vmem:[%s6742_s0 + $0x434] ss:$52 sps:$4 sm:$0xff]  }
 0x13b   :  { %2974 = vmatprep.mubr.bf16.mxu0 %v4900_v46 }
 0x141   :  { %2621 = vmatmul.mubr.bf16.gmra.mrb[56].mxu1 %v4902_v47 }
 0x142   :  { %2975 = vmatmul.mubr.bf16.gmra.mrb[56].mxu0 %v4903_v48  ;;  %2628 = vmatprep.mubr.bf16.mxu1 %v4906_v49  ;;  %v4997_v48 = vld [vmem:[%s6742_s0 + $0x640] ss:$52 sps:$4 sm:$0xff]  }
 0x143   :  { %2982 = vmatprep.mubr.bf16.mxu0 %v4908_v51  ;;  %v4996_v51 = vld [vmem:[%s6742_s0 + $0x430] ss:$52 sps:$4 sm:$0xff]  }
 0x149   :  { %2629 = vmatmul.mubr.bf16.gmra.mrb[60].mxu1 %v4910_v53  ;;  %v5000_v53 = vld [vmem:[%s6742_s0 + $0x6ac] ss:$52 sps:$4 sm:$0xff]  }
 0x14a   :  { %2983 = vmatmul.mubr.bf16.gmra.mrb[60].mxu0 %v4911_v54  ;;  %2636 = vmatprep.mubr.bf16.mxu1 %v4912_v55  ;;  %v4998_v55 = vld [vmem:[%s6742_s0 + $0x49c] ss:$52 sps:$4 sm:$0xff]  }
 0x14b   :  { %2990 = vmatprep.mubr.bf16.mxu0 %v4914_v56 }
 0x151   :  { %2637 = vmatmul.mubr.bf16.gmra.mrb[64].mxu1 %v4918_v57 }
 0x152   :  { %2991 = vmatmul.mubr.bf16.gmra.mrb[64].mxu0 %v4919_v59  ;;  %2644 = vmatprep.mubr.bf16.mxu1 %v4920_v61  ;;  %v5004_v59 = vld [vmem:[%s6742_s0 + $0x6a8] ss:$52 sps:$4 sm:$0xff]  }
 0x153   :  { %2998 = vmatprep.mubr.bf16.mxu0 %v4922_v62  ;;  %v5003_v62 = vld [vmem:[%s6742_s0 + $0x498] ss:$52 sps:$4 sm:$0xff]  }
 0x159   :  { %2645 = vmatmul.mubr.bf16.gmra.mrb[68].mxu1 %v4924_v63  ;;  %v5007_v63 = vld [vmem:[%s6742_s0 + $0x714] ss:$52 sps:$4 sm:$0xff]  }
 0x15a   :  { %2999 = vmatmul.mubr.bf16.gmra.mrb[68].mxu0 %v4925_v1  ;;  %3256 = vmatprep.mubr.bf16.mxu1 %v4934_v2  ;;  %v5005_v2 = vld [vmem:[%s6742_s0 + $0x504] ss:$52 sps:$4 sm:$0xff]  }
 0x15b   :  { %3039 = vmatprep.mubr.bf16.mxu0 %v4931_v4 }
 0x161   :  { %3257 = vmatmul.mubr.bf16.vlgmr.msra.gmra.mrb[72].mxu1 %v4932_v6 }
 0x162   :  { %3040 = vmatmul.mubr.bf16.vlgmr.msra.gmra.mrb[0].mxu0 %v4929_v7  ;;  %3264 = vmatprep.mubr.bf16.mxu1 %v4937_v8  ;;  %v5010_v7 = vld [vmem:[%s6742_s0 + $0x710] ss:$52 sps:$4 sm:$0xff]  }
 0x163   :  { %3185 = vmatpush1.bf16.msra.mxu0 %v5578_v18  ;;  %3047 = vmatprep.mubr.bf16.mxu0 %v4935_v9  ;;  %v4944_v18 = vld [vmem:[%s6742_s0 + $0x304] ss:$52 sps:$4 sm:$0xff]   ;;  %v5009_v9 = vld [vmem:[%s6742_s0 + $0x500] ss:$52 sps:$4 sm:$0xff]  }
 0x164   :  { %3186 = vmatprep.subr.bf16.mxu0 %v5059_v0  ;;  %4207 = vmatpush3.bf16.msra.mxu1 %v5835_v15  ;;  %v4942_v15 = vld [vmem:[%s6742_s0 + $0xf4] ss:$52 sps:$4 sm:$0xff]  }
 0x165   :  { %4208 = vmatprep.subr.bf16.mxu1 %v4960_v10 }
 0x167   :  { %3187 = vmatpush1.bf16.msra.mxu0 %v5589_v21  ;;  %v4947_v21 = vld [vmem:[%s6742_s0 + $0x300] ss:$52 sps:$4 sm:$0xff]  }
 0x168   :  { %3188 = vmatprep.subr.bf16.mxu0 %v5059_v0  ;;  %4209 = vmatpush3.bf16.msra.mxu1 %v4960_v10  ;;  %v5013_v10 = vld [vmem:[%s6742_s0 + $0x30] ss:$52 sps:$4 sm:$0xff]  }
 0x169   :  { %3265 = vmatmul.mubr.bf16.gmra.mrb[76].mxu1 %v4940_v12  ;;  %4210 = vmatprep.subr.bf16.mxu1 %v4979_v14 }
 0x16a   :  { %3048 = vmatmul.mubr.bf16.gmra.mrb[4].mxu0 %v4939_v16  ;;  %3272 = vmatprep.mubr.bf16.mxu1 %v4944_v18 }
 0x16b   :  { %3055 = vmatprep.mubr.bf16.mxu0 %v4942_v15  ;;  %3189 = vmatpush1.bf16.msra.mxu0 %v5611_v26  ;;  %v4948_v26 = vld [vmem:[%s6742_s0 + $0x15c] ss:$52 sps:$4 sm:$0xff]   ;;  %v5015_v15 = vld [vmem:[%s6742_s0 + $0x98] ss:$52 sps:$4 sm:$0xff]  }
 0x16c   :  { %3190 = vmatprep.subr.bf16.mxu0 %v5059_v0  ;;  %4211 = vmatpush3.bf16.msra.mxu1 %v4979_v14  ;;  %v5011_v14 = vld [vmem:[%s6742_s0 + $0x56c] ss:$52 sps:$4 sm:$0xff]  }
 0x16d   :  { %4212 = vmatprep.subr.bf16.mxu1 %v5002_v17 }
 0x16f   :  { %3191 = vmatpush1.bf16.msra.mxu0 %v5623_v29  ;;  %v4956_v29 = vld [vmem:[%s6742_s0 + $0x3d4] ss:$52 sps:$4 sm:$0xff]  }
 0x170   :  { %3192 = vmatprep.subr.bf16.mxu0 %v5059_v0  ;;  %4213 = vmatpush3.bf16.msra.mxu1 %v5002_v17 }
 0x171   :  { %3273 = vmatmul.mubr.bf16.gmra.mrb[80].mxu1 %v4947_v21  ;;  %v5014_v21 = vld [vmem:[%s6742_s0 + $0x568] ss:$52 sps:$4 sm:$0xff]  }
 0x172   :  { %3056 = vmatmul.mubr.bf16.gmra.mrb[8].mxu0 %v4946_v19  ;;  %3280 = vmatprep.mubr.bf16.mxu1 %v4950_v20  ;;  %v5018_v19 = vld [vmem:[%s6742_s0 + $0x100] ss:$52 sps:$4 sm:$0xff]  }
 0x173   :  { %3063 = vmatprep.mubr.bf16.mxu0 %v4948_v26  ;;  %3193 = vmatpush1.bf16.msra.mxu0 %v5643_v34  ;;  %v4959_v34 = vld [vmem:[%s6742_s0 + $0x3d0] ss:$52 sps:$4 sm:$0xff]   ;;  %v5016_v26 = vld [vmem:[%s6742_s0 + $0x5d4] ss:$52 sps:$4 sm:$0xff]  }
 0x174   :  { %3194 = vmatprep.subr.bf16.mxu0 %v5059_v0 }
 0x177   :  { %3195 = vmatpush1.bf16.msra.mxu0 %v5657_v37  ;;  %v4963_v37 = vld [vmem:[%s6742_s0 + $0x43c] ss:$52 sps:$4 sm:$0xff]  }
 0x178   :  { %3196 = vmatprep.subr.bf16.mxu0 %v5059_v0 }
 0x179   :  { %3281 = vmatmul.mubr.bf16.gmra.mrb[84].mxu1 %v4953_v22 }
 0x17a   :  { %3064 = vmatmul.mubr.bf16.gmra.mrb[12].mxu0 %v4952_v23  ;;  %3288 = vmatprep.mubr.bf16.mxu1 %v4956_v29  ;;  %v5020_v29 = vld [vmem:[%s6742_s0 + $0x168] ss:$52 sps:$4 sm:$0xff]  }
 0x17b   :  { %3071 = vmatprep.mubr.bf16.mxu0 %v4954_v24  ;;  %3197 = vmatpush1.bf16.msra.mxu0 %v5679_v42  ;;  %v4966_v42 = vld [vmem:[%s6742_s0 + $0x438] ss:$52 sps:$4 sm:$0xff]  }
 0x17c   :  { %3198 = vmatprep.subr.bf16.mxu0 %v5059_v0 }
 0x17f   :  { %3199 = vmatpush1.bf16.msra.mxu0 %v5690_v44  ;;  %v4969_v44 = vld [vmem:[%s6742_s0 + $0x4a4] ss:$52 sps:$4 sm:$0xff]  }
 0x180   :  { %3200 = vmatprep.subr.bf16.mxu0 %v5059_v0 }
 0x181   :  { %3289 = vmatmul.mubr.bf16.gmra.mrb[88].mxu1 %v4959_v34  ;;  %v5019_v34 = vld [vmem:[%s6742_s0 + $0x5d0] ss:$52 sps:$4 sm:$0xff]  }
 0x182   :  { %3072 = vmatmul.mubr.bf16.gmra.mrb[16].mxu0 %v4958_v25  ;;  %3296 = vmatprep.mubr.bf16.mxu1 %v4963_v37  ;;  %v5023_v25 = vld [vmem:[%s6742_s0 + $0x1d0] ss:$52 sps:$4 sm:$0xff]  }
 0x183   :  { %3079 = vmatprep.mubr.bf16.mxu0 %v4961_v27  ;;  %3201 = vmatpush1.bf16.msra.mxu0 %v5713_v50  ;;  %v4972_v50 = vld [vmem:[%s6742_s0 + $0x4a0] ss:$52 sps:$4 sm:$0xff]   ;;  %v5021_v27 = vld [vmem:[%s6742_s0 + $0x63c] ss:$52 sps:$4 sm:$0xff]  }
 0x184   :  { %3202 = vmatprep.subr.bf16.mxu0 %v5059_v0 }
 0x187   :  { %3203 = vmatpush1.bf16.msra.mxu0 %v5724_v52  ;;  %v4975_v52 = vld [vmem:[%s6742_s0 + $0x50c] ss:$52 sps:$4 sm:$0xff]  }
 0x188   :  { %3204 = vmatprep.subr.bf16.mxu0 %v5059_v0 }
 0x189   :  { %3297 = vmatmul.mubr.bf16.gmra.mrb[92].mxu1 %v4966_v42 }
 0x18a   :  { %3080 = vmatmul.mubr.bf16.gmra.mrb[20].mxu0 %v4965_v28  ;;  %3304 = vmatprep.mubr.bf16.mxu1 %v4969_v44  ;;  %v5025_v44 = vld [vmem:[%s6742_s0 + $0x238] ss:$52 sps:$4 sm:$0xff]  }
 0x18b   :  { %3087 = vmatprep.mubr.bf16.mxu0 %v4967_v30  ;;  %3205 = vmatpush1.bf16.msra.mxu0 %v5747_v58  ;;  %v4978_v58 = vld [vmem:[%s6742_s0 + $0x508] ss:$52 sps:$4 sm:$0xff]  }
 0x18c   :  { %3206 = vmatprep.subr.bf16.mxu0 %v5059_v0 }
 0x18f   :  { %3207 = vmatpush1.bf16.msra.mxu0 %v5758_v60  ;;  %v4982_v60 = vld [vmem:[%s6742_s0 + $0x574] ss:$52 sps:$4 sm:$0xff]  }
 0x190   :  { %3208 = vmatprep.subr.bf16.mxu0 %v5059_v0 }
 0x191   :  { %3305 = vmatmul.mubr.bf16.gmra.mrb[96].mxu1 %v4972_v50  ;;  %v5024_v50 = vld [vmem:[%s6742_s0 + $0x638] ss:$52 sps:$4 sm:$0xff]  }
 0x192   :  { %3088 = vmatmul.mubr.bf16.gmra.mrb[24].mxu0 %v4971_v31  ;;  %3312 = vmatprep.mubr.bf16.mxu1 %v4975_v52  ;;  %v5028_v31 = vld [vmem:[%s6742_s0 + $0x2a0] ss:$52 sps:$4 sm:$0xff]  }
 0x193   :  { %3095 = vmatprep.mubr.bf16.mxu0 %v4973_v32  ;;  %3209 = vmatpush1.bf16.msra.mxu0 %v5781_v3  ;;  %v4985_v3 = vld [vmem:[%s6742_s0 + $0x570] ss:$52 sps:$4 sm:$0xff]  }
 0x194   :  { %3210 = vmatprep.subr.bf16.mxu0 %v5059_v0  ;;  %v5026_v32 = vld [vmem:[%s6742_s0 + $0x6a4] ss:$52 sps:$4 sm:$0xff]  }
 0x197   :  { %3211 = vmatpush1.bf16.msra.mxu0 %v5792_v5  ;;  %v4988_v5 = vld [vmem:[%s6742_s0 + $0x5dc] ss:$52 sps:$4 sm:$0xff]  }
 0x198   :  { %3212 = vmatprep.subr.bf16.mxu0 %v5059_v0 }
 0x199   :  { %3313 = vmatmul.mubr.bf16.gmra.mrb[100].mxu1 %v4978_v58 }
 0x19a   :  { %3096 = vmatmul.mubr.bf16.gmra.mrb[28].mxu0 %v4977_v33  ;;  %3320 = vmatprep.mubr.bf16.mxu1 %v4982_v60  ;;  %v5030_v60 = vld [vmem:[%s6742_s0 + $0x308] ss:$52 sps:$4 sm:$0xff]  }
 0x19b   :  { %3103 = vmatprep.mubr.bf16.mxu0 %v4980_v35  ;;  %3213 = vmatpush1.bf16.msra.mxu0 %v5815_v11 }
 0x19c   :  { %3214 = vmatprep.subr.bf16.mxu0 %v5059_v0 }
 0x19f   :  { %3215 = vmatpush1.bf16.msra.mxu0 %v5826_v13  ;;  %v4994_v13 = vld [vmem:[%s6742_s0 + $0x644] ss:$52 sps:$4 sm:$0xff]  }
 0x1a1   :  { %3321 = vmatmul.mubr.bf16.gmra.mrb[104].mxu1 %v4985_v3  ;;  %v5029_v3 = vld [vmem:[%s6742_s0 + $0x6a0] ss:$52 sps:$4 sm:$0xff]  }
 0x1a2   :  { %3104 = vmatmul.mubr.bf16.gmra.mrb[32].mxu0 %v4984_v36  ;;  %3328 = vmatprep.mubr.bf16.mxu1 %v4988_v5  ;;  %v5033_v36 = vld [vmem:[%s6742_s0 + $0x370] ss:$52 sps:$4 sm:$0xff]  }
 0x1a3   :  { %3111 = vmatprep.mubr.bf16.mxu0 %v4986_v38  ;;  %v5031_v38 = vld [vmem:[%s6742_s0 + $0x70c] ss:$52 sps:$4 sm:$0xff]  }
 0x1a4   :  { %v6106_v0 = vpop.f32.mrb[0].mxu1 }
 0x1a5   :  { %v2512_v11 = vpop.f32.mrb[1].mxu1 }
 0x1a6   :  { %v6111_v40 = vpop.f32.mrb[2].mxu1 }
 0x1a7   :  { %v2515_v43 = vpop.f32.mrb[3].mxu1 }
 0x1a8   :  { %v5034_v43 = vld [vmem:[%s6742_s0 + $0x708] ss:$52 sps:$4 sm:$0xff]  }
 0x1a9   :  { %3329 = vmatmul.mubr.bf16.gmra.mrb[108].mxu1 %v4991_v39 }
 0x1aa   :  { %3112 = vmatmul.mubr.bf16.gmra.mrb[36].mxu0 %v4990_v41  ;;  %3336 = vmatprep.mubr.bf16.mxu1 %v4994_v13  ;;  %v5035_v41 = vld [vmem:[%s6742_s0 + $0x3d8] ss:$52 sps:$4 sm:$0xff]  }
 0x1ab   :  { %3119 = vmatprep.mubr.bf16.mxu0 %v4992_v45  ;;  %v5039_v45 = vld [vmem:[%s6742_s0 + $0x440] ss:$52 sps:$4 sm:$0xff]  }
 0x1ac   :  { %v6122_v46 = vpop.f32.mrb[4].mxu1 }
 0x1ad   :  { %v2520_v47 = vpop.f32.mrb[5].mxu1 }
 0x1ae   :  { %v6127_v49 = vpop.f32.mrb[6].mxu1 }
 0x1af   :  { %v2523_v54 = vpop.f32.mrb[7].mxu1 }
 0x1b0   :  { %v5040_v54 = vld [vmem:[%s6742_s0 + $0x4a8] ss:$52 sps:$4 sm:$0xff]  }
 0x1b1   :  { %3337 = vmatmul.mubr.bf16.gmra.mrb[112].mxu1 %v4997_v48  ;;  %v5038_v48 = vld [vmem:[%s6742_s0 + $0x2c] ss:$52 sps:$4 sm:$0xff]  }
 0x1b2   :  { %3120 = vmatmul.mubr.bf16.gmra.mrb[40].mxu0 %v4996_v51  ;;  %3344 = vmatprep.mubr.bf16.mxu1 %v5000_v53 }
 0x1b3   :  { %3127 = vmatprep.mubr.bf16.mxu0 %v4998_v55 }
 0x1b4   :  { %v6138_v56 = vpop.f32.mrb[8].mxu1 }
 0x1b5   :  { %v2528_v57 = vpop.f32.mrb[9].mxu1 }
 0x1b6   :  { %v6143_v61 = vpop.f32.mrb[10].mxu1  ;;  %v5036_v57 = vld [vmem:[%s6742_s0 + $0x28] ss:$52 sps:$4 sm:$0xff]  }
 0x1b7   :  { %v2531_v1 = vpop.f32.mrb[11].mxu1 }
 0x1b9   :  { %3345 = vmatmul.mubr.bf16.gmra.mrb[116].mxu1 %v5004_v59  ;;  %v5043_v59 = vld [vmem:[%s6742_s0 + $0x510] ss:$52 sps:$4 sm:$0xff]  }
 0x1ba   :  { %3128 = vmatmul.mubr.bf16.gmra.mrb[44].mxu0 %v5003_v62  ;;  %3352 = vmatprep.mubr.bf16.mxu1 %v5007_v63  ;;  %v5041_v63 = vld [vmem:[%s6742_s0 + $0x94] ss:$52 sps:$4 sm:$0xff]  }
 0x1bb   :  { %3135 = vmatprep.mubr.bf16.mxu0 %v5005_v2 }
 0x1bc   :  { %v6154_v4 = vpop.f32.mrb[12].mxu1 }
 0x1bd   :  { %v2536_v6 = vpop.f32.mrb[13].mxu1 }
 0x1be   :  { %v6159_v8 = vpop.f32.mrb[14].mxu1  ;;  %v5045_v6 = vld [vmem:[%s6742_s0 + $0x578] ss:$52 sps:$4 sm:$0xff]  }
 0x1bf   :  { %v2539_v12 = vpop.f32.mrb[15].mxu1 }
 0x1c1   :  { %3353 = vmatmul.mubr.bf16.gmra.mrb[120].mxu1 %v5010_v7 }
 0x1c2   :  { %3136 = vmatmul.mubr.bf16.gmra.mrb[48].mxu0 %v5009_v9  ;;  %4214 = vmatprep.mubr.msk.bf16.mxu1 %vm2244_vm0, %v5013_v10  ;;  %v5044_v9 = vld [vmem:[%s6742_s0 + $0x90] ss:$52 sps:$4 sm:$0xff]   ;;  %v5048_v10 = vld [vmem:[%s6742_s0 + $0x5e0] ss:$52 sps:$4 sm:$0xff]  }
 0x1c3   :  { %3143 = vmatprep.mubr.bf16.mxu0 %v5011_v14  ;;  %v5046_v14 = vld [vmem:[%s6742_s0 + $0xfc] ss:$52 sps:$4 sm:$0xff]  }
 0x1c4   :  { %v6171_v16 = vpop.f32.mrb[16].mxu1 }
 0x1c5   :  { %6745 = vst [vmem:[#allocation2_spill] sm:$0xff] %v6171_v16  ;;  %v2544_v18 = vpop.f32.mrb[17].mxu1 }
 0x1c6   :  { %v6176_v17 = vpop.f32.mrb[18].mxu1 }
 0x1c7   :  { %6746 = vst [vmem:[#allocation3_spill] sm:$0xff] %v6176_v17  ;;  %v2547_v20 = vpop.f32.mrb[19].mxu1 }
 0x1c8   :  { %v5049_v20 = vld [vmem:[%s6742_s0 + $0xf8] ss:$52 sps:$4 sm:$0xff]  }
 0x1c9   :  { %4215 = vmatmul.mubr.msk.bf16.vlgmr.msra.gmra.mrb[124].mxu1 %vm2244_vm0, %v5015_v15 }
 0x1ca   :  { %3144 = vmatmul.mubr.bf16.gmra.mrb[52].mxu0 %v5014_v21  ;;  %4218 = vmatprep.mubr.msk.bf16.mxu1 %vm2244_vm0, %v5018_v19  ;;  %v5050_v21 = vld [vmem:[%s6742_s0 + $0x648] ss:$52 sps:$4 sm:$0xff]  }
 0x1cb   :  { %3151 = vmatprep.mubr.bf16.mxu0 %v5016_v26  ;;  %v5053_v26 = vld [vmem:[%s6742_s0 + $0x6b0] ss:$52 sps:$4 sm:$0xff]  }
 0x1cc   :  { %v6189_v22 = vpop.f32.mrb[20].mxu1 }
 0x1cd   :  { %v2552_v23 = vpop.f32.mrb[21].mxu1 }
 0x1ce   :  { %v6194_v24 = vpop.f32.mrb[22].mxu1 }
 0x1cf   :  { %v2555_v37 = vpop.f32.mrb[23].mxu1 }
 0x1d0   :  { %v5055_v37 = vld [vmem:[%s6742_s0 + $0x718] ss:$52 sps:$4 sm:$0xff]  }
 0x1d1   :  { %4219 = vmatmul.mubr.msk.bf16.gmra.mrb[128].mxu1 %vm2244_vm0, %v5020_v29  ;;  %v5051_v29 = vld [vmem:[%s6742_s0 + $0x164] ss:$52 sps:$4 sm:$0xff]  }
 0x1d2   :  { %3152 = vmatmul.mubr.bf16.gmra.mrb[56].mxu0 %v5019_v34  ;;  %4222 = vmatprep.mubr.msk.bf16.mxu1 %vm2244_vm0, %v5023_v25 }
 0x1d3   :  { %3159 = vmatprep.mubr.bf16.mxu0 %v5021_v27 }
 0x1d4   :  { %v6207_v42 = vpop.f32.mrb[24].mxu1 }
 0x1d5   :  { %v2560_v28 = vpop.f32.mrb[25].mxu1 }
 0x1d6   :  { %v6212_v30 = vpop.f32.mrb[26].mxu1  ;;  %v5054_v28 = vld [vmem:[%s6742_s0 + $0x160] ss:$52 sps:$4 sm:$0xff]  }
 0x1d7   :  { %v2563_v52 = vpop.f32.mrb[27].mxu1 }
 0x1d9   :  { %4223 = vmatmul.mubr.msk.bf16.gmra.mrb[132].mxu1 %vm2244_vm0, %v5025_v44 }
 0x1da   :  { %3160 = vmatmul.mubr.bf16.gmra.mrb[60].mxu0 %v5024_v50  ;;  %4226 = vmatprep.mubr.msk.bf16.mxu1 %vm2244_vm0, %v5028_v31  ;;  %v5056_v50 = vld [vmem:[%s6742_s0 + $0x1cc] ss:$52 sps:$4 sm:$0xff]  }
 0x1db   :  { %3167 = vmatprep.mubr.bf16.mxu0 %v5026_v32 }
 0x1dc   :  { %v6225_v58 = vpop.f32.mrb[28].mxu1 }
 0x1dd   :  { %v2568_v33 = vpop.f32.mrb[29].mxu1 }
 0x1de   :  { %v6230_v35 = vpop.f32.mrb[30].mxu1  ;;  %v5058_v33 = vld [vmem:[%s6742_s0 + $0x1c8] ss:$52 sps:$4 sm:$0xff]  }
 0x1df   :  { %v2571_v5 = vpop.f32.mrb[31].mxu1 }
 0x1e1   :  { %4227 = vmatmul.mubr.msk.bf16.gmra.mrb[136].mxu1 %vm2244_vm0, %v5030_v60 }
 0x1e2   :  { %3168 = vmatmul.mubr.bf16.gmra.mrb[64].mxu0 %v5029_v3  ;;  %4230 = vmatprep.mubr.msk.bf16.mxu1 %vm2244_vm0, %v5033_v36 }
 0x1e3   :  { %3175 = vmatprep.mubr.bf16.mxu0 %v5031_v38 }
 0x1e4   :  { %v6243_v11 = vpop.f32.mrb[32].mxu1 }
 0x1e5   :  { %v2576_v39 = vpop.f32.mrb[33].mxu1 }
 0x1e6   :  { %v6248_v13 = vpop.f32.mrb[34].mxu1 }
 0x1e7   :  { %v2579_v47 = vpop.f32.mrb[35].mxu1 }
 0x1e9   :  { %4231 = vmatmul.mubr.msk.bf16.gmra.mrb[140].mxu1 %vm2244_vm0, %v5035_v41 }
 0x1ea   :  { %3176 = vmatmul.mubr.bf16.gmra.mrb[68].mxu0 %v5034_v43  ;;  %4234 = vmatprep.mubr.msk.bf16.mxu1 %vm2244_vm0, %v5039_v45 }
 0x1eb   :  { %3216 = vmatprep.mubr.bf16.mxu0 %v5038_v48 }
 0x1ec   :  { %v6261_v51 = vpop.f32.mrb[36].mxu1 }
 0x1ed   :  { %v2584_v53 = vpop.f32.mrb[37].mxu1 }
 0x1ee   :  { %v6266_v55 = vpop.f32.mrb[38].mxu1 }
 0x1ef   :  { %v2587_v62 = vpop.f32.mrb[39].mxu1 }
 0x1f1   :  { %4235 = vmatmul.mubr.msk.bf16.gmra.mrb[144].mxu1 %vm2244_vm0, %v5040_v54 }
 0x1f2   :  { %3217 = vmatmul.mubr.bf16.vlgmr.msra.gmra.mrb[0].mxu0 %v5036_v57  ;;  %4238 = vmatprep.mubr.msk.bf16.mxu1 %vm2244_vm0, %v5043_v59 }
 0x1f3   :  { %3224 = vmatprep.mubr.bf16.mxu0 %v5041_v63 }
 0x1f4   :  { %v6279_v1 = vpop.f32.mrb[40].mxu1 }
 0x1f5   :  { %v2592_v2 = vpop.f32.mrb[41].mxu1 }
 0x1f6   :  { %v6284_v7 = vpop.f32.mrb[42].mxu1 }
 0x1f7   :  { %v2595_v12 = vpop.f32.mrb[43].mxu1 }
 0x1f9   :  { %4239 = vmatmul.mubr.msk.bf16.gmra.mrb[148].mxu1 %vm2244_vm0, %v5045_v6 }
 0x1fa   :  { %3225 = vmatmul.mubr.bf16.gmra.mrb[4].mxu0 %v5044_v9  ;;  %4242 = vmatprep.mubr.msk.bf16.mxu1 %vm2244_vm0, %v5048_v10 }
 0x1fb   :  { %3232 = vmatprep.mubr.bf16.mxu0 %v5046_v14 }
 0x1fc   :  { %v6297_v18 = vpop.f32.mrb[44].mxu1 }
 0x1fd   :  { %v2600_v15 = vpop.f32.mrb[45].mxu1 }
 0x1fe   :  { %v6302_v19 = vpop.f32.mrb[46].mxu1 }
 0x1ff   :  { %v2603_v23 = vpop.f32.mrb[47].mxu1 }
 0x201   :  { %4243 = vmatmul.mubr.msk.bf16.gmra.mrb[152].mxu1 %vm2244_vm0, %v5050_v21 }
 0x202   :  { %3233 = vmatmul.mubr.bf16.gmra.mrb[8].mxu0 %v5049_v20  ;;  %4246 = vmatprep.mubr.msk.bf16.mxu1 %vm2244_vm0, %v5053_v26 }
 0x203   :  { %3240 = vmatprep.mubr.bf16.mxu0 %v5051_v29 }
 0x204   :  { %v6315_v34 = vpop.f32.mrb[48].mxu1 }
 0x205   :  { %v2608_v25 = vpop.f32.mrb[49].mxu1 }
 0x206   :  { %v6320_v27 = vpop.f32.mrb[50].mxu1 }
 0x207   :  { %v2611_v44 = vpop.f32.mrb[51].mxu1 }
 0x209   :  { %4247 = vmatmul.mubr.msk.bf16.gmra.mrb[156].mxu1 %vm2244_vm0, %v5055_v37 }
 0x20a   :  { %3241 = vmatmul.mubr.bf16.gmra.mrb[12].mxu0 %v5054_v28 }
 0x20b   :  { %3248 = vmatprep.mubr.bf16.mxu0 %v5056_v50 }
 0x20c   :  { %v6329_v31 = vpop.f32.mrb[52].mxu1 }
 0x20d   :  { %v2616_v52 = vpop.f32.mrb[53].mxu1 }
 0x20e   :  { %v6331_v32 = vpop.f32.mrb[54].mxu1 }
 0x20f   :  { %v2619_v60 = vpop.f32.mrb[55].mxu1 }
 0x212   :  { %3249 = vmatmul.mubr.bf16.gmra.mrb[16].mxu0 %v5058_v33 }
 0x214   :  { %v6336_v3 = vpop.f32.mrb[56].mxu1 }
 0x215   :  { %v2624_v36 = vpop.f32.mrb[57].mxu1 }
 0x216   :  { %v6338_v5 = vpop.f32.mrb[58].mxu1  ;;  %v6363_v36 = vld [vmem:[%s6743_s2] ss:$0 sm:$0xff] }
 0x217   :  { %v2627_v38 = vpop.f32.mrb[59].mxu1 }
 0x218   :  { %v4302_v38 = vadd.f32 %v6363_v36, %v6189_v22  ;;  %v4308_v22 = vadd.f32 %v6363_v36, %v6207_v42  ;;  %v4314_v42 = vadd.f32 %v6363_v36, %v6225_v58  ;;  %v4320_v58 = vadd.f32 %v6363_v36, %v6243_v11 }
 0x21c   :  { %v6340_v39 = vpop.f32.mrb[60].mxu1 }
 0x21d   :  { %v2632_v41 = vpop.f32.mrb[61].mxu1 }
 0x21e   :  { %v6342_v43 = vpop.f32.mrb[62].mxu1 }
 0x21f   :  { %v2635_v45 = vpop.f32.mrb[63].mxu1 }
 0x224   :  { %v6344_v47 = vpop.f32.mrb[64].mxu1 }
 0x225   :  { %v2640_v48 = vpop.f32.mrb[65].mxu1 }
 0x226   :  { %v6346_v53 = vpop.f32.mrb[66].mxu1 }
 0x227   :  { %v2643_v54 = vpop.f32.mrb[67].mxu1 }
 0x228   :  { %v4305_v54 = vadd.f32 %v6363_v36, %v6194_v24  ;;  %v4311_v24 = vadd.f32 %v6363_v36, %v6212_v30  ;;  %v4317_v30 = vadd.f32 %v6363_v36, %v6230_v35  ;;  %v4323_v35 = vadd.f32 %v6363_v36, %v6248_v13 }
 0x22c   :  { %v6348_v57 = vpop.f32.mrb[68].mxu1 }
 0x22d   :  { %v2648_v59 = vpop.f32.mrb[69].mxu1 }
 0x22e   :  { %v6350_v62 = vpop.f32.mrb[70].mxu1 }
 0x22f   :  { %v2651_v63 = vpop.f32.mrb[71].mxu1 }
 0x234   :  { %v3258_v2 = vpop.f32.mrb[72].mxu1 }
 0x235   :  { %v3260_v6 = vpop.f32.mrb[73].mxu1 }
 0x236   :  { %v3261_v9 = vpop.f32.mrb[74].mxu1 }
 0x237   :  { %v3263_v10 = vpop.f32.mrb[75].mxu1 }
 0x23c   :  { %v3266_v12 = vpop.f32.mrb[76].mxu1 }
 0x23d   :  { %v3268_v14 = vpop.f32.mrb[77].mxu1 }
 0x23e   :  { %v3269_v15 = vpop.f32.mrb[78].mxu1 }
 0x23f   :  { %v3271_v21 = vpop.f32.mrb[79].mxu1 }
 0x244   :  { %v3274_v20 = vpop.f32.mrb[80].mxu1 }
 0x245   :  { %v3276_v26 = vpop.f32.mrb[81].mxu1 }
 0x246   :  { %v3277_v23 = vpop.f32.mrb[82].mxu1 }
 0x247   :  { %v3279_v29 = vpop.f32.mrb[83].mxu1 }
 0x24c   :  { %v6352_v25 = vpop.f32.mrb[84].mxu1 }
 0x24d   :  { %v3284_v37 = vpop.f32.mrb[85].mxu1 }
 0x24e   :  { %v6354_v28 = vpop.f32.mrb[86].mxu1 }
 0x24f   :  { %v3287_v44 = vpop.f32.mrb[87].mxu1 }
 0x254   :  { %v6356_v50 = vpop.f32.mrb[88].mxu1 }
 0x255   :  { %v3292_v52 = vpop.f32.mrb[89].mxu1 }
 0x256   :  { %v6358_v33 = vpop.f32.mrb[90].mxu1 }
 0x257   :  { %v3295_v60 = vpop.f32.mrb[91].mxu1 }
 0x25c   :  { %v6367_v41 = vpop.f32.mrb[92].mxu1 }
 0x25d   :  { %v3081_v45 = vpop.f32.mrb[20].mxu0  ;;  %v3300_v48 = vpop.f32.mrb[93].mxu1 }
 0x25e   :  { %v4303_v59 = vadd.f32 %v4302_v38, %v3081_v45  ;;  %v3083_v63 = vpop.f32.mrb[21].mxu0  ;;  %v6371_v6 = vpop.f32.mrb[94].mxu1 }
 0x25f   :  { %v3084_v10 = vpop.f32.mrb[22].mxu0  ;;  %v3303_v14 = vpop.f32.mrb[95].mxu1 }
 0x260   :  { %v4306_v21 = vadd.f32 %v4305_v54, %v3084_v10  ;;  %v3086_v26 = vpop.f32.mrb[23].mxu0  ;;  %v6373_v29 = vadd.f32 %v4303_v59, %v3258_v2 }
 0x262   :  { %v6375_v37 = vadd.f32 %v4306_v21, %v3261_v9 }
 0x264   :  { %v6379_v44 = vpop.f32.mrb[96].mxu1 }
 0x265   :  { %v3089_v52 = vpop.f32.mrb[24].mxu0  ;;  %v3308_v60 = vpop.f32.mrb[97].mxu1 }
 0x266   :  { %v4309_v38 = vadd.f32 %v4308_v22, %v3089_v52  ;;  %v3091_v45 = vpop.f32.mrb[25].mxu0  ;;  %v6383_v48 = vpop.f32.mrb[98].mxu1 }
 0x267   :  { %v3092_v54 = vpop.f32.mrb[26].mxu0  ;;  %v3311_v63 = vpop.f32.mrb[99].mxu1 }
 0x268   :  { %v4312_v2 = vadd.f32 %v4311_v24, %v3092_v54  ;;  %v3094_v59 = vpop.f32.mrb[27].mxu0  ;;  %v6385_v9 = vadd.f32 %v4309_v38, %v3266_v12 }
 0x26a   :  { %v6387_v10 = vadd.f32 %v4312_v2, %v3269_v15 }
 0x26c   :  { %v6391_v14 = vpop.f32.mrb[100].mxu1 }
 0x26d   :  { %v3097_v21 = vpop.f32.mrb[28].mxu0  ;;  %v3316_v26 = vpop.f32.mrb[101].mxu1 }
 0x26e   :  { %v4315_v22 = vadd.f32 %v4314_v42, %v3097_v21  ;;  %v3099_v52 = vpop.f32.mrb[29].mxu0  ;;  %v6395_v60 = vpop.f32.mrb[102].mxu1 }
 0x26f   :  { %v3100_v24 = vpop.f32.mrb[30].mxu0  ;;  %v3319_v45 = vpop.f32.mrb[103].mxu1 }
 0x270   :  { %v4318_v12 = vadd.f32 %v4317_v30, %v3100_v24  ;;  %v3102_v38 = vpop.f32.mrb[31].mxu0  ;;  %v6397_v15 = vadd.f32 %v4315_v22, %v3274_v20  ;;  %v4326_v24 = vadd.f32 %v6363_v36, %v6261_v51 }
 0x271   :  { %v4329_v38 = vadd.f32 %v6363_v36, %v6266_v55 }
 0x272   :  { %v6399_v54 = vadd.f32 %v4318_v12, %v3277_v23 }
 0x274   :  { %v6403_v63 = vpop.f32.mrb[104].mxu1 }
 0x275   :  { %v3105_v2 = vpop.f32.mrb[32].mxu0  ;;  %v3324_v59 = vpop.f32.mrb[105].mxu1 }
 0x276   :  { %v4321_v42 = vadd.f32 %v4320_v58, %v3105_v2  ;;  %v3107_v21 = vpop.f32.mrb[33].mxu0  ;;  %v6407_v26 = vpop.f32.mrb[106].mxu1 }
 0x277   :  { %v3108_v30 = vpop.f32.mrb[34].mxu0  ;;  %v3327_v52 = vpop.f32.mrb[107].mxu1 }
 0x278   :  { %v4324_v20 = vadd.f32 %v4323_v35, %v3108_v30  ;;  %v3110_v22 = vpop.f32.mrb[35].mxu0  ;;  %v6410_v23 = vadd.f32 %v4321_v42, %v6352_v25  ;;  %v4332_v30 = vadd.f32 %v6363_v36, %v6279_v1 }
 0x279   :  { %v4335_v22 = vadd.f32 %v6363_v36, %v6284_v7 }
 0x27a   :  { %v6413_v11 = vadd.f32 %v4324_v20, %v6354_v28 }
 0x27c   :  { %v6417_v45 = vpop.f32.mrb[108].mxu1 }
 0x27d   :  { %v3113_v13 = vpop.f32.mrb[36].mxu0  ;;  %v3332_v12 = vpop.f32.mrb[109].mxu1 }
 0x27e   :  { %v4327_v58 = vadd.f32 %v4326_v24, %v3113_v13  ;;  %v3115_v2 = vpop.f32.mrb[37].mxu0  ;;  %v6421_v59 = vpop.f32.mrb[110].mxu1 }
 0x27f   :  { %v3116_v35 = vpop.f32.mrb[38].mxu0  ;;  %v3335_v25 = vpop.f32.mrb[111].mxu1 }
 0x280   :  { %v4330_v42 = vadd.f32 %v4329_v38, %v3116_v35  ;;  %v3118_v21 = vpop.f32.mrb[39].mxu0  ;;  %v6424_v28 = vadd.f32 %v4327_v58, %v6356_v50  ;;  %v4338_v35 = vadd.f32 %v6363_v36, %v6297_v18 }
 0x281   :  { %v4341_v21 = vadd.f32 %v6363_v36, %v6302_v19 }
 0x282   :  { %v6427_v51 = vadd.f32 %v4330_v42, %v6358_v33 }
 0x284   :  { %v6431_v52 = vpop.f32.mrb[112].mxu1 }
 0x285   :  { %v3121_v55 = vpop.f32.mrb[40].mxu0  ;;  %v3340_v20 = vpop.f32.mrb[113].mxu1 }
 0x286   :  { %v4333_v24 = vadd.f32 %v4332_v30, %v3121_v55  ;;  %v3123_v13 = vpop.f32.mrb[41].mxu0  ;;  %v6435_v12 = vpop.f32.mrb[114].mxu1 }
 0x287   :  { %v3124_v38 = vpop.f32.mrb[42].mxu0  ;;  %v3343_v50 = vpop.f32.mrb[115].mxu1 }
 0x288   :  { %v4336_v58 = vadd.f32 %v4335_v22, %v3124_v38  ;;  %v3126_v2 = vpop.f32.mrb[43].mxu0  ;;  %v6438_v33 = vadd.f32 %v4333_v24, %v6367_v41  ;;  %v4344_v38 = vadd.f32 %v6363_v36, %v6315_v34 }
 0x289   :  { %v4347_v2 = vadd.f32 %v6363_v36, %v6320_v27 }
 0x28a   :  { %v6441_v1 = vadd.f32 %v4336_v58, %v6371_v6 }
 0x28c   :  { %v6445_v25 = vpop.f32.mrb[116].mxu1 }
 0x28d   :  { %v3129_v7 = vpop.f32.mrb[44].mxu0  ;;  %v3348_v42 = vpop.f32.mrb[117].mxu1 }
 0x28e   :  { %v4339_v30 = vadd.f32 %v4338_v35, %v3129_v7  ;;  %v3131_v55 = vpop.f32.mrb[45].mxu0  ;;  %v6449_v20 = vpop.f32.mrb[118].mxu1 }
 0x28f   :  { %v3132_v22 = vpop.f32.mrb[46].mxu0  ;;  %v3351_v41 = vpop.f32.mrb[119].mxu1 }
 0x290   :  { %v4342_v24 = vadd.f32 %v4341_v21, %v3132_v22  ;;  %v3134_v13 = vpop.f32.mrb[47].mxu0  ;;  %v6452_v6 = vadd.f32 %v4339_v30, %v6379_v44  ;;  %v4350_v22 = vadd.f32 %v6363_v36, %v6329_v31 }
 0x291   :  { %v4353_v13 = vadd.f32 %v6363_v36, %v6331_v32 }
 0x292   :  { %v6455_v18 = vadd.f32 %v4342_v24, %v6383_v48 }
 0x294   :  { %v6459_v50 = vpop.f32.mrb[120].mxu1 }
 0x295   :  { %v3137_v19 = vpop.f32.mrb[48].mxu0  ;;  %v3356_v58 = vpop.f32.mrb[121].mxu1 }
 0x296   :  { %v4345_v35 = vadd.f32 %v4344_v38, %v3137_v19  ;;  %v3139_v7 = vpop.f32.mrb[49].mxu0  ;;  %v6463_v42 = vpop.f32.mrb[122].mxu1 }
 0x297   :  { %v3140_v21 = vpop.f32.mrb[50].mxu0  ;;  %v3359_v44 = vpop.f32.mrb[123].mxu1 }
 0x298   :  { %v4348_v30 = vadd.f32 %v4347_v2, %v3140_v21  ;;  %v3142_v55 = vpop.f32.mrb[51].mxu0  ;;  %v6466_v48 = vadd.f32 %v4345_v35, %v6391_v14  ;;  %v4356_v21 = vadd.f32 %v6363_v36, %v6336_v3 }
 0x299   :  { %v4359_v55 = vadd.f32 %v6363_v36, %v6338_v5 }
 0x29a   :  { %v6469_v34 = vadd.f32 %v4348_v30, %v6395_v60 }
 0x29c   :  { %v6473_v41 = vpop.f32.mrb[124].mxu1 }
 0x29d   :  { %v3145_v27 = vpop.f32.mrb[52].mxu0  ;;  %v6475_v24 = vpop.f32.mrb[125].mxu1 }
 0x29e   :  { %v4351_v38 = vadd.f32 %v4350_v22, %v3145_v27  ;;  %v3147_v19 = vpop.f32.mrb[53].mxu0  ;;  %v6479_v58 = vpop.f32.mrb[126].mxu1 }
 0x29f   :  { %v3148_v14 = vpop.f32.mrb[54].mxu0  ;;  %v6481_v2 = vpop.f32.mrb[127].mxu1 }
 0x2a0   :  { %v4354_v60 = vadd.f32 %v4353_v13, %v3148_v14  ;;  %v3150_v35 = vpop.f32.mrb[55].mxu0  ;;  %v6484_v7 = vadd.f32 %v4351_v38, %v6403_v63 }
 0x2a2   :  { %v6487_v31 = vadd.f32 %v4354_v60, %v6407_v26  ;;  %v4362_v60 = vadd.f32 %v6363_v36, %v6340_v39 }
 0x2a4   :  { %v6491_v44 = vpop.f32.mrb[128].mxu1 }
 0x2a5   :  { %v3153_v32 = vpop.f32.mrb[56].mxu0  ;;  %v6493_v30 = vpop.f32.mrb[129].mxu1 }
 0x2a6   :  { %v4357_v22 = vadd.f32 %v4356_v21, %v3153_v32  ;;  %v3155_v27 = vpop.f32.mrb[57].mxu0  ;;  %v6497_v13 = vpop.f32.mrb[130].mxu1 }
 0x2a7   :  { %v3156_v63 = vpop.f32.mrb[58].mxu0  ;;  %v6499_v38 = vpop.f32.mrb[131].mxu1  ;;  %v4365_v27 = vadd.f32 %v6363_v36, %v6342_v43 }
 0x2a8   :  { %v4360_v26 = vadd.f32 %v4359_v55, %v3156_v63  ;;  %v3158_v19 = vpop.f32.mrb[59].mxu0  ;;  %v6502_v14 = vadd.f32 %v4357_v22, %v6417_v45 }
 0x2aa   :  { %v6505_v3 = vadd.f32 %v4360_v26, %v6421_v59 }
 0x2ac   :  { %v4224_v35 = vpop.f32.mrb[132].mxu1 }
 0x2ad   :  { %v3161_v5 = vpop.f32.mrb[60].mxu0  ;;  %v3436_v21 = vadd.f32 %v6373_v29, %v4224_v35  ;;  %v6510_v32 = vpop.f32.mrb[133].mxu1 }
 0x2ae   :  { %6747 = vst [vmem:[#allocation4_spill] sm:$0xff] %v6510_v32  ;;  %v4363_v55 = vadd.f32 %v4362_v60, %v3161_v5  ;;  %v3163_v63 = vpop.f32.mrb[61].mxu0  ;;  %v4225_v19 = vpop.f32.mrb[134].mxu1  ;;  %v4371_v5 = vadd.f32 %v6363_v36, %v6346_v53 }
 0x2af   :  { %v3548_v45 = vmax.f32 %v3436_v21, 0.0  ;;  %v3164_v22 = vpop.f32.mrb[62].mxu0  ;;  %v3439_v59 = vadd.f32 %v6375_v37, %v4225_v19  ;;  %v6515_v26 = vpop.f32.mrb[135].mxu1  ;;  %v4368_v37 = vadd.f32 %v6363_v36, %v6344_v47 }
 0x2b0   :  { %v4366_v39 = vadd.f32 %v4365_v27, %v3164_v22  ;;  %v3166_v17 = vpop.f32.mrb[63].mxu0  ;;  %v6518_v16 = vadd.f32 %v4363_v55, %v6431_v52 }
 0x2b1   :  { %v4158_v29 = vpack.c.bf16 %v3548_v45, %v3548_v45  ;;  %v3549_v35 = vmax.f32 %v3439_v59, 0.0 }
 0x2b2   :  { %v6521_v32 = vadd.f32 %v4366_v39, %v6435_v12 }
 0x2b3   :  { %3729 = vst.msk [vmem:[%s6744_s3 + $0x28] sm:$0xf] %vm3718_vm1, %v4158_v29  ;;  %v4159_v43 = vpack.c.bf16 %v3549_v35, %v3549_v35 }
 0x2b4   :  { %v4228_v60 = vpop.f32.mrb[136].mxu1 }
 0x2b5   :  { %3730 = vst.msk [vmem:[%s6744_s3 + $0x2c] sm:$0xf] %vm3718_vm1, %v4159_v43  ;;  %v3169_v17 = vpop.f32.mrb[64].mxu0  ;;  %v3452_v52 = vadd.f32 %v6397_v15, %v4228_v60  ;;  %v3443_v12 = vpop.f32.mrb[137].mxu1 }
 0x2b6   :  { %v4369_v21 = vadd.f32 %v4368_v37, %v3169_v17  ;;  %v3171_v27 = vpop.f32.mrb[65].mxu0  ;;  %v3444_v55 = vadd.f32 %v6385_v9, %v3443_v12  ;;  %v4229_v63 = vpop.f32.mrb[138].mxu1  ;;  %v4374_v17 = vadd.f32 %v6363_v36, %v6348_v57 }
 0x2b7   :  { %v3552_v19 = vmax.f32 %v3452_v52, 0.0  ;;  %v3172_v47 = vpop.f32.mrb[66].mxu0  ;;  %v3455_v45 = vadd.f32 %v6399_v54, %v4229_v63  ;;  %v3446_v22 = vpop.f32.mrb[139].mxu1 }
 0x2b8   :  { %v3550_v59 = vmax.f32 %v3444_v55, 0.0  ;;  %v4372_v39 = vadd.f32 %v4371_v5, %v3172_v47  ;;  %v3174_v29 = vpop.f32.mrb[67].mxu0  ;;  %v3447_v35 = vadd.f32 %v6387_v10, %v3446_v22  ;;  %v6540_v15 = vadd.f32 %v4369_v21, %v6445_v25 }
 0x2b9   :  { %v4162_v43 = vpack.c.bf16 %v3552_v19, %v3552_v19  ;;  %v3553_v53 = vmax.f32 %v3455_v45, 0.0  ;;  %v4377_v5 = vadd.f32 %v6363_v36, %v6350_v62 }
 0x2ba   :  { %v4160_v37 = vpack.c.bf16 %v3550_v59, %v3550_v59  ;;  %v3551_v60 = vmax.f32 %v3447_v35, 0.0  ;;  %v6543_v9 = vadd.f32 %v4372_v39, %v6449_v20 }
 0x2bb   :  { %3733 = vst.msk [vmem:[%s6744_s3 + $0x38] sm:$0xf] %vm3718_vm1, %v4162_v43  ;;  %v4163_v54 = vpack.c.bf16 %v3553_v53, %v3553_v53 }
 0x2bc   :  { %3731 = vst.msk [vmem:[%s6744_s3 + $0x30] sm:$0xf] %vm3718_vm1, %v4160_v37  ;;  %v4161_v10 = vpack.c.bf16 %v3551_v60, %v3551_v60  ;;  %v4232_v25 = vpop.f32.mrb[140].mxu1  ;;  %v4282_v37 = vadd.f32 %v6363_v36, %v6106_v0 }
 0x2bd   :  { %3734 = vst.msk [vmem:[%s6744_s3 + $0x3c] sm:$0xf] %vm3718_vm1, %v4163_v54  ;;  %v3177_v20 = vpop.f32.mrb[68].mxu0  ;;  %v3468_v52 = vadd.f32 %v6424_v28, %v4232_v25  ;;  %v3459_v12 = vpop.f32.mrb[141].mxu1 }
 0x2be   :  { %3732 = vst.msk [vmem:[%s6744_s3 + $0x34] sm:$0xf] %vm3718_vm1, %v4161_v10  ;;  %v4375_v57 = vadd.f32 %v4374_v17, %v3177_v20  ;;  %v3179_v21 = vpop.f32.mrb[69].mxu0  ;;  %v3460_v27 = vadd.f32 %v6410_v23, %v3459_v12  ;;  %v4233_v55 = vpop.f32.mrb[142].mxu1  ;;  %v4284_v17 = vadd.f32 %v6363_v36, %v6111_v40 }
 0x2bf   :  { %v3556_v63 = vmax.f32 %v3468_v52, 0.0  ;;  %v3180_v19 = vpop.f32.mrb[70].mxu0  ;;  %v3471_v47 = vadd.f32 %v6427_v51, %v4233_v55  ;;  %v3462_v45 = vpop.f32.mrb[143].mxu1 }
 0x2c0   :  { %v3554_v28 = vmax.f32 %v3460_v27, 0.0  ;;  %v4378_v22 = vadd.f32 %v4377_v5, %v3180_v19  ;;  %v3182_v59 = vpop.f32.mrb[71].mxu0  ;;  %v3463_v62 = vadd.f32 %v6413_v11, %v3462_v45  ;;  %v6570_v39 = vadd.f32 %v4375_v57, %v6459_v50 }
 0x2c1   :  { %v4166_v29 = vpack.c.bf16 %v3556_v63, %v3556_v63  ;;  %v3557_v35 = vmax.f32 %v3471_v47, 0.0 }
 0x2c2   :  { %v4164_v43 = vpack.c.bf16 %v3554_v28, %v3554_v28  ;;  %v3555_v53 = vmax.f32 %v3463_v62, 0.0  ;;  %v6573_v23 = vadd.f32 %v4378_v22, %v6463_v42 }
 0x2c3   :  { %3737 = vst.msk [vmem:[%s6744_s3 + $0x48] sm:$0xf] %vm3718_vm1, %v4166_v29  ;;  %v4167_v51 = vpack.c.bf16 %v3557_v35, %v3557_v35 }
 0x2c4   :  { %3735 = vst.msk [vmem:[%s6744_s3 + $0x40] sm:$0xf] %vm3718_vm1, %v4164_v43  ;;  %v4165_v11 = vpack.c.bf16 %v3555_v53, %v3555_v53  ;;  %v4236_v50 = vpop.f32.mrb[144].mxu1 }
 0x2c5   :  { %3738 = vst.msk [vmem:[%s6744_s3 + $0x4c] sm:$0xf] %vm3718_vm1, %v4167_v51  ;;  %v3218_v42 = vpop.f32.mrb[0].mxu0  ;;  %v3484_v60 = vadd.f32 %v6452_v6, %v4236_v50  ;;  %v3475_v54 = vpop.f32.mrb[145].mxu1 }
 0x2c6   :  { %3736 = vst.msk [vmem:[%s6744_s3 + $0x44] sm:$0xf] %vm3718_vm1, %v4165_v11  ;;  %v4283_v0 = vadd.f32 %v4282_v37, %v3218_v42  ;;  %v3220_v10 = vpop.f32.mrb[1].mxu0  ;;  %v3476_v25 = vadd.f32 %v6438_v33, %v3475_v54  ;;  %v4237_v20 = vpop.f32.mrb[146].mxu1 }
 0x2c7   :  { %v3560_v52 = vmax.f32 %v3484_v60, 0.0  ;;  %v3221_v12 = vpop.f32.mrb[2].mxu0  ;;  %v3487_v5 = vadd.f32 %v6455_v18, %v4237_v20  ;;  %v3478_v57 = vpop.f32.mrb[147].mxu1 }
 0x2c8   :  { %v3396_v6 = vadd.f32 %v4283_v0, %v6475_v24  ;;  %v3558_v21 = vmax.f32 %v3476_v25, 0.0  ;;  %v4285_v27 = vadd.f32 %v4284_v17, %v3221_v12  ;;  %v3223_v40 = vpop.f32.mrb[3].mxu0  ;;  %v3479_v55 = vadd.f32 %v6441_v1, %v3478_v57 }
 0x2c9   :  { %v4170_v63 = vpack.c.bf16 %v3560_v52, %v3560_v52  ;;  %v3561_v19 = vmax.f32 %v3487_v5, 0.0  ;;  %v4286_v24 = vadd.f32 %v6363_v36, %v6122_v46  ;;  %v4288_v46 = vadd.f32 %v6363_v36, %v6127_v49 }
 0x2ca   :  { %v3538_v47 = vmax.f32 %v3396_v6, 0.0  ;;  %v4168_v45 = vpack.c.bf16 %v3558_v21, %v3558_v21  ;;  %v3399_v28 = vadd.f32 %v4285_v27, %v6481_v2  ;;  %v3559_v33 = vmax.f32 %v3479_v55, 0.0 }
 0x2cb   :  { %3741 = vst.msk [vmem:[%s6744_s3 + $0x58] sm:$0xf] %vm3718_vm1, %v4170_v63  ;;  %v4171_v18 = vpack.c.bf16 %v3561_v19, %v3561_v19 }
 0x2cc   :  { %v4148_v22 = vpack.c.bf16 %v3538_v47, %v3538_v47  ;;  %3739 = vst.msk [vmem:[%s6744_s3 + $0x50] sm:$0xf] %vm3718_vm1, %v4168_v45  ;;  %v3539_v1 = vmax.f32 %v3399_v28, 0.0  ;;  %v4169_v59 = vpack.c.bf16 %v3559_v33, %v3559_v33  ;;  %v4240_v62 = vpop.f32.mrb[148].mxu1 }
 0x2cd   :  { %3742 = vst.msk [vmem:[%s6744_s3 + $0x5c] sm:$0xf] %vm3718_vm1, %v4171_v18  ;;  %v3226_v2 = vpop.f32.mrb[4].mxu0  ;;  %v3500_v29 = vadd.f32 %v6484_v7, %v4240_v62  ;;  %v3491_v35 = vpop.f32.mrb[149].mxu1 }
 0x2ce   :  { %3719 = vst.msk [vmem:[%s6744_s3] sm:$0xf] %vm3718_vm1, %v4148_v22  ;;  %v4149_v43 = vpack.c.bf16 %v3539_v1, %v3539_v1  ;;  %3740 = vst.msk [vmem:[%s6744_s3 + $0x54] sm:$0xf] %vm3718_vm1, %v4169_v59  ;;  %v4287_v53 = vadd.f32 %v4286_v24, %v3226_v2  ;;  %v3228_v51 = vpop.f32.mrb[5].mxu0  ;;  %v3492_v37 = vadd.f32 %v6466_v48, %v3491_v35  ;;  %v4241_v7 = vpop.f32.mrb[150].mxu1 }
 0x2cf   :  { %v3564_v11 = vmax.f32 %v3500_v29, 0.0  ;;  %v3229_v50 = vpop.f32.mrb[6].mxu0  ;;  %v3503_v49 = vadd.f32 %v6487_v31, %v4241_v7  ;;  %v3494_v42 = vpop.f32.mrb[151].mxu1 }
 0x2d0   :  { %3720 = vst.msk [vmem:[%s6744_s3 + $0x4] sm:$0xf] %vm3718_vm1, %v4149_v43  ;;  %v3404_v60 = vadd.f32 %v4287_v53, %v6473_v41  ;;  %v3562_v54 = vmax.f32 %v3492_v37, 0.0  ;;  %v4289_v17 = vadd.f32 %v4288_v46, %v3229_v50  ;;  %v3231_v0 = vpop.f32.mrb[7].mxu0  ;;  %v3495_v10 = vadd.f32 %v6469_v34, %v3494_v42 }
 0x2d1   :  { %v4174_v25 = vpack.c.bf16 %v3564_v11, %v3564_v11  ;;  %v3565_v48 = vmax.f32 %v3503_v49, 0.0  ;;  %v4290_v41 = vadd.f32 %v6363_v36, %v6138_v56  ;;  %v4292_v56 = vadd.f32 %v6363_v36, %v6143_v61 }
 0x2d2   :  { %v3540_v20 = vmax.f32 %v3404_v60, 0.0  ;;  %v4172_v52 = vpack.c.bf16 %v3562_v54, %v3562_v54  ;;  %v3407_v12 = vadd.f32 %v4289_v17, %v6479_v58  ;;  %v3563_v31 = vmax.f32 %v3495_v10, 0.0 }
 0x2d3   :  { %3745 = vst.msk [vmem:[%s6744_s3 + $0x68] sm:$0xf] %vm3718_vm1, %v4174_v25  ;;  %v4175_v5 = vpack.c.bf16 %v3565_v48, %v3565_v48 }
 0x2d4   :  { %v4150_v57 = vpack.c.bf16 %v3540_v20, %v3540_v20  ;;  %3743 = vst.msk [vmem:[%s6744_s3 + $0x60] sm:$0xf] %vm3718_vm1, %v4172_v52  ;;  %v3541_v34 = vmax.f32 %v3407_v12, 0.0  ;;  %v4173_v6 = vpack.c.bf16 %v3563_v31, %v3563_v31  ;;  %v4244_v21 = vpop.f32.mrb[152].mxu1 }
 0x2d5   :  { %3746 = vst.msk [vmem:[%s6744_s3 + $0x6c] sm:$0xf] %vm3718_vm1, %v4175_v5  ;;  %v3234_v58 = vpop.f32.mrb[8].mxu0  ;;  %v3516_v27 = vadd.f32 %v6518_v16, %v4244_v21  ;;  %v3507_v40 = vpop.f32.mrb[153].mxu1  ;;  %v6749_v21 = vld [vmem:[#allocation3_spill] sm:$0xff] }
 0x2d6   :  { %3721 = vst.msk [vmem:[%s6744_s3 + $0x8] sm:$0xf] %vm3718_vm1, %v4150_v57  ;;  %v4151_v55 = vpack.c.bf16 %v3541_v34, %v3541_v34  ;;  %3744 = vst.msk [vmem:[%s6744_s3 + $0x64] sm:$0xf] %vm3718_vm1, %v4173_v6  ;;  %v4291_v63 = vadd.f32 %v4290_v41, %v3234_v58  ;;  %v3236_v19 = vpop.f32.mrb[9].mxu0  ;;  %v3508_v47 = vadd.f32 %v6502_v14, %v3507_v40  ;;  %v4245_v16 = vpop.f32.mrb[154].mxu1 }
 0x2d7   :  { %v3568_v45 = vmax.f32 %v3516_v27, 0.0  ;;  %v3237_v28 = vpop.f32.mrb[10].mxu0  ;;  %v3519_v61 = vadd.f32 %v6521_v32, %v4245_v16  ;;  %v3510_v33 = vpop.f32.mrb[155].mxu1  ;;  %v6748_v57 = vld [vmem:[#allocation2_spill] sm:$0xff]  ;;  %v4300_v58 = vadd.f32 %v6363_v36, %v6749_v21 }
 0x2d8   :  { %3722 = vst.msk [vmem:[%s6744_s3 + $0xc] sm:$0xf] %vm3718_vm1, %v4151_v55  ;;  %v3412_v18 = vadd.f32 %v4291_v63, %v6493_v30  ;;  %v3566_v24 = vmax.f32 %v3508_v47, 0.0  ;;  %v4293_v22 = vadd.f32 %v4292_v56, %v3237_v28  ;;  %v3239_v1 = vpop.f32.mrb[11].mxu0  ;;  %v3511_v59 = vadd.f32 %v6505_v3, %v3510_v33 }
 0x2d9   :  { %v4178_v62 = vpack.c.bf16 %v3568_v45, %v3568_v45  ;;  %v3569_v14 = vmax.f32 %v3519_v61, 0.0  ;;  %v4294_v30 = vadd.f32 %v6363_v36, %v6154_v4  ;;  %v4296_v4 = vadd.f32 %v6363_v36, %v6159_v8 }
 0x2da   :  { %v3542_v2 = vmax.f32 %v3412_v18, 0.0  ;;  %v4176_v29 = vpack.c.bf16 %v3566_v24, %v3566_v24  ;;  %v3415_v35 = vadd.f32 %v4293_v22, %v6499_v38  ;;  %v3567_v32 = vmax.f32 %v3511_v59, 0.0 }
 0x2db   :  { %3749 = vst.msk [vmem:[%s6744_s3 + $0x78] sm:$0xf] %vm3718_vm1, %v4178_v62  ;;  %v4179_v46 = vpack.c.bf16 %v3569_v14, %v3569_v14 }
 0x2dc   :  { %v4152_v43 = vpack.c.bf16 %v3542_v2, %v3542_v2  ;;  %3747 = vst.msk [vmem:[%s6744_s3 + $0x70] sm:$0xf] %vm3718_vm1, %v4176_v29  ;;  %v3543_v3 = vmax.f32 %v3415_v35, 0.0  ;;  %v4177_v53 = vpack.c.bf16 %v3567_v32, %v3567_v32  ;;  %v4248_v51 = vpop.f32.mrb[156].mxu1 }
 0x2dd   :  { %3750 = vst.msk [vmem:[%s6744_s3 + $0x7c] sm:$0xf] %vm3718_vm1, %v4179_v46  ;;  %v3242_v38 = vpop.f32.mrb[12].mxu0  ;;  %v3532_v37 = vadd.f32 %v6570_v39, %v4248_v51  ;;  %v3523_v7 = vpop.f32.mrb[157].mxu1 }
 0x2de   :  { %3723 = vst.msk [vmem:[%s6744_s3 + $0x10] sm:$0xf] %vm3718_vm1, %v4152_v43  ;;  %v4153_v11 = vpack.c.bf16 %v3543_v3, %v3543_v3  ;;  %3748 = vst.msk [vmem:[%s6744_s3 + $0x74] sm:$0xf] %vm3718_vm1, %v4177_v53  ;;  %v4295_v50 = vadd.f32 %v4294_v30, %v3242_v38  ;;  %v3244_v49 = vpop.f32.mrb[13].mxu0  ;;  %v3524_v42 = vadd.f32 %v6540_v15, %v3523_v7  ;;  %v4249_v39 = vpop.f32.mrb[158].mxu1 }
 0x2df   :  { %v3572_v60 = vmax.f32 %v3532_v37, 0.0  ;;  %v3245_v54 = vpop.f32.mrb[14].mxu0  ;;  %v3535_v8 = vadd.f32 %v6573_v23, %v4249_v39  ;;  %v3526_v17 = vpop.f32.mrb[159].mxu1 }
 0x2e0   :  { %3724 = vst.msk [vmem:[%s6744_s3 + $0x14] sm:$0xf] %vm3718_vm1, %v4153_v11  ;;  %v3420_v0 = vadd.f32 %v4295_v50, %v6491_v44  ;;  %v3570_v10 = vmax.f32 %v3524_v42, 0.0  ;;  %v4297_v25 = vadd.f32 %v4296_v4, %v3245_v54  ;;  %v3247_v48 = vpop.f32.mrb[15].mxu0  ;;  %v3527_v20 = vadd.f32 %v6543_v9, %v3526_v17 }
 0x2e1   :  { %v4182_v52 = vpack.c.bf16 %v3572_v60, %v3572_v60  ;;  %v3573_v15 = vmax.f32 %v3535_v8, 0.0  ;;  %v4298_v44 = vadd.f32 %v6363_v36, %v6748_v57  ;;  %v6750_v36 = vld [vmem:[#allocation4_spill] sm:$0xff] }
 0x2e2   :  { %v3544_v12 = vmax.f32 %v3420_v0, 0.0  ;;  %v4180_v31 = vpack.c.bf16 %v3570_v10, %v3570_v10  ;;  %v3423_v5 = vadd.f32 %v4297_v25, %v6497_v13  ;;  %v3571_v23 = vmax.f32 %v3527_v20, 0.0 }
 0x2e3   :  { %3753 = vst.msk [vmem:[%s6744_s3 + $0x88] sm:$0xf] %vm3718_vm1, %v4182_v52  ;;  %v4183_v41 = vpack.c.bf16 %v3573_v15, %v3573_v15 }
 0x2e4   :  { %v4154_v34 = vpack.c.bf16 %v3544_v12, %v3544_v12  ;;  %3751 = vst.msk [vmem:[%s6744_s3 + $0x80] sm:$0xf] %vm3718_vm1, %v4180_v31  ;;  %v3545_v9 = vmax.f32 %v3423_v5, 0.0  ;;  %v4181_v6 = vpack.c.bf16 %v3571_v23, %v3571_v23 }
 0x2e5   :  { %3754 = vst.msk [vmem:[%s6744_s3 + $0x8c] sm:$0xf] %vm3718_vm1, %v4183_v41  ;;  %v3250_v13 = vpop.f32.mrb[16].mxu0 }
 0x2e6   :  { %3725 = vst.msk [vmem:[%s6744_s3 + $0x18] sm:$0xf] %vm3718_vm1, %v4154_v34  ;;  %v4155_v27 = vpack.c.bf16 %v3545_v9, %v3545_v9  ;;  %3752 = vst.msk [vmem:[%s6744_s3 + $0x84] sm:$0xf] %vm3718_vm1, %v4181_v6  ;;  %v4299_v40 = vadd.f32 %v4298_v44, %v3250_v13  ;;  %v3252_v56 = vpop.f32.mrb[17].mxu0 }
 0x2e7   :  { %v3253_v55 = vpop.f32.mrb[18].mxu0 }
 0x2e8   :  { %3726 = vst.msk [vmem:[%s6744_s3 + $0x1c] sm:$0xf] %vm3718_vm1, %v4155_v27  ;;  %v3428_v63 = vadd.f32 %v4299_v40, %v6750_v36  ;;  %v4301_v19 = vadd.f32 %v4300_v58, %v3253_v55  ;;  %v3255_v47 = vpop.f32.mrb[19].mxu0 }
 0x2ea   :  { %v3546_v16 = vmax.f32 %v3428_v63, 0.0  ;;  %v3431_v45 = vadd.f32 %v4301_v19, %v6515_v26 }
 0x2ec   :  { %v4156_v28 = vpack.c.bf16 %v3546_v16, %v3546_v16  ;;  %v3547_v61 = vmax.f32 %v3431_v45, 0.0 }
 0x2ee   :  { %3727 = vst.msk [vmem:[%s6744_s3 + $0x20] sm:$0xf] %vm3718_vm1, %v4156_v28  ;;  %v4157_v33 = vpack.c.bf16 %v3547_v61, %v3547_v61 }
 0x2f0   :  { %3728 = vst.msk [vmem:[%s6744_s3 + $0x24] sm:$0xf] %vm3718_vm1, %v4157_v33 }

// kernel: cnn_mnist_forward.5
= control target key start
LH: loop header
LB: loop body
LE: loop exit
PB: predicated region body
PF: predicated region fallthrough
CT: control target
= control target key end

     0   :  { %s2641_s18 = smov 0   ;;  %s2857_s0 = inlined_call_operand.vmem [shape: bf16[8,9216], index: 0, kind: input, shape index: {}]   ;;  %s2858_s1 = inlined_call_operand.vmem [shape: bf16[9216,128], index: 1, kind: input, shape index: {}]   ;;  %s2859_s2 = inlined_call_operand.vmem [shape: f32[1,128], index: 2, kind: input, shape index: {}]   ;;  %s2860_s3 = inlined_call_operand.vmem [shape: bf16[128,10], index: 3, kind: input, shape index: {}]   ;;  %s2861_s4 = inlined_call_operand.vmem [shape: f32[1,10], index: 4, kind: input, shape index: {}]   ;;  %s2862_s5 = inlined_call_operand.vmem [shape: f32[8,10], index: 5, kind: output, shape index: {}]  }
   0x1 LB: > { %s2647_s19 = sadd.s32 4294967295, %s2606_s18   ;;  %p2009_p0 = scmp.ge.s32.totalorder %s2606_s18, 1  ;;  %s2606_s18 = sphi %s2641_s18, %s15_s18  }
   0x2   : > { %p194_p1 = scmp.lt.s32.totalorder %s2606_s18, 5 }
   0x4   : > { %p195_p2 = pnand %p2009_p0, %p194_p1 }
   0x5   : > { %s222_s20 = smul.u32 (!%p195_p2), 18, %s2647_s19  ;;  %p2012_p5 = scmp.ne.s32.totalorder (!%p195_p2), %s2647_s19, 0 }
   0x6   : > { %198 = sbr.rel (%p195_p2) target bundleno = 947 (0x3b3), region = 40 }
   0x7   : > { %s228_s21 = smul.u32 (!%p195_p2), 288, %s2647_s19  ;;  %p223_p3 = scmp.lt.s32.totalorder (!%p195_p2), %s222_s20, 71 }
   0x9   : > { %p229_p4 = scmp.lt.s32.totalorder (!%p195_p2), %s228_s21, 1151 }
   0xd   : > { %s2864_s20 = smov (!%p223_p3, %s222_s20), 71  ;;  %s2866_s21 = smov (!%p229_p4, %s228_s21), 1151 }
   0xe   : > { %s2010_s22 = sshll.u32 %s2864_s20, 2  ;;  %s2011_s26 = sshll.u32 %s2866_s21, 2  ;;  %v2608_v0 = vmov (!%p2012_p5), 0.0  }
   0xf   : > { %s2656_s25 = scalar_lea.vmem %s2857_s0, %s2010_s22  ;;  %s2661_s29 = scalar_lea.vmem %s2858_s1, %s2011_s26  ;;  %239 = vst [vmem:[#allocation2] sm:$0xff] (!%p2012_p5), %v2608_v0 }
  0x10   : > { %238 = sbr.rel (%p2012_p5) target bundleno = 23 (0x17), region = 44 }
  0x17 PF: > { %v2426_v1 = vld [vmem:[%s2661_s29 + $0x40] sm:$0xff]   ;;  %v2430_v5 = vld [vmem:[%s2661_s29 + $0x48] sm:$0xff]   ;;  %v2434_v9 = vld [vmem:[%s2661_s29 + $0x50] sm:$0xff]   ;;  %p2175_p6 = scmp.ne.s32.totalorder %s2647_s19, 3 }
  0x18   : > { %v2427_v2 = vld [vmem:[%s2661_s29 + $0xc0] sm:$0xff]   ;;  %2188 = vmatprep.subr.bf16.mxu0 %v2426_v1  ;;  %v2431_v6 = vld [vmem:[%s2661_s29 + $0xc8] sm:$0xff]   ;;  %v2435_v10 = vld [vmem:[%s2661_s29 + $0xd0] sm:$0xff]   ;;  %vm2610_vm0 = vmmov (!%p2175_p6), 0   ;;  %vm1953_vm1 = vcmask (!%p2175_p6), 80896  }
  0x19   : > { %v2428_v3 = vld [vmem:[%s2661_s29] sm:$0xff]   ;;  %2210 = vmatprep.subr.bf16.mxu1 %v2427_v2  ;;  %v2432_v7 = vld [vmem:[%s2661_s29 + $0x8] sm:$0xff]   ;;  %v2436_v11 = vld [vmem:[%s2661_s29 + $0x10] sm:$0xff]  }
  0x1a   : > { %v2429_v4 = vld [vmem:[%s2661_s29 + $0x80] sm:$0xff]   ;;  %2189 = vmatpush3.bf16.msra.mxu0 %v2428_v3  ;;  %v2433_v8 = vld [vmem:[%s2661_s29 + $0x88] sm:$0xff]   ;;  %v2437_v12 = vld [vmem:[%s2661_s29 + $0x90] sm:$0xff]  }
  0x1b   : > { %2211 = vmatpush3.bf16.msra.mxu1 %v2429_v4  ;;  %2190 = vmatprep.subr.bf16.mxu0 %v2430_v5  ;;  %v2438_v13 = vld [vmem:[%s2661_s29 + $0x58] sm:$0xff]   ;;  %v2442_v17 = vld [vmem:[%s2661_s29 + $0x60] sm:$0xff]   ;;  %v2446_v21 = vld [vmem:[%s2661_s29 + $0x68] sm:$0xff]  }
  0x1c   : > { %2212 = vmatprep.subr.bf16.mxu1 %v2431_v6  ;;  %v2439_v14 = vld [vmem:[%s2661_s29 + $0xd8] sm:$0xff]   ;;  %v2443_v18 = vld [vmem:[%s2661_s29 + $0xe0] sm:$0xff]   ;;  %v2447_v22 = vld [vmem:[%s2661_s29 + $0xe8] sm:$0xff]  }
  0x1d   : > { %v2440_v15 = vld [vmem:[%s2661_s29 + $0x18] sm:$0xff]   ;;  %v2444_v19 = vld [vmem:[%s2661_s29 + $0x20] sm:$0xff]   ;;  %v2448_v23 = vld [vmem:[%s2661_s29 + $0x28] sm:$0xff]  }
  0x1e   : > { %2191 = vmatpush3.bf16.msra.mxu0 %v2432_v7  ;;  %v2441_v16 = vld [vmem:[%s2661_s29 + $0x98] sm:$0xff]   ;;  %v2445_v20 = vld [vmem:[%s2661_s29 + $0xa0] sm:$0xff]   ;;  %v2449_v24 = vld [vmem:[%s2661_s29 + $0xa8] sm:$0xff]  }
  0x1f   : > { %2213 = vmatpush3.bf16.msra.mxu1 %v2433_v8  ;;  %2192 = vmatprep.subr.bf16.mxu0 %v2434_v9  ;;  %v2450_v25 = vld [vmem:[%s2661_s29 + $0x70] sm:$0xff]   ;;  %v2454_v29 = vld [vmem:[%s2661_s29 + $0x78] sm:$0xff]   ;;  %v241_v33 = vld [vmem:[%s2656_s25] sm:$0xff] }
  0x20   : > { %2214 = vmatprep.subr.bf16.mxu1 %v2435_v10  ;;  %v2451_v26 = vld [vmem:[%s2661_s29 + $0xf0] sm:$0xff]   ;;  %v2455_v30 = vld [vmem:[%s2661_s29 + $0xf8] sm:$0xff]   ;;  %v242_v34 = vld [vmem:[%s2656_s25 + $0x8] sm:$0xff]  ;;  %v2013_v35 = vcombine.low %v241_v33, %v241_v33  ;;  %v2014_v36 = vcombine.high %v241_v33, %v241_v33 }
  0x21   : > { %v2452_v27 = vld [vmem:[%s2661_s29 + $0x30] sm:$0xff]   ;;  %v2456_v31 = vld [vmem:[%s2661_s29 + $0x38] sm:$0xff]   ;;  %v2015_v37 = vcombine.low %v242_v34, %v242_v34  ;;  %v2016_v38 = vcombine.high %v242_v34, %v242_v34  ;;  %v2462_v39 = vld [vmem:[%s2661_s29 + $0x140] sm:$0xff]  }
  0x22   : > { %2193 = vmatpush3.bf16.msra.mxu0 %v2436_v11  ;;  %v2453_v28 = vld [vmem:[%s2661_s29 + $0xb0] sm:$0xff]   ;;  %v2457_v32 = vld [vmem:[%s2661_s29 + $0xb8] sm:$0xff]   ;;  %v2463_v40 = vld [vmem:[%s2661_s29 + $0x100] sm:$0xff]   ;;  %1497 = vmatprep.mubr.bf16.mxu0 %v2014_v36 }
  0x23   : > { %2215 = vmatpush3.bf16.msra.mxu1 %v2437_v12  ;;  %2194 = vmatprep.subr.bf16.mxu0 %v2438_v13  ;;  %v2464_v41 = vld [vmem:[%s2661_s29 + $0x1c0] sm:$0xff]   ;;  %v2466_v43 = vld [vmem:[%s2661_s29 + $0x148] sm:$0xff]   ;;  %v2470_v47 = vld [vmem:[%s2661_s29 + $0x150] sm:$0xff]  }
  0x24   : > { %2216 = vmatprep.subr.bf16.mxu1 %v2439_v14  ;;  %1537 = vmatprep.mubr.bf16.mxu1 %v2016_v38  ;;  %v2465_v42 = vld [vmem:[%s2661_s29 + $0x180] sm:$0xff]   ;;  %v2467_v44 = vld [vmem:[%s2661_s29 + $0x108] sm:$0xff]   ;;  %v2471_v48 = vld [vmem:[%s2661_s29 + $0x110] sm:$0xff]  }
  0x25   : > { %v2468_v45 = vld [vmem:[%s2661_s29 + $0x1c8] sm:$0xff]   ;;  %v2472_v49 = vld [vmem:[%s2661_s29 + $0x1d0] sm:$0xff]   ;;  %v2474_v51 = vld [vmem:[%s2661_s29 + $0x158] sm:$0xff]  }
  0x26   : > { %2195 = vmatpush3.bf16.msra.mxu0 %v2440_v15  ;;  %v2469_v46 = vld [vmem:[%s2661_s29 + $0x188] sm:$0xff]   ;;  %v2473_v50 = vld [vmem:[%s2661_s29 + $0x190] sm:$0xff]   ;;  %v2475_v52 = vld [vmem:[%s2661_s29 + $0x118] sm:$0xff]  }
  0x27   : > { %2217 = vmatpush3.bf16.msra.mxu1 %v2441_v16  ;;  %2196 = vmatprep.subr.bf16.mxu0 %v2442_v17  ;;  %v2476_v53 = vld [vmem:[%s2661_s29 + $0x1d8] sm:$0xff]   ;;  %v2478_v55 = vld [vmem:[%s2661_s29 + $0x160] sm:$0xff]   ;;  %v2482_v59 = vld [vmem:[%s2661_s29 + $0x168] sm:$0xff]  }
  0x28   : > { %2218 = vmatprep.subr.bf16.mxu1 %v2443_v18  ;;  %v2477_v54 = vld [vmem:[%s2661_s29 + $0x198] sm:$0xff]   ;;  %v2479_v56 = vld [vmem:[%s2661_s29 + $0x120] sm:$0xff]   ;;  %v2483_v60 = vld [vmem:[%s2661_s29 + $0x128] sm:$0xff]  }
  0x29   : > { %v2480_v57 = vld [vmem:[%s2661_s29 + $0x1e0] sm:$0xff]   ;;  %v2484_v61 = vld [vmem:[%s2661_s29 + $0x1e8] sm:$0xff]   ;;  %v2486_v63 = vld [vmem:[%s2661_s29 + $0x170] sm:$0xff]  }
  0x2a   : > { %2197 = vmatpush3.bf16.msra.mxu0 %v2444_v19  ;;  %v2481_v58 = vld [vmem:[%s2661_s29 + $0x1a0] sm:$0xff]   ;;  %v2485_v62 = vld [vmem:[%s2661_s29 + $0x1a8] sm:$0xff]   ;;  %v2487_v0 = vld [vmem:[%s2661_s29 + $0x130] sm:$0xff]  }
  0x2b   : > { %2219 = vmatpush3.bf16.msra.mxu1 %v2445_v20  ;;  %2198 = vmatprep.subr.bf16.mxu0 %v2446_v21  ;;  %v2488_v1 = vld [vmem:[%s2661_s29 + $0x1f0] sm:$0xff]   ;;  %v2490_v3 = vld [vmem:[%s2661_s29 + $0x178] sm:$0xff]   ;;  %v2496_v10 = vld [vmem:[%s2661_s29 + $0x240] sm:$0xff]  }
  0x2c   : > { %2220 = vmatprep.subr.bf16.mxu1 %v2447_v22  ;;  %v2489_v2 = vld [vmem:[%s2661_s29 + $0x1b0] sm:$0xff]   ;;  %v2491_v4 = vld [vmem:[%s2661_s29 + $0x138] sm:$0xff]   ;;  %v2499_v14 = vld [vmem:[%s2661_s29 + $0x200] sm:$0xff]  }
  0x2d   : > { %v2492_v5 = vld [vmem:[%s2661_s29 + $0x1f8] sm:$0xff]   ;;  %v243_v6 = vld [vmem:[%s2656_s25 + $0x10] sm:$0xff]  ;;  %v2500_v15 = vld [vmem:[%s2661_s29 + $0x2c0] sm:$0xff]  }
  0x2e   : > { %2199 = vmatpush3.bf16.msra.mxu0 %v2448_v23  ;;  %v2018_v7 = vcombine.high %v243_v6, %v243_v6  ;;  %v2495_v8 = vld [vmem:[%s2661_s29 + $0x1b8] sm:$0xff]   ;;  %v2017_v9 = vcombine.low %v243_v6, %v243_v6  ;;  %v2501_v16 = vld [vmem:[%s2661_s29 + $0x280] sm:$0xff]   ;;  %v2502_v17 = vld [vmem:[%s2661_s29 + $0x248] sm:$0xff]  }
  0x2f   : > { %2221 = vmatpush3.bf16.msra.mxu1 %v2449_v24  ;;  %2200 = vmatprep.subr.bf16.mxu0 %v2450_v25  ;;  %v244_v11 = vld [vmem:[%s2656_s25 + $0x18] sm:$0xff]  ;;  %v2503_v18 = vld [vmem:[%s2661_s29 + $0x208] sm:$0xff]   ;;  %v2506_v21 = vld [vmem:[%s2661_s29 + $0x250] sm:$0xff]  }
  0x30   : > { %2222 = vmatprep.subr.bf16.mxu1 %v2451_v26  ;;  %v2019_v12 = vcombine.low %v244_v11, %v244_v11  ;;  %v2020_v13 = vcombine.high %v244_v11, %v244_v11  ;;  %v2504_v19 = vld [vmem:[%s2661_s29 + $0x2c8] sm:$0xff]   ;;  %v2507_v22 = vld [vmem:[%s2661_s29 + $0x210] sm:$0xff]   ;;  %v2510_v25 = vld [vmem:[%s2661_s29 + $0x258] sm:$0xff]  }
  0x31   : > { %v2505_v20 = vld [vmem:[%s2661_s29 + $0x288] sm:$0xff]   ;;  %v2508_v23 = vld [vmem:[%s2661_s29 + $0x2d0] sm:$0xff]   ;;  %v2511_v26 = vld [vmem:[%s2661_s29 + $0x218] sm:$0xff]  }
  0x32   : > { %2201 = vmatpush3.bf16.msra.mxu0 %v2452_v27  ;;  %v2509_v24 = vld [vmem:[%s2661_s29 + $0x290] sm:$0xff]   ;;  %v2512_v27 = vld [vmem:[%s2661_s29 + $0x2d8] sm:$0xff]   ;;  %v2518_v33 = vld [vmem:[%s2661_s29 + $0x268] sm:$0xff]  }
  0x33   : > { %2223 = vmatpush3.bf16.msra.mxu1 %v2453_v28  ;;  %2202 = vmatprep.subr.bf16.mxu0 %v2454_v29  ;;  %v2513_v28 = vld [vmem:[%s2661_s29 + $0x298] sm:$0xff]   ;;  %v2514_v29 = vld [vmem:[%s2661_s29 + $0x260] sm:$0xff]   ;;  %v2519_v34 = vld [vmem:[%s2661_s29 + $0x228] sm:$0xff]  }
  0x34   : > { %2224 = vmatprep.subr.bf16.mxu1 %v2455_v30  ;;  %v2515_v30 = vld [vmem:[%s2661_s29 + $0x220] sm:$0xff]   ;;  %v2521_v36 = vld [vmem:[%s2661_s29 + $0x2a8] sm:$0xff]   ;;  %v2523_v38 = vld [vmem:[%s2661_s29 + $0x230] sm:$0xff]  }
  0x35   : > { %v2553_v6 = vld [vmem:[%s2661_s29 + $0x3a0] sm:$0xff]   ;;  %v2558_v11 = vld [vmem:[%s2661_s29 + $0x370] sm:$0xff]  }
  0x36   : > { %2203 = vmatpush3.bf16.msra.mxu0 %v2456_v31  ;;  %v2516_v31 = vld [vmem:[%s2661_s29 + $0x2e0] sm:$0xff]  }
  0x37   : > { %2225 = vmatpush3.bf16.msra.mxu1 %v2457_v32  ;;  %2232 = vmatprep.subr.bf16.mxu0 %v2462_v39  ;;  %v2517_v32 = vld [vmem:[%s2661_s29 + $0x2a0] sm:$0xff]   ;;  %v2524_v39 = vld [vmem:[%s2661_s29 + $0x2f0] sm:$0xff]  }
  0x38   : > { %2254 = vmatprep.subr.bf16.mxu1 %v2464_v41  ;;  %v2526_v41 = vld [vmem:[%s2661_s29 + $0x278] sm:$0xff]  }
  0x39   : > { %1498 = vmatmul.mubr.bf16.vlgmr.msra.gmra.mrb[0].mxu0 %v2013_v35  ;;  %v2520_v35 = vld [vmem:[%s2661_s29 + $0x2e8] sm:$0xff]  }
  0x3a   : > { %1538 = vmatmul.mubr.bf16.vlgmr.msra.gmra.mrb[0].mxu1 %v2015_v37  ;;  %2233 = vmatpush3.bf16.msra.mxu0 %v2463_v40  ;;  %v2522_v37 = vld [vmem:[%s2661_s29 + $0x270] sm:$0xff]  }
  0x3b   : > { %2255 = vmatpush3.bf16.msra.mxu1 %v2465_v42  ;;  %2234 = vmatprep.subr.bf16.mxu0 %v2466_v43  ;;  %v2525_v40 = vld [vmem:[%s2661_s29 + $0x2b0] sm:$0xff]   ;;  %v2527_v42 = vld [vmem:[%s2661_s29 + $0x238] sm:$0xff]  }
  0x3c   : > { %2256 = vmatprep.subr.bf16.mxu1 %v2468_v45  ;;  %1577 = vmatprep.mubr.bf16.mxu0 %v2018_v7  ;;  %v2528_v43 = vld [vmem:[%s2661_s29 + $0x2f8] sm:$0xff]   ;;  %v2554_v7 = vld [vmem:[%s2661_s29 + $0x368] sm:$0xff]  }
  0x3d   : > { %1617 = vmatprep.mubr.bf16.mxu1 %v2020_v13  ;;  %v2560_v13 = vld [vmem:[%s2661_s29 + $0x3f0] sm:$0xff]  }
  0x3e   : > { %2235 = vmatpush3.bf16.msra.mxu0 %v2467_v44  ;;  %v245_v44 = vld [vmem:[%s2656_s25 + $0x20] sm:$0xff] }
  0x3f   : > { %2257 = vmatpush3.bf16.msra.mxu1 %v2469_v46  ;;  %2236 = vmatprep.subr.bf16.mxu0 %v2470_v47  ;;  %v2021_v45 = vcombine.low %v245_v44, %v245_v44  ;;  %v2022_v46 = vcombine.high %v245_v44, %v245_v44  ;;  %v2531_v47 = vld [vmem:[%s2661_s29 + $0x2b8] sm:$0xff]  }
  0x40   : > { %2258 = vmatprep.subr.bf16.mxu1 %v2472_v49  ;;  %v246_v49 = vld [vmem:[%s2656_s25 + $0x28] sm:$0xff] }
  0x42   : > { %2237 = vmatpush3.bf16.msra.mxu0 %v2471_v48  ;;  %v2532_v48 = vld [vmem:[%s2661_s29 + $0x340] sm:$0xff]  }
  0x43   : > { %2259 = vmatpush3.bf16.msra.mxu1 %v2473_v50  ;;  %2238 = vmatprep.subr.bf16.mxu0 %v2474_v51  ;;  %v2023_v50 = vcombine.low %v246_v49, %v246_v49  ;;  %v2024_v51 = vcombine.high %v246_v49, %v246_v49 }
  0x44   : > { %2260 = vmatprep.subr.bf16.mxu1 %v2476_v53  ;;  %v2536_v53 = vld [vmem:[%s2661_s29 + $0x3c0] sm:$0xff]  }
  0x46   : > { %2239 = vmatpush3.bf16.msra.mxu0 %v2475_v52  ;;  %v2535_v52 = vld [vmem:[%s2661_s29 + $0x300] sm:$0xff]  }
  0x47   : > { %2261 = vmatpush3.bf16.msra.mxu1 %v2477_v54  ;;  %2240 = vmatprep.subr.bf16.mxu0 %v2478_v55  ;;  %v2537_v54 = vld [vmem:[%s2661_s29 + $0x380] sm:$0xff]   ;;  %v2538_v55 = vld [vmem:[%s2661_s29 + $0x348] sm:$0xff]  }
  0x48   : > { %2262 = vmatprep.subr.bf16.mxu1 %v2480_v57  ;;  %v2540_v57 = vld [vmem:[%s2661_s29 + $0x3c8] sm:$0xff]  }
  0x4a   : > { %2241 = vmatpush3.bf16.msra.mxu0 %v2479_v56  ;;  %v2539_v56 = vld [vmem:[%s2661_s29 + $0x308] sm:$0xff]  }
  0x4b   : > { %2263 = vmatpush3.bf16.msra.mxu1 %v2481_v58  ;;  %2242 = vmatprep.subr.bf16.mxu0 %v2482_v59  ;;  %v2541_v58 = vld [vmem:[%s2661_s29 + $0x388] sm:$0xff]   ;;  %v2542_v59 = vld [vmem:[%s2661_s29 + $0x350] sm:$0xff]  }
  0x4c   : > { %2264 = vmatprep.subr.bf16.mxu1 %v2484_v61  ;;  %v2544_v61 = vld [vmem:[%s2661_s29 + $0x3d0] sm:$0xff]  }
  0x4e   : > { %2243 = vmatpush3.bf16.msra.mxu0 %v2483_v60  ;;  %v2543_v60 = vld [vmem:[%s2661_s29 + $0x310] sm:$0xff]  }
  0x4f   : > { %2265 = vmatpush3.bf16.msra.mxu1 %v2485_v62  ;;  %2244 = vmatprep.subr.bf16.mxu0 %v2486_v63  ;;  %v2545_v62 = vld [vmem:[%s2661_s29 + $0x390] sm:$0xff]   ;;  %v2546_v63 = vld [vmem:[%s2661_s29 + $0x358] sm:$0xff]  }
  0x50   : > { %2266 = vmatprep.subr.bf16.mxu1 %v2488_v1  ;;  %v2548_v1 = vld [vmem:[%s2661_s29 + $0x3d8] sm:$0xff]  }
  0x52   : > { %2245 = vmatpush3.bf16.msra.mxu0 %v2487_v0  ;;  %v2547_v0 = vld [vmem:[%s2661_s29 + $0x318] sm:$0xff]  }
  0x53   : > { %2267 = vmatpush3.bf16.msra.mxu1 %v2489_v2  ;;  %2246 = vmatprep.subr.bf16.mxu0 %v2490_v3  ;;  %v2549_v2 = vld [vmem:[%s2661_s29 + $0x398] sm:$0xff]   ;;  %v2550_v3 = vld [vmem:[%s2661_s29 + $0x360] sm:$0xff]  }
  0x54   : > { %2268 = vmatprep.subr.bf16.mxu1 %v2492_v5  ;;  %v2552_v5 = vld [vmem:[%s2661_s29 + $0x3e0] sm:$0xff]  }
  0x56   : > { %2247 = vmatpush3.bf16.msra.mxu0 %v2491_v4  ;;  %v2551_v4 = vld [vmem:[%s2661_s29 + $0x320] sm:$0xff]  }
  0x57   : > { %2269 = vmatpush3.bf16.msra.mxu1 %v2495_v8  ;;  %2276 = vmatprep.subr.bf16.mxu0 %v2496_v10  ;;  %v2555_v8 = vld [vmem:[%s2661_s29 + $0x328] sm:$0xff]  }
  0x58   : > { %2298 = vmatprep.subr.bf16.mxu1 %v2500_v15  ;;  %v2557_v10 = vld [vmem:[%s2661_s29 + $0x3a8] sm:$0xff]   ;;  %v2562_v15 = vld [vmem:[%s2661_s29 + $0x378] sm:$0xff]  }
  0x59   : > { %1578 = vmatmul.mubr.bf16.vlgmr.msra.gmra.mrb[4].mxu0 %v2017_v9  ;;  %v2556_v9 = vld [vmem:[%s2661_s29 + $0x3e8] sm:$0xff]  }
  0x5a   : > { %2277 = vmatpush3.bf16.msra.mxu0 %v2499_v14  ;;  %1618 = vmatmul.mubr.bf16.vlgmr.msra.gmra.mrb[4].mxu1 %v2019_v12  ;;  %v2559_v12 = vld [vmem:[%s2661_s29 + $0x330] sm:$0xff]  }
  0x5b   : > { %2299 = vmatpush3.bf16.msra.mxu1 %v2501_v16  ;;  %2278 = vmatprep.subr.bf16.mxu0 %v2502_v17  ;;  %v2561_v14 = vld [vmem:[%s2661_s29 + $0x3b0] sm:$0xff]   ;;  %v2563_v16 = vld [vmem:[%s2661_s29 + $0x338] sm:$0xff]  }
  0x5c   : > { %2300 = vmatprep.subr.bf16.mxu1 %v2504_v19  ;;  %1657 = vmatprep.mubr.bf16.mxu0 %v2022_v46  ;;  %v2564_v17 = vld [vmem:[%s2661_s29 + $0x3f8] sm:$0xff]  }
  0x5d   : > { %1697 = vmatprep.mubr.bf16.mxu1 %v2024_v51 }
  0x5e   : > { %2279 = vmatpush3.bf16.msra.mxu0 %v2503_v18  ;;  %v247_v18 = vld [vmem:[%s2656_s25 + $0x30] sm:$0xff] }
  0x5f   : > { %2301 = vmatpush3.bf16.msra.mxu1 %v2505_v20  ;;  %2280 = vmatprep.subr.bf16.mxu0 %v2506_v21  ;;  %v2025_v19 = vcombine.low %v247_v18, %v247_v18  ;;  %v2026_v20 = vcombine.high %v247_v18, %v247_v18  ;;  %v2567_v21 = vld [vmem:[%s2661_s29 + $0x3b8] sm:$0xff]  }
  0x60   : > { %2302 = vmatprep.subr.bf16.mxu1 %v2508_v23  ;;  %v248_v23 = vld [vmem:[%s2656_s25 + $0x38] sm:$0xff] }
  0x62   : > { %2281 = vmatpush3.bf16.msra.mxu0 %v2507_v22  ;;  %v2568_v22 = vld [vmem:[%s2661_s29 + $0x440] sm:$0xff]  }
  0x63   : > { %2303 = vmatpush3.bf16.msra.mxu1 %v2509_v24  ;;  %2282 = vmatprep.subr.bf16.mxu0 %v2510_v25  ;;  %v2027_v24 = vcombine.low %v248_v23, %v248_v23  ;;  %v2028_v25 = vcombine.high %v248_v23, %v248_v23 }
  0x64   : > { %2304 = vmatprep.subr.bf16.mxu1 %v2512_v27  ;;  %v2572_v27 = vld [vmem:[%s2661_s29 + $0x448] sm:$0xff]  }
  0x66   : > { %2283 = vmatpush3.bf16.msra.mxu0 %v2511_v26  ;;  %v2571_v26 = vld [vmem:[%s2661_s29 + $0x400] sm:$0xff]  }
  0x67   : > { %2305 = vmatpush3.bf16.msra.mxu1 %v2513_v28  ;;  %2284 = vmatprep.subr.bf16.mxu0 %v2514_v29  ;;  %v2573_v28 = vld [vmem:[%s2661_s29 + $0x408] sm:$0xff]   ;;  %v2574_v29 = vld [vmem:[%s2661_s29 + $0x450] sm:$0xff]  }
  0x68   : > { %2306 = vmatprep.subr.bf16.mxu1 %v2516_v31  ;;  %v2576_v31 = vld [vmem:[%s2661_s29 + $0x458] sm:$0xff]  }
  0x6a   : > { %2285 = vmatpush3.bf16.msra.mxu0 %v2515_v30  ;;  %v2575_v30 = vld [vmem:[%s2661_s29 + $0x410] sm:$0xff]  }
  0x6b   : > { %2307 = vmatpush3.bf16.msra.mxu1 %v2517_v32  ;;  %2286 = vmatprep.subr.bf16.mxu0 %v2518_v33  ;;  %v2577_v32 = vld [vmem:[%s2661_s29 + $0x418] sm:$0xff]   ;;  %v2578_v33 = vld [vmem:[%s2661_s29 + $0x460] sm:$0xff]  }
  0x6c   : > { %2308 = vmatprep.subr.bf16.mxu1 %v2520_v35  ;;  %v249_v35 = vld [vmem:[%s2656_s25 + $0x40] sm:$0xff] }
  0x6e   : > { %2287 = vmatpush3.bf16.msra.mxu0 %v2519_v34  ;;  %v2579_v34 = vld [vmem:[%s2661_s29 + $0x420] sm:$0xff]  }
  0x6f   : > { %2309 = vmatpush3.bf16.msra.mxu1 %v2521_v36  ;;  %2288 = vmatprep.subr.bf16.mxu0 %v2522_v37  ;;  %v2580_v36 = vld [vmem:[%s2661_s29 + $0x468] sm:$0xff]   ;;  %v2030_v37 = vcombine.high %v249_v35, %v249_v35 }
  0x70   : > { %2310 = vmatprep.subr.bf16.mxu1 %v2524_v39  ;;  %v2582_v39 = vld [vmem:[%s2661_s29 + $0x470] sm:$0xff]  }
  0x72   : > { %2289 = vmatpush3.bf16.msra.mxu0 %v2523_v38  ;;  %v2581_v38 = vld [vmem:[%s2661_s29 + $0x428] sm:$0xff]  }
  0x73   : > { %2311 = vmatpush3.bf16.msra.mxu1 %v2525_v40  ;;  %2290 = vmatprep.subr.bf16.mxu0 %v2526_v41  ;;  %v2583_v40 = vld [vmem:[%s2661_s29 + $0x430] sm:$0xff]   ;;  %v2584_v41 = vld [vmem:[%s2661_s29 + $0x478] sm:$0xff]  }
  0x74   : > { %2312 = vmatprep.subr.bf16.mxu1 %v2528_v43  ;;  %v2029_v43 = vcombine.low %v249_v35, %v249_v35  ;;  %v2588_v35 = vld [vmem:[%s2860_s3] sm:$0xff] (!%p2175_p6)  }
  0x76   : > { %2291 = vmatpush3.bf16.msra.mxu0 %v2527_v42  ;;  %v2585_v42 = vld [vmem:[%s2661_s29 + $0x438] sm:$0xff]  }
  0x77   : > { %2313 = vmatpush3.bf16.msra.mxu1 %v2531_v47  ;;  %2320 = vmatprep.subr.bf16.mxu0 %v2532_v48 }
  0x78   : > { %2342 = vmatprep.subr.bf16.mxu1 %v2536_v53 }
  0x79   : > { %1658 = vmatmul.mubr.bf16.vlgmr.msra.gmra.mrb[8].mxu0 %v2021_v45 }
  0x7a   : > { %2321 = vmatpush3.bf16.msra.mxu0 %v2535_v52  ;;  %1698 = vmatmul.mubr.bf16.vlgmr.msra.gmra.mrb[8].mxu1 %v2023_v50 }
  0x7b   : > { %2343 = vmatpush3.bf16.msra.mxu1 %v2537_v54  ;;  %2322 = vmatprep.subr.bf16.mxu0 %v2538_v55 }
  0x7c   : > { %2344 = vmatprep.subr.bf16.mxu1 %v2540_v57  ;;  %1737 = vmatprep.mubr.bf16.mxu0 %v2026_v20 }
  0x7d   : > { %1777 = vmatprep.mubr.bf16.mxu1 %v2028_v25 }
  0x7e   : > { %2323 = vmatpush3.bf16.msra.mxu0 %v2539_v56 }
  0x7f   : > { %2345 = vmatpush3.bf16.msra.mxu1 %v2541_v58  ;;  %2324 = vmatprep.subr.bf16.mxu0 %v2542_v59 }
  0x80   : > { %2346 = vmatprep.subr.bf16.mxu1 %v2544_v61 }
  0x82   : > { %2325 = vmatpush3.bf16.msra.mxu0 %v2543_v60 }
  0x83   : > { %2347 = vmatpush3.bf16.msra.mxu1 %v2545_v62  ;;  %2326 = vmatprep.subr.bf16.mxu0 %v2546_v63 }
  0x84   : > { %2348 = vmatprep.subr.bf16.mxu1 %v2548_v1 }
  0x86   : > { %2327 = vmatpush3.bf16.msra.mxu0 %v2547_v0 }
  0x87   : > { %2349 = vmatpush3.bf16.msra.mxu1 %v2549_v2  ;;  %2328 = vmatprep.subr.bf16.mxu0 %v2550_v3 }
  0x88   : > { %2350 = vmatprep.subr.bf16.mxu1 %v2552_v5 }
  0x8a   : > { %2329 = vmatpush3.bf16.msra.mxu0 %v2551_v4 }
  0x8b   : > { %2351 = vmatpush3.bf16.msra.mxu1 %v2553_v6  ;;  %2330 = vmatprep.subr.bf16.mxu0 %v2554_v7 }
  0x8c   : > { %2352 = vmatprep.subr.bf16.mxu1 %v2556_v9 }
  0x8e   : > { %2331 = vmatpush3.bf16.msra.mxu0 %v2555_v8 }
  0x8f   : > { %2353 = vmatpush3.bf16.msra.mxu1 %v2557_v10  ;;  %2332 = vmatprep.subr.bf16.mxu0 %v2558_v11 }
  0x90   : > { %2354 = vmatprep.subr.bf16.mxu1 %v2560_v13 }
  0x92   : > { %2333 = vmatpush3.bf16.msra.mxu0 %v2559_v12 }
  0x93   : > { %2355 = vmatpush3.bf16.msra.mxu1 %v2561_v14  ;;  %2334 = vmatprep.subr.bf16.mxu0 %v2562_v15 }
  0x94   : > { %2356 = vmatprep.subr.bf16.mxu1 %v2564_v17 }
  0x96   : > { %2335 = vmatpush3.bf16.msra.mxu0 %v2563_v16 }
  0x97   : > { %2357 = vmatpush3.bf16.msra.mxu1 %v2567_v21  ;;  %2364 = vmatprep.subr.bf16.mxu0 %v2568_v22 }
  0x99   : > { %1738 = vmatmul.mubr.bf16.vlgmr.msra.gmra.mrb[12].mxu0 %v2025_v19 }
  0x9a   : > { %2365 = vmatpush3.bf16.msra.mxu0 %v2571_v26  ;;  %1778 = vmatmul.mubr.bf16.vlgmr.msra.gmra.mrb[12].mxu1 %v2027_v24 }
  0x9b   : > { %2366 = vmatprep.subr.bf16.mxu0 %v2572_v27  ;;  %1817 = vmatprep.mubr.bf16.mxu0 %v2030_v37  ;;  %v2589_v37 = vld [vmem:[%s2860_s3 + $0x8] sm:$0xff] (!%p2175_p6)  }
  0x9e   : > { %2367 = vmatpush3.bf16.msra.mxu0 %v2573_v28 }
  0x9f   : > { %2368 = vmatprep.subr.bf16.mxu0 %v2574_v29 }
  0xa2   : > { %2369 = vmatpush3.bf16.msra.mxu0 %v2575_v30 }
  0xa3   : > { %2370 = vmatprep.subr.bf16.mxu0 %v2576_v31  ;;  %v240_v31 = vld [vmem:[#allocation2] sm:$0xff] }
  0xa6   : > { %2371 = vmatpush3.bf16.msra.mxu0 %v2577_v32 }
  0xa7   : > { %2372 = vmatprep.subr.bf16.mxu0 %v2578_v33 }
  0xaa   : > { %2373 = vmatpush3.bf16.msra.mxu0 %v2579_v34 }
  0xab   : > { %2374 = vmatprep.subr.bf16.mxu0 %v2580_v36  ;;  %v2609_v36 = vmov (!%p2175_p6), 0.0  }
  0xae   : > { %2375 = vmatpush3.bf16.msra.mxu0 %v2581_v38  ;;  %v2590_v38 = vld [vmem:[%s2860_s3 + $0x10] sm:$0xff] (!%p2175_p6)  }
  0xaf   : > { %2376 = vmatprep.subr.bf16.mxu0 %v2582_v39  ;;  %v2591_v39 = vld [vmem:[%s2860_s3 + $0x18] sm:$0xff] (!%p2175_p6)  }
  0xb2   : > { %2377 = vmatpush3.bf16.msra.mxu0 %v2583_v40  ;;  %v2592_v40 = vld [vmem:[%s2860_s3 + $0x20] sm:$0xff] (!%p2175_p6)  }
  0xb3   : > { %2378 = vmatprep.subr.bf16.mxu0 %v2584_v41  ;;  %v2593_v41 = vld [vmem:[%s2860_s3 + $0x28] sm:$0xff] (!%p2175_p6)  }
  0xb6   : > { %2379 = vmatpush3.bf16.msra.mxu0 %v2585_v42 }
  0xb7   : > { %2395 = vmatprep.subr.bf16.mxu0 (!%p2175_p6), %v2609_v36 }
  0xb9   : > { %1818 = vmatmul.mubr.bf16.vlgmr.msra.gmra.mrb[16].mxu0 %v2029_v43  ;;  %v2176_v43 = vld [vmem:[%s2859_s2] ss:$0 sm:$0xff] (!%p2175_p6) }
  0xba   : > { %2396 = vmatpush3.bf16.msra.mxu0 (!%p2175_p6), %v2588_v35  ;;  %2411 = vmatprep.mubr.msk.bf16.mxu0 (!%p2175_p6), %vm2610_vm0, %v2609_v36 }
  0xbb   : > { %2397 = vmatprep.subr.bf16.mxu0 (!%p2175_p6), %v2609_v36 }
  0xbe   : > { %2398 = vmatpush3.bf16.msra.mxu0 (!%p2175_p6), %v2589_v37 }
  0xbf   : > { %2399 = vmatprep.subr.bf16.mxu0 (!%p2175_p6), %v2609_v36 }
  0xc2   : > { %2400 = vmatpush3.bf16.msra.mxu0 (!%p2175_p6), %v2590_v38 }
  0xc3   : > { %2401 = vmatprep.subr.bf16.mxu0 (!%p2175_p6), %v2609_v36 }
  0xc6   : > { %2402 = vmatpush3.bf16.msra.mxu0 (!%p2175_p6), %v2591_v39 }
  0xc7   : > { %2403 = vmatprep.subr.bf16.mxu0 (!%p2175_p6), %v2609_v36 }
  0xca   : > { %2404 = vmatpush3.bf16.msra.mxu0 (!%p2175_p6), %v2592_v40 }
  0xcb   : > { %2405 = vmatprep.subr.bf16.mxu0 (!%p2175_p6), %v2609_v36 }
  0xce   : > { %2406 = vmatpush3.bf16.msra.mxu0 (!%p2175_p6), %v2593_v41 }
  0xcf   : > { %2407 = vmatprep.subr.bf16.mxu0 (!%p2175_p6), %v2609_v36 }
 0x10c   : > { %v2204_v44 = vpop.f32.mrb[0].mxu0 }
 0x10d   : > { %v2226_v45 = vpop.f32.mrb[0].mxu1  ;;  %v2205_v46 = vpop.f32.mrb[1].mxu0 }
 0x10e   : > { %v2227_v47 = vpop.f32.mrb[1].mxu1  ;;  %v2206_v48 = vadd.f32 %v2205_v46, %v2204_v44  ;;  %v2207_v50 = vpop.f32.mrb[2].mxu0 }
 0x10f   : > { %v2228_v49 = vadd.f32 %v2227_v47, %v2226_v45  ;;  %v2229_v51 = vpop.f32.mrb[2].mxu1  ;;  %v2208_v52 = vpop.f32.mrb[3].mxu0  ;;  %v2594_v45 = vld [vmem:[%s2860_s3 + $0x30] sm:$0xff] (!%p2175_p6)   ;;  %v2595_v47 = vld [vmem:[%s2860_s3 + $0x38] sm:$0xff] (!%p2175_p6)  }
 0x110   : > { %v2230_v53 = vpop.f32.mrb[3].mxu1  ;;  %2408 = vmatpush3.bf16.msra.mxu0 (!%p2175_p6), %v2594_v45 }
 0x111   : > { %v1540_v54 = vadd.f32 %v2228_v49, %v2206_v48  ;;  %2409 = vmatprep.subr.bf16.mxu0 (!%p2175_p6), %v2609_v36  ;;  %v2177_v49 = vld [vmem:[%s2861_s4] ss:$0 sm:$0xff] (!%p2175_p6) }
 0x114   : > { %2410 = vmatpush3.bf16.msra.mxu0 (!%p2175_p6), %v2595_v47 }
 0x12c   : > { %v2248_v55 = vpop.f32.mrb[4].mxu0 }
 0x12d   : > { %v2249_v56 = vpop.f32.mrb[5].mxu0  ;;  %v2270_v57 = vpop.f32.mrb[4].mxu1 }
 0x12e   : > { %v2250_v58 = vadd.f32 %v2249_v56, %v2248_v55  ;;  %v2251_v59 = vpop.f32.mrb[6].mxu0  ;;  %v2271_v60 = vpop.f32.mrb[5].mxu1 }
 0x12f   : > { %v2252_v61 = vpop.f32.mrb[7].mxu0  ;;  %v2272_v62 = vadd.f32 %v2271_v60, %v2270_v57  ;;  %v2273_v63 = vpop.f32.mrb[6].mxu1 }
 0x130   : > { %v1580_v0 = vadd.f32 %v2250_v58, %v1540_v54  ;;  %v2274_v1 = vpop.f32.mrb[7].mxu1 }
 0x132   : > { %v1620_v2 = vadd.f32 %v2272_v62, %v1580_v0 }
 0x14c   : > { %v2292_v3 = vpop.f32.mrb[8].mxu0 }
 0x14d   : > { %v2293_v4 = vpop.f32.mrb[9].mxu0  ;;  %v2314_v7 = vpop.f32.mrb[8].mxu1 }
 0x14e   : > { %v2294_v5 = vadd.f32 %v2293_v4, %v2292_v3  ;;  %v2295_v6 = vpop.f32.mrb[10].mxu0  ;;  %v2315_v9 = vpop.f32.mrb[9].mxu1 }
 0x14f   : > { %v2296_v8 = vpop.f32.mrb[11].mxu0  ;;  %v2316_v11 = vadd.f32 %v2315_v9, %v2314_v7  ;;  %v2317_v12 = vpop.f32.mrb[10].mxu1 }
 0x150   : > { %v1660_v10 = vadd.f32 %v2294_v5, %v1620_v2  ;;  %v2318_v13 = vpop.f32.mrb[11].mxu1 }
 0x152   : > { %v1700_v14 = vadd.f32 %v2316_v11, %v1660_v10 }
 0x16c   : > { %v2336_v15 = vpop.f32.mrb[12].mxu0 }
 0x16d   : > { %v2337_v16 = vpop.f32.mrb[13].mxu0  ;;  %v2358_v19 = vpop.f32.mrb[12].mxu1 }
 0x16e   : > { %v2338_v17 = vadd.f32 %v2337_v16, %v2336_v15  ;;  %v2339_v18 = vpop.f32.mrb[14].mxu0  ;;  %v2359_v21 = vpop.f32.mrb[13].mxu1 }
 0x16f   : > { %v2340_v20 = vpop.f32.mrb[15].mxu0  ;;  %v2360_v23 = vadd.f32 %v2359_v21, %v2358_v19  ;;  %v2361_v24 = vpop.f32.mrb[14].mxu1 }
 0x170   : > { %v1740_v22 = vadd.f32 %v2338_v17, %v1700_v14  ;;  %v2362_v25 = vpop.f32.mrb[15].mxu1 }
 0x172   : > { %v1780_v26 = vadd.f32 %v2360_v23, %v1740_v22 }
 0x18c   : > { %v2380_v27 = vpop.f32.mrb[16].mxu0 }
 0x18d   : > { %v2381_v28 = vpop.f32.mrb[17].mxu0 }
 0x18e   : > { %v2382_v29 = vadd.f32 %v2381_v28, %v2380_v27  ;;  %v2383_v30 = vpop.f32.mrb[18].mxu0  ;;  %1830 = sbr.rel (%p2175_p6) target bundleno = 947 (0x3b3), region = 48 }
 0x18f   : > { %v2384_v32 = vpop.f32.mrb[19].mxu0 }
 0x190   : > { %v1820_v33 = vadd.f32 %v2382_v29, %v1780_v26 }
 0x192   : > { %v1825_v34 = vadd.f32 %v1820_v33, %v240_v31 }
 0x194   : > { %1826 = vst [vmem:[#allocation2] sm:$0xff] %v1825_v34 }
 0x19b   : > { %v1831_v42 = vld [vmem:[#allocation2] sm:$0xff] }
 0x19c   : > { %v1839_v44 = vadd.f32 %v2176_v43, %v1831_v42 }
 0x19e   : > { %v1840_v46 = vmax.f32 %v1839_v44, 0.0 }
 0x1a0   : > { %v1841_v48 = vpack.c.bf16 %v1840_v46, %v1840_v46 }
 0x1a2   : > { %2412 = vmatmul.mubr.bf16.vlgmr.msra.gmra.mrb[0].mxu0 %v1841_v48 }
 0x275   : > { %v1947_v50 = vpop.f32.mrb[0].mxu0 }
 0x276   : > { %v1948_v51 = vadd.f32 %v2177_v49, %v1947_v50  ;;  %v2413_v52 = vpop.f32.mrb[1].mxu0 }
 0x277   : > { %v1950_v53 = vpop.f32.mrb[2].mxu0 }
 0x278   : > { %v2414_v54 = vpop.f32.mrb[3].mxu0  ;;  %v1954_v55 = vsel %vm1953_vm1, %v1948_v51, -inf }
 0x279   : > { %1955 = vmax.xlane.f32.xlu0 %v1954_v55 }
 0x306   : > { %v1956_v56 = vpop.xlane.xlu0 %1955 }
 0x307   : > { %v1957_v57 = vsub.f32 %v1948_v51, %v1956_v56 }
 0x309   : > { %v1958_v58 = vmul.f32 1.442695, %v1957_v57 }
 0x30b   : > { %2596 = vpow2.f32 %v1958_v58 }
 0x315   : > { %v2597_v59 = vpop.eup %2596 }
 0x316   : > { %v1960_v60 = vsel %vm1953_vm1, %v2597_v59, 0.0 }
 0x317   : > { %1961 = vadd.xlane.f32.xlu0 %v1960_v60 }
 0x3a4   : > { %v1962_v61 = vpop.xlane.xlu0 %1961 }
 0x3a5   : > { %2598 = vrcp.f32 %v1962_v61 }
 0x3af   : > { %v2599_v62 = vpop.eup %2598 }
 0x3b0   : > { %v1964_v63 = vmul.f32 %v2599_v62, %v2597_v59 }
 0x3b2   : > { %1965 = vst.msk [vmem:[%s2862_s5] sm:$0xff] %vm1953_vm1, %v1964_v63 }
 0x3b3 PF: > { %s15_s18 = sadd.s32 1, %s2606_s18  }
 0x3b4   : > { %p12_p7 = scmp.ge.s32.totalorder %s15_s18, 6  }
 0x3b6   :  { %14 = sbr.rel (!%p12_p7) target bundleno = 1 (0x1), region = 77 }

</bundles_post_ra>
